<compile_context>
chip_gen: v7x
topology: tpu7x:2x2x1
jax: 0.10.0
libtpu: 0.0.40
codegen_flags: <defaults>
</compile_context>

<pallas_src>
import jax
import jax.numpy as jnp
from jax.experimental import pallas as pl
from jax.experimental.pallas import tpu as pltpu

_TM_CONV = 256            # lane tile over pooled output pixels (fits v5e VMEM)
_TB_FC = 128              # lane tile over batch for the fused FC stack
_VMEM_LIMIT = 32 * 1024 * 1024


def _round_up(x, m):
    return (x + m - 1) // m * m


def _compiler_params():
    return pltpu.CompilerParams(
        dimension_semantics=("parallel",),
        vmem_limit_bytes=_VMEM_LIMIT,
    )


# ----------------------------- Pallas kernels ------------------------------ #

def _conv_relu_pool_kernel(a_ref, w_ref, b_ref, o_ref):
    """Fused conv-as-matmul + bias + ReLU + 2x2 max-pool (lane-dense output).

    a_ref: (4, Kp, TM)  im2col patches for the 4 positions of each 2x2 pool
                        window; K on sublanes, pooled pixels (M) on lanes.
    w_ref: (Cp, Kp)     zero-padded (Cout, Cin*KH*KW) conv weights.
    b_ref: (Cp, 1)      bias column.
    o_ref: (Cp, TM)     pooled activations: channels on sublanes, pixels on lanes.
    """
    w = w_ref[...]
    b = b_ref[...]

    def win(d):
        acc = jnp.dot(w, a_ref[d], preferred_element_type=jnp.float32)
        return jnp.maximum(acc + b, 0.0)

    o_ref[...] = jnp.maximum(jnp.maximum(win(0), win(1)),
                             jnp.maximum(win(2), win(3)))


def _mlp_kernel(x_ref, w1_ref, b1_ref, w2_ref, b2_ref, w3_ref, b3_ref, o_ref):
    """Fused fc1 -> relu -> fc2 -> relu -> fc3; intermediates stay on-chip.

    x_ref: (400, TB) with batch on lanes; weights in torch (out, in) layout so
    they are used as the MXU LHS with no transpose. o_ref: (10, TB).
    """
    x = x_ref[...]
    h = jnp.dot(w1_ref[...], x, preferred_element_type=jnp.float32) + b1_ref[...]
    h = jnp.maximum(h, 0.0)
    h = jnp.dot(w2_ref[...], h, preferred_element_type=jnp.float32) + b2_ref[...]
    h = jnp.maximum(h, 0.0)
    o_ref[...] = (jnp.dot(w3_ref[...], h, preferred_element_type=jnp.float32)
                  + b3_ref[...])


# ------------------------------- wrappers ----------------------------------- #

def conv_relu_pool(x_cbhw, w_pad, b_pad, *, cout, kh, kw):
    """x_cbhw: (Cin, B, H, W); w_pad: (Cp, Kp); b_pad: (Cp, 1).

    Returns pool(relu(conv(x))) in (Cout, B, OH//2, OW//2) layout.
    """
    cin, bsz, h, w = x_cbhw.shape
    oh, ow = h - kh + 1, w - kw + 1
    hp, wp = oh // 2, ow // 2
    cp, kp = w_pad.shape
    k = cin * kh * kw
    mp = bsz * hp * wp
    mp_pad = _round_up(mp, _TM_CONV)

    # im2col grouped by 2x2 pool window:
    #   a4[d, k, m], d = 2*di + dj, k = (cin, kh, kw)  [torch flatten order],
    #   m = (b, hp, wp);  a4[d,k,m] = x[cin, b, 2*hp+di+kh, 2*wp+dj+kw].
    pat = jnp.stack([x_cbhw[:, :, i:i + oh, j:j + ow]
                     for i in range(kh) for j in range(kw)], axis=1)
    pat = pat.reshape(cin, kh * kw, bsz, hp, 2, wp, 2)
    pat = jnp.transpose(pat, (4, 6, 0, 1, 2, 3, 5))   # (di,dj,Cin,KhKw,B,Hp,Wp)
    a4 = pat.reshape(4, k, mp)
    a4 = jnp.pad(a4, ((0, 0), (0, kp - k), (0, mp_pad - mp)))

    cost = pl.CostEstimate(
        flops=2 * 4 * cp * kp * mp_pad,
        transcendentals=0,
        bytes_accessed=4 * (a4.size + w_pad.size + b_pad.size + cp * mp_pad),
    )

    out = pl.pallas_call(
        _conv_relu_pool_kernel,
        out_shape=jax.ShapeDtypeStruct((cp, mp_pad), jnp.float32),
        grid=(mp_pad // _TM_CONV,),
        in_specs=[
            pl.BlockSpec((4, kp, _TM_CONV), lambda i: (0, 0, i)),
            pl.BlockSpec((cp, kp), lambda i: (0, 0)),      # resident weights
            pl.BlockSpec((cp, 1), lambda i: (0, 0)),       # resident bias
        ],
        out_specs=pl.BlockSpec((cp, _TM_CONV), lambda i: (0, i)),
        compiler_params=_compiler_params(),
        cost_estimate=cost,
    )(a4, w_pad, b_pad)

    return out[:cout, :mp].reshape(cout, bsz, hp, wp)


def mlp(xt, fw1, fb1, fw2, fb2, fw3, fb3):
    """xt: (400, B) with batch on lanes. Returns logits (B, 10)."""
    k1, bsz = xt.shape
    b_pad = _round_up(bsz, _TB_FC)
    xt = jnp.pad(xt, ((0, 0), (0, b_pad - bsz)))
    n_out = fw3.shape[0]

    out = pl.pallas_call(
        _mlp_kernel,
        out_shape=jax.ShapeDtypeStruct((n_out, b_pad), jnp.float32),
        grid=(b_pad // _TB_FC,),
        in_specs=[
            pl.BlockSpec((k1, _TB_FC), lambda i: (0, i)),
            pl.BlockSpec(fw1.shape, lambda i: (0, 0)),
            pl.BlockSpec(fb1.shape, lambda i: (0, 0)),
            pl.BlockSpec(fw2.shape, lambda i: (0, 0)),
            pl.BlockSpec(fb2.shape, lambda i: (0, 0)),
            pl.BlockSpec(fw3.shape, lambda i: (0, 0)),
            pl.BlockSpec(fb3.shape, lambda i: (0, 0)),
        ],
        out_specs=pl.BlockSpec((n_out, _TB_FC), lambda i: (0, i)),
        compiler_params=_compiler_params(),
    )(xt, fw1, fb1, fw2, fb2, fw3, fb3)

    return out[:, :bsz].T


# --------------------------- param preparation ------------------------------ #

def prepare_params(p):
    """One-time packing of torch-layout params into TPU-friendly layouts."""
    def conv_pack(w, b):
        cout, cin, kh, kw = w.shape
        k = cin * kh * kw
        cp, kp = _round_up(cout, 8), _round_up(k, 128)
        w2 = jnp.pad(w.reshape(cout, k), ((0, cp - cout), (0, kp - k)))
        b2 = jnp.pad(b, (0, cp - cout)).reshape(cp, 1)
        return w2, b2

    cw1, cb1 = conv_pack(p["w1"], p["b1"])
    cw2, cb2 = conv_pack(p["w2"], p["b2"])
    return {
        "cw1": cw1, "cb1": cb1, "cw2": cw2, "cb2": cb2,
        "fw1": p["fw1"], "fb1": p["fb1"].reshape(-1, 1),
        "fw2": p["fw2"], "fb2": p["fb2"].reshape(-1, 1),
        "fw3": p["fw3"], "fb3": p["fb3"].reshape(-1, 1),
    }


def convnet_forward(x, q):
    """x: (B, 3, 32, 32) NCHW f32; q: prepare_params(...) output -> (B, 10)."""
    bsz = x.shape[0]
    # Activations flow in (C, B, H, W) layout so the lane-dense (Cout, B*Hp*Wp)
    # conv outputs feed the next layer's patch extraction with no transposes.
    y = jnp.transpose(x, (1, 0, 2, 3))                                 # (3,B,32,32)
    y = conv_relu_pool(y, q["cw1"], q["cb1"], cout=6, kh=5, kw=5)      # (6,B,14,14)
    y = conv_relu_pool(y, q["cw2"], q["cb2"], cout=16, kh=5, kw=5)     # (16,B,5,5)
    # torch flatten order (c, h, w) per batch row -> (400, B), batch on lanes.
    xt = jnp.transpose(y, (0, 2, 3, 1)).reshape(16 * 5 * 5, bsz)
    return mlp(xt, q["fw1"], q["fb1"], q["fw2"], q["fb2"], q["fw3"], q["fb3"])


# -------------------------- reference / params ------------------------------ #

def reference_forward(x, p):
    def conv(x, w, b):
        y = jax.lax.conv_general_dilated(
            x, w, (1, 1), "VALID", dimension_numbers=("NCHW", "OIHW", "NCHW"))
        return jax.nn.relu(y + b[None, :, None, None])

    def pool(x):
        return jax.lax.reduce_window(
            x, -jnp.inf, jax.lax.max, (1, 1, 2, 2), (1, 1, 2, 2), "VALID")

    y = pool(conv(x, p["w1"], p["b1"]))
    y = pool(conv(y, p["w2"], p["b2"]))
    y = y.reshape(x.shape[0], -1)
    y = jax.nn.relu(y @ p["fw1"].T + p["fb1"])
    y = jax.nn.relu(y @ p["fw2"].T + p["fb2"])
    return y @ p["fw3"].T + p["fb3"]


def init_params(key):
    def u(k, shape, fan_in):
        bound = float(fan_in) ** -0.5
        return jax.random.uniform(k, shape, jnp.float32, -bound, bound)

    ks = jax.random.split(key, 10)
    return {
        "w1":  u(ks[0], (6, 3, 5, 5),  3 * 5 * 5),
        "b1":  u(ks[1], (6,),          3 * 5 * 5),
        "w2":  u(ks[2], (16, 6, 5, 5), 6 * 5 * 5),
        "b2":  u(ks[3], (16,),         6 * 5 * 5),
        "fw1": u(ks[4], (120, 400),    400),
        "fb1": u(ks[5], (120,),        400),
        "fw2": u(ks[6], (84, 120),     120),
        "fb2": u(ks[7], (84,),         120),
        "fw3": u(ks[8], (10, 84),      84),
        "fb3": u(ks[9], (10,),         84),
    }


if __name__ == "__main__":
    key = jax.random.PRNGKey(0)
    pkey, xkey = jax.random.split(key)
    params = init_params(pkey)
    prepared = prepare_params(params)     # hoisted one-time weight packing
    # Batch=2; spatial must be 32x32 so the flatten to 16*5*5 matches the module.
    x = jax.random.normal(xkey, (2, 3, 32, 32), dtype=jnp.float32)

    out = jax.block_until_ready(jax.jit(convnet_forward)(x, prepared))
    ref = jax.block_until_ready(jax.jit(reference_forward)(x, params))

    assert out.shape == (2, 10), out.shape
    assert jnp.allclose(out, ref, atol=1e-4, rtol=1e-4), (out, ref)
    print("KERNEL_OK")
</pallas_src>

<mosaic_0001>
module attributes {stable_mosaic.version = 11 : i64} {
  func.func @_conv_relu_pool_kernel(%arg0: i32, %arg1: memref<4x128x256xf32, #tpu.memory_space<vmem>>, %arg2: memref<8x128xf32, #tpu.memory_space<vmem>>, %arg3: memref<8x1xf32, #tpu.memory_space<vmem>>, %arg4: memref<8x256xf32, #tpu.memory_space<vmem>>) attributes {dimension_semantics = [#tpu.dimension_semantics<parallel>], iteration_bounds = array<i64: 2>, scalar_prefetch = 0 : i64, scratch_operands = 0 : i64, tpu.core_type = #tpu.core_type<tc>, window_params = [{transform_indices = @transform_0, window_bounds = array<i64: 4, 128, 256>}, {pipeline_mode = #tpu.pipeline_mode<synchronous>, transform_indices = @transform_1, window_bounds = array<i64: 8, 128>}, {pipeline_mode = #tpu.pipeline_mode<synchronous>, transform_indices = @transform_2, window_bounds = array<i64: 8, 1>}, {transform_indices = @transform_3, window_bounds = array<i64: 8, 256>}]} {
    %c0 = arith.constant 0 : index
    %c0_0 = arith.constant 0 : index
    %0 = vector.load %arg2[%c0, %c0_0] : memref<8x128xf32, #tpu.memory_space<vmem>>, vector<8x128xf32>
    %c0_1 = arith.constant 0 : index
    %c0_2 = arith.constant 0 : index
    %1 = vector.load %arg3[%c0_1, %c0_2] : memref<8x1xf32, #tpu.memory_space<vmem>>, vector<8x1xf32>
    %c0_3 = arith.constant 0 : index
    %c0_4 = arith.constant 0 : index
    %c0_5 = arith.constant 0 : index
    %2 = vector.load %arg1[%c0_3, %c0_4, %c0_5] : memref<4x128x256xf32, #tpu.memory_space<vmem>>, vector<1x128x256xf32>
    %3 = vector.shape_cast %2 : vector<1x128x256xf32> to vector<128x256xf32>
    %cst = arith.constant dense<0.000000e+00> : vector<8x256xf32>
    %4 = tpu.matmul %0, %3, %cst {dimension_numbers = #tpu.dot_dimension_numbers<[1], [0], [0], [1], [0, 0, 1, 1], [], []>} : vector<8x128xf32>, vector<128x256xf32>, vector<8x256xf32> -> vector<8x256xf32>
    %5 = vector.broadcast %1 : vector<8x1xf32> to vector<8x256xf32>
    %6 = arith.addf %4, %5 : vector<8x256xf32>
    %cst_6 = arith.constant 0.000000e+00 : f32
    %7 = vector.broadcast %cst_6 : f32 to vector<8x256xf32>
    %8 = arith.maximumf %6, %7 : vector<8x256xf32>
    %c1 = arith.constant 1 : index
    %c0_7 = arith.constant 0 : index
    %c0_8 = arith.constant 0 : index
    %9 = vector.load %arg1[%c1, %c0_7, %c0_8] : memref<4x128x256xf32, #tpu.memory_space<vmem>>, vector<1x128x256xf32>
    %10 = vector.shape_cast %9 : vector<1x128x256xf32> to vector<128x256xf32>
    %cst_9 = arith.constant dense<0.000000e+00> : vector<8x256xf32>
    %11 = tpu.matmul %0, %10, %cst_9 {dimension_numbers = #tpu.dot_dimension_numbers<[1], [0], [0], [1], [0, 0, 1, 1], [], []>} : vector<8x128xf32>, vector<128x256xf32>, vector<8x256xf32> -> vector<8x256xf32>
    %12 = vector.broadcast %1 : vector<8x1xf32> to vector<8x256xf32>
    %13 = arith.addf %11, %12 : vector<8x256xf32>
    %cst_10 = arith.constant 0.000000e+00 : f32
    %14 = vector.broadcast %cst_10 : f32 to vector<8x256xf32>
    %15 = arith.maximumf %13, %14 : vector<8x256xf32>
    %16 = arith.maximumf %8, %15 : vector<8x256xf32>
    %c2 = arith.constant 2 : index
    %c0_11 = arith.constant 0 : index
    %c0_12 = arith.constant 0 : index
    %17 = vector.load %arg1[%c2, %c0_11, %c0_12] : memref<4x128x256xf32, #tpu.memory_space<vmem>>, vector<1x128x256xf32>
    %18 = vector.shape_cast %17 : vector<1x128x256xf32> to vector<128x256xf32>
    %cst_13 = arith.constant dense<0.000000e+00> : vector<8x256xf32>
    %19 = tpu.matmul %0, %18, %cst_13 {dimension_numbers = #tpu.dot_dimension_numbers<[1], [0], [0], [1], [0, 0, 1, 1], [], []>} : vector<8x128xf32>, vector<128x256xf32>, vector<8x256xf32> -> vector<8x256xf32>
    %20 = vector.broadcast %1 : vector<8x1xf32> to vector<8x256xf32>
    %21 = arith.addf %19, %20 : vector<8x256xf32>
    %cst_14 = arith.constant 0.000000e+00 : f32
    %22 = vector.broadcast %cst_14 : f32 to vector<8x256xf32>
    %23 = arith.maximumf %21, %22 : vector<8x256xf32>
    %c3 = arith.constant 3 : index
    %c0_15 = arith.constant 0 : index
    %c0_16 = arith.constant 0 : index
    %24 = vector.load %arg1[%c3, %c0_15, %c0_16] : memref<4x128x256xf32, #tpu.memory_space<vmem>>, vector<1x128x256xf32>
    %25 = vector.shape_cast %24 : vector<1x128x256xf32> to vector<128x256xf32>
    %cst_17 = arith.constant dense<0.000000e+00> : vector<8x256xf32>
    %26 = tpu.matmul %0, %25, %cst_17 {dimension_numbers = #tpu.dot_dimension_numbers<[1], [0], [0], [1], [0, 0, 1, 1], [], []>} : vector<8x128xf32>, vector<128x256xf32>, vector<8x256xf32> -> vector<8x256xf32>
    %27 = vector.broadcast %1 : vector<8x1xf32> to vector<8x256xf32>
    %28 = arith.addf %26, %27 : vector<8x256xf32>
    %cst_18 = arith.constant 0.000000e+00 : f32
    %29 = vector.broadcast %cst_18 : f32 to vector<8x256xf32>
    %30 = arith.maximumf %28, %29 : vector<8x256xf32>
    %31 = arith.maximumf %23, %30 : vector<8x256xf32>
    %32 = arith.maximumf %16, %31 : vector<8x256xf32>
    %c0_19 = arith.constant 0 : index
    %c0_20 = arith.constant 0 : index
    %33 = vector.load %arg4[%c0_19, %c0_20] : memref<8x256xf32, #tpu.memory_space<vmem>>, vector<8x256xf32>
    tpu.vector_store %arg4[%c0_19, %c0_20], %32 {strides = array<i32>} : memref<8x256xf32, #tpu.memory_space<vmem>>, vector<8x256xf32>,
    return
  }
  func.func @transform_0(%arg0: i32) -> (i32, i32, i32) {
    %c0_i32 = arith.constant 0 : i32
    %c0_i32_0 = arith.constant 0 : i32
    %c0_i32_1 = arith.constant 0 : i32
    return %c0_i32, %c0_i32_0, %arg0 : i32, i32, i32
  }
  func.func @transform_1(%arg0: i32) -> (i32, i32) {
    %c0_i32 = arith.constant 0 : i32
    %c0_i32_0 = arith.constant 0 : i32
    %c0_i32_1 = arith.constant 0 : i32
    return %c0_i32, %c0_i32_0 : i32, i32
  }
  func.func @transform_2(%arg0: i32) -> (i32, i32) {
    %c0_i32 = arith.constant 0 : i32
    %c0_i32_0 = arith.constant 0 : i32
    %c0_i32_1 = arith.constant 0 : i32
    return %c0_i32, %c0_i32_0 : i32, i32
  }
  func.func @transform_3(%arg0: i32) -> (i32, i32) {
    %c0_i32 = arith.constant 0 : i32
    %c0_i32_0 = arith.constant 0 : i32
    return %c0_i32, %arg0 : i32, i32
  }
}

module attributes {stable_mosaic.version = 11 : i64} {
  func.func @_conv_relu_pool_kernel(%arg0: i32, %arg1: memref<4x256x256xf32, #tpu.memory_space<vmem>>, %arg2: memref<16x256xf32, #tpu.memory_space<vmem>>, %arg3: memref<16x1xf32, #tpu.memory_space<vmem>>, %arg4: memref<16x256xf32, #tpu.memory_space<vmem>>) attributes {dimension_semantics = [#tpu.dimension_semantics<parallel>], iteration_bounds = array<i64: 1>, scalar_prefetch = 0 : i64, scratch_operands = 0 : i64, tpu.core_type = #tpu.core_type<tc>, window_params = [{transform_indices = @transform_0, window_bounds = array<i64: 4, 256, 256>}, {pipeline_mode = #tpu.pipeline_mode<synchronous>, transform_indices = @transform_1, window_bounds = array<i64: 16, 256>}, {pipeline_mode = #tpu.pipeline_mode<synchronous>, transform_indices = @transform_2, window_bounds = array<i64: 16, 1>}, {transform_indices = @transform_3, window_bounds = array<i64: 16, 256>}]} {
    %c0 = arith.constant 0 : index
    %c0_0 = arith.constant 0 : index
    %0 = vector.load %arg2[%c0, %c0_0] : memref<16x256xf32, #tpu.memory_space<vmem>>, vector<16x256xf32>
    %c0_1 = arith.constant 0 : index
    %c0_2 = arith.constant 0 : index
    %1 = vector.load %arg3[%c0_1, %c0_2] : memref<16x1xf32, #tpu.memory_space<vmem>>, vector<16x1xf32>
    %c0_3 = arith.constant 0 : index
    %c0_4 = arith.constant 0 : index
    %c0_5 = arith.constant 0 : index
    %2 = vector.load %arg1[%c0_3, %c0_4, %c0_5] : memref<4x256x256xf32, #tpu.memory_space<vmem>>, vector<1x256x256xf32>
    %3 = vector.shape_cast %2 : vector<1x256x256xf32> to vector<256x256xf32>
    %cst = arith.constant dense<0.000000e+00> : vector<16x256xf32>
    %4 = tpu.matmul %0, %3, %cst {dimension_numbers = #tpu.dot_dimension_numbers<[1], [0], [0], [1], [0, 0, 1, 1], [], []>} : vector<16x256xf32>, vector<256x256xf32>, vector<16x256xf32> -> vector<16x256xf32>
    %5 = vector.broadcast %1 : vector<16x1xf32> to vector<16x256xf32>
    %6 = arith.addf %4, %5 : vector<16x256xf32>
    %cst_6 = arith.constant 0.000000e+00 : f32
    %7 = vector.broadcast %cst_6 : f32 to vector<16x256xf32>
    %8 = arith.maximumf %6, %7 : vector<16x256xf32>
    %c1 = arith.constant 1 : index
    %c0_7 = arith.constant 0 : index
    %c0_8 = arith.constant 0 : index
    %9 = vector.load %arg1[%c1, %c0_7, %c0_8] : memref<4x256x256xf32, #tpu.memory_space<vmem>>, vector<1x256x256xf32>
    %10 = vector.shape_cast %9 : vector<1x256x256xf32> to vector<256x256xf32>
    %cst_9 = arith.constant dense<0.000000e+00> : vector<16x256xf32>
    %11 = tpu.matmul %0, %10, %cst_9 {dimension_numbers = #tpu.dot_dimension_numbers<[1], [0], [0], [1], [0, 0, 1, 1], [], []>} : vector<16x256xf32>, vector<256x256xf32>, vector<16x256xf32> -> vector<16x256xf32>
    %12 = vector.broadcast %1 : vector<16x1xf32> to vector<16x256xf32>
    %13 = arith.addf %11, %12 : vector<16x256xf32>
    %cst_10 = arith.constant 0.000000e+00 : f32
    %14 = vector.broadcast %cst_10 : f32 to vector<16x256xf32>
    %15 = arith.maximumf %13, %14 : vector<16x256xf32>
    %16 = arith.maximumf %8, %15 : vector<16x256xf32>
    %c2 = arith.constant 2 : index
    %c0_11 = arith.constant 0 : index
    %c0_12 = arith.constant 0 : index
    %17 = vector.load %arg1[%c2, %c0_11, %c0_12] : memref<4x256x256xf32, #tpu.memory_space<vmem>>, vector<1x256x256xf32>
    %18 = vector.shape_cast %17 : vector<1x256x256xf32> to vector<256x256xf32>
    %cst_13 = arith.constant dense<0.000000e+00> : vector<16x256xf32>
    %19 = tpu.matmul %0, %18, %cst_13 {dimension_numbers = #tpu.dot_dimension_numbers<[1], [0], [0], [1], [0, 0, 1, 1], [], []>} : vector<16x256xf32>, vector<256x256xf32>, vector<16x256xf32> -> vector<16x256xf32>
    %20 = vector.broadcast %1 : vector<16x1xf32> to vector<16x256xf32>
    %21 = arith.addf %19, %20 : vector<16x256xf32>
    %cst_14 = arith.constant 0.000000e+00 : f32
    %22 = vector.broadcast %cst_14 : f32 to vector<16x256xf32>
    %23 = arith.maximumf %21, %22 : vector<16x256xf32>
    %c3 = arith.constant 3 : index
    %c0_15 = arith.constant 0 : index
    %c0_16 = arith.constant 0 : index
    %24 = vector.load %arg1[%c3, %c0_15, %c0_16] : memref<4x256x256xf32, #tpu.memory_space<vmem>>, vector<1x256x256xf32>
    %25 = vector.shape_cast %24 : vector<1x256x256xf32> to vector<256x256xf32>
    %cst_17 = arith.constant dense<0.000000e+00> : vector<16x256xf32>
    %26 = tpu.matmul %0, %25, %cst_17 {dimension_numbers = #tpu.dot_dimension_numbers<[1], [0], [0], [1], [0, 0, 1, 1], [], []>} : vector<16x256xf32>, vector<256x256xf32>, vector<16x256xf32> -> vector<16x256xf32>
    %27 = vector.broadcast %1 : vector<16x1xf32> to vector<16x256xf32>
    %28 = arith.addf %26, %27 : vector<16x256xf32>
    %cst_18 = arith.constant 0.000000e+00 : f32
    %29 = vector.broadcast %cst_18 : f32 to vector<16x256xf32>
    %30 = arith.maximumf %28, %29 : vector<16x256xf32>
    %31 = arith.maximumf %23, %30 : vector<16x256xf32>
    %32 = arith.maximumf %16, %31 : vector<16x256xf32>
    %c0_19 = arith.constant 0 : index
    %c0_20 = arith.constant 0 : index
    %33 = vector.load %arg4[%c0_19, %c0_20] : memref<16x256xf32, #tpu.memory_space<vmem>>, vector<16x256xf32>
    tpu.vector_store %arg4[%c0_19, %c0_20], %32 {strides = array<i32>} : memref<16x256xf32, #tpu.memory_space<vmem>>, vector<16x256xf32>,
    return
  }
  func.func @transform_0(%arg0: i32) -> (i32, i32, i32) {
    %c0_i32 = arith.constant 0 : i32
    %c0_i32_0 = arith.constant 0 : i32
    %c0_i32_1 = arith.constant 0 : i32
    return %c0_i32, %c0_i32_0, %arg0 : i32, i32, i32
  }
  func.func @transform_1(%arg0: i32) -> (i32, i32) {
    %c0_i32 = arith.constant 0 : i32
    %c0_i32_0 = arith.constant 0 : i32
    %c0_i32_1 = arith.constant 0 : i32
    return %c0_i32, %c0_i32_0 : i32, i32
  }
  func.func @transform_2(%arg0: i32) -> (i32, i32) {
    %c0_i32 = arith.constant 0 : i32
    %c0_i32_0 = arith.constant 0 : i32
    %c0_i32_1 = arith.constant 0 : i32
    return %c0_i32, %c0_i32_0 : i32, i32
  }
  func.func @transform_3(%arg0: i32) -> (i32, i32) {
    %c0_i32 = arith.constant 0 : i32
    %c0_i32_0 = arith.constant 0 : i32
    return %c0_i32, %arg0 : i32, i32
  }
}

module attributes {stable_mosaic.version = 11 : i64} {
  func.func @_mlp_kernel(%arg0: i32, %arg1: memref<400x128xf32, #tpu.memory_space<vmem>>, %arg2: memref<120x400xf32, #tpu.memory_space<vmem>>, %arg3: memref<120x1xf32, #tpu.memory_space<vmem>>, %arg4: memref<84x120xf32, #tpu.memory_space<vmem>>, %arg5: memref<84x1xf32, #tpu.memory_space<vmem>>, %arg6: memref<10x84xf32, #tpu.memory_space<vmem>>, %arg7: memref<10x1xf32, #tpu.memory_space<vmem>>, %arg8: memref<10x128xf32, #tpu.memory_space<vmem>>) attributes {dimension_semantics = [#tpu.dimension_semantics<parallel>], iteration_bounds = array<i64: 1>, scalar_prefetch = 0 : i64, scratch_operands = 0 : i64, tpu.core_type = #tpu.core_type<tc>, window_params = [{transform_indices = @transform_0, window_bounds = array<i64: 400, 128>}, {pipeline_mode = #tpu.pipeline_mode<synchronous>, transform_indices = @transform_1, window_bounds = array<i64: 120, 400>}, {pipeline_mode = #tpu.pipeline_mode<synchronous>, transform_indices = @transform_2, window_bounds = array<i64: 120, 1>}, {pipeline_mode = #tpu.pipeline_mode<synchronous>, transform_indices = @transform_3, window_bounds = array<i64: 84, 120>}, {pipeline_mode = #tpu.pipeline_mode<synchronous>, transform_indices = @transform_4, window_bounds = array<i64: 84, 1>}, {pipeline_mode = #tpu.pipeline_mode<synchronous>, transform_indices = @transform_5, window_bounds = array<i64: 10, 84>}, {pipeline_mode = #tpu.pipeline_mode<synchronous>, transform_indices = @transform_6, window_bounds = array<i64: 10, 1>}, {transform_indices = @transform_7, window_bounds = array<i64: 10, 128>}]} {
    %c0 = arith.constant 0 : index
    %c0_0 = arith.constant 0 : index
    %0 = vector.load %arg1[%c0, %c0_0] : memref<400x128xf32, #tpu.memory_space<vmem>>, vector<400x128xf32>
    %c0_1 = arith.constant 0 : index
    %c0_2 = arith.constant 0 : index
    %1 = vector.load %arg2[%c0_1, %c0_2] : memref<120x400xf32, #tpu.memory_space<vmem>>, vector<120x400xf32>
    %cst = arith.constant dense<0.000000e+00> : vector<120x128xf32>
    %2 = tpu.matmul %1, %0, %cst {dimension_numbers = #tpu.dot_dimension_numbers<[1], [0], [0], [1], [0, 0, 1, 1], [], []>} : vector<120x400xf32>, vector<400x128xf32>, vector<120x128xf32> -> vector<120x128xf32>
    %c0_3 = arith.constant 0 : index
    %c0_4 = arith.constant 0 : index
    %3 = vector.load %arg3[%c0_3, %c0_4] : memref<120x1xf32, #tpu.memory_space<vmem>>, vector<120x1xf32>
    %4 = vector.broadcast %3 : vector<120x1xf32> to vector<120x128xf32>
    %5 = arith.addf %2, %4 : vector<120x128xf32>
    %cst_5 = arith.constant 0.000000e+00 : f32
    %6 = vector.broadcast %cst_5 : f32 to vector<120x128xf32>
    %7 = arith.maximumf %5, %6 : vector<120x128xf32>
    %c0_6 = arith.constant 0 : index
    %c0_7 = arith.constant 0 : index
    %8 = vector.load %arg4[%c0_6, %c0_7] : memref<84x120xf32, #tpu.memory_space<vmem>>, vector<84x120xf32>
    %cst_8 = arith.constant dense<0.000000e+00> : vector<84x128xf32>
    %9 = tpu.matmul %8, %7, %cst_8 {dimension_numbers = #tpu.dot_dimension_numbers<[1], [0], [0], [1], [0, 0, 1, 1], [], []>} : vector<84x120xf32>, vector<120x128xf32>, vector<84x128xf32> -> vector<84x128xf32>
    %c0_9 = arith.constant 0 : index
    %c0_10 = arith.constant 0 : index
    %10 = vector.load %arg5[%c0_9, %c0_10] : memref<84x1xf32, #tpu.memory_space<vmem>>, vector<84x1xf32>
    %11 = vector.broadcast %10 : vector<84x1xf32> to vector<84x128xf32>
    %12 = arith.addf %9, %11 : vector<84x128xf32>
    %cst_11 = arith.constant 0.000000e+00 : f32
    %13 = vector.broadcast %cst_11 : f32 to vector<84x128xf32>
    %14 = arith.maximumf %12, %13 : vector<84x128xf32>
    %c0_12 = arith.constant 0 : index
    %c0_13 = arith.constant 0 : index
    %15 = vector.load %arg6[%c0_12, %c0_13] : memref<10x84xf32, #tpu.memory_space<vmem>>, vector<10x84xf32>
    %cst_14 = arith.constant dense<0.000000e+00> : vector<10x128xf32>
    %16 = tpu.matmul %15, %14, %cst_14 {dimension_numbers = #tpu.dot_dimension_numbers<[1], [0], [0], [1], [0, 0, 1, 1], [], []>} : vector<10x84xf32>, vector<84x128xf32>, vector<10x128xf32> -> vector<10x128xf32>
    %c0_15 = arith.constant 0 : index
    %c0_16 = arith.constant 0 : index
    %17 = vector.load %arg7[%c0_15, %c0_16] : memref<10x1xf32, #tpu.memory_space<vmem>>, vector<10x1xf32>
    %18 = vector.broadcast %17 : vector<10x1xf32> to vector<10x128xf32>
    %19 = arith.addf %16, %18 : vector<10x128xf32>
    %c0_17 = arith.constant 0 : index
    %c0_18 = arith.constant 0 : index
    %20 = vector.load %arg8[%c0_17, %c0_18] : memref<10x128xf32, #tpu.memory_space<vmem>>, vector<10x128xf32>
    tpu.vector_store %arg8[%c0_17, %c0_18], %19 {strides = array<i32>} : memref<10x128xf32, #tpu.memory_space<vmem>>, vector<10x128xf32>,
    return
  }
  func.func @transform_0(%arg0: i32) -> (i32, i32) {
    %c0_i32 = arith.constant 0 : i32
    %c0_i32_0 = arith.constant 0 : i32
    return %c0_i32, %arg0 : i32, i32
  }
  func.func @transform_1(%arg0: i32) -> (i32, i32) {
    %c0_i32 = arith.constant 0 : i32
    %c0_i32_0 = arith.constant 0 : i32
    %c0_i32_1 = arith.constant 0 : i32
    return %c0_i32, %c0_i32_0 : i32, i32
  }
  func.func @transform_2(%arg0: i32) -> (i32, i32) {
    %c0_i32 = arith.constant 0 : i32
    %c0_i32_0 = arith.constant 0 : i32
    %c0_i32_1 = arith.constant 0 : i32
    return %c0_i32, %c0_i32_0 : i32, i32
  }
  func.func @transform_3(%arg0: i32) -> (i32, i32) {
    %c0_i32 = arith.constant 0 : i32
    %c0_i32_0 = arith.constant 0 : i32
    %c0_i32_1 = arith.constant 0 : i32
    return %c0_i32, %c0_i32_0 : i32, i32
  }
  func.func @transform_4(%arg0: i32) -> (i32, i32) {
    %c0_i32 = arith.constant 0 : i32
    %c0_i32_0 = arith.constant 0 : i32
    %c0_i32_1 = arith.constant 0 : i32
    return %c0_i32, %c0_i32_0 : i32, i32
  }
  func.func @transform_5(%arg0: i32) -> (i32, i32) {
    %c0_i32 = arith.constant 0 : i32
    %c0_i32_0 = arith.constant 0 : i32
    %c0_i32_1 = arith.constant 0 : i32
    return %c0_i32, %c0_i32_0 : i32, i32
  }
  func.func @transform_6(%arg0: i32) -> (i32, i32) {
    %c0_i32 = arith.constant 0 : i32
    %c0_i32_0 = arith.constant 0 : i32
    %c0_i32_1 = arith.constant 0 : i32
    return %c0_i32, %c0_i32_0 : i32, i32
  }
  func.func @transform_7(%arg0: i32) -> (i32, i32) {
    %c0_i32 = arith.constant 0 : i32
    %c0_i32_0 = arith.constant 0 : i32
    return %c0_i32, %arg0 : i32, i32
  }
}

</mosaic_0001>

<bundles_post_ra>
// kernel: convnet_forward.3
= control target key start
LH: loop header
LB: loop body
LE: loop exit
PB: predicated region body
PF: predicated region fallthrough
CT: control target
= control target key end

     0   :  { %s1258_s12 = smov 0   ;;  %s1260_s13 = smov 0   ;;  %s1716_s0 = inlined_call_operand.vmem [shape: f32[4,128,512], index: 0, kind: input, shape index: {}]   ;;  %s1717_s1 = inlined_call_operand.vmem [shape: f32[8,128], index: 1, kind: input, shape index: {}]   ;;  %s1718_s2 = inlined_call_operand.vmem [shape: f32[8,1], index: 2, kind: input, shape index: {}]   ;;  %s1719_s3 = inlined_call_operand.vmem [shape: f32[8,512], index: 3, kind: output, shape index: {}]  }
   0x1   :  { %s1262_s14 = smov 0  }
   0x2 LB: > { %s947_s15 = sadd.s32 4294967295, %s1234_s14   ;;  %s1275_s16 = sadd.s32 1, %s1234_s14   ;;  %s1234_s14 = sphi %s1262_s14, %s1722_s14   ;;  %s1230_s13 = sphi %s1260_s13, %s1721_s13   ;;  %s1226_s12 = sphi %s1258_s12, %s1720_s12  }
   0x3   : > { %s17_s17 = ssub.s32 %s1234_s14, %s1275_s16  ;;  %s20_s18 = sadd.s32 1, %s1230_s13 }
   0x4   : > { %p18_p0 = scmp.eq.s32.totalorder %s17_s17, 0  ;;  %p27_p1 = scmp.ne.s32.totalorder %s1230_s13, %s1226_s12 }
   0x5   : > { %p28_p2 = scmp.eq.s32.totalorder %s1234_s14, 0  ;;  %p950_p4 = scmp.ge.s32.totalorder %s1234_s14, 2 }
   0x6   : > { %s1284_s19 = scalar_select %p18_p0, %s1230_s13, %s20_s18  }
   0x7   : > { %p29_p3 = por %p28_p2, %p27_p1  ;;  %127 = sbr.rel (%p950_p4) target bundleno = 82 (0x52), region = 24 }
   0xe   : > { %130 = sbr.rel (!%p29_p3) target bundleno = 82 (0x52), region = 28  ;;  %s132_s20 = sand.u32 (%p29_p3), 1, %s1230_s13  }
   0xf   : > { %s1056_s21 = sshll.u32 (%p29_p3), %s1234_s14, 4  ;;  %s951_s22 = sshll.u32 (%p29_p3), %s132_s20, 10 }
  0x10   : > { %s1292_s25 = scalar_lea.vmem (%p29_p3), %s1716_s0, %s1056_s21  ;;  %s1297_s26 = scalar_lea.vmem (%p29_p3), [#allocation2], %s951_s22 }
  0x11   : > { %v150_v0 = vld [vmem:[%s1292_s25] sm:$0xff] (%p29_p3)  ;;  %v152_v1 = vld [vmem:[%s1292_s25 + $0x8] sm:$0xff] (%p29_p3) }
  0x12   : > { %v154_v2 = vld [vmem:[%s1292_s25 + $0x20] sm:$0xff] (%p29_p3)  ;;  %151 = vst [vmem:[%s1297_s26] sm:$0xff] (%p29_p3), %v150_v0  ;;  %153 = vst [vmem:[%s1297_s26 + $0x8] sm:$0xff] (%p29_p3), %v152_v1  ;;  %v156_v3 = vld [vmem:[%s1292_s25 + $0x28] sm:$0xff] (%p29_p3) }
  0x13   : > { %155 = vst [vmem:[%s1297_s26 + $0x10] sm:$0xff] (%p29_p3), %v154_v2  ;;  %v158_v4 = vld [vmem:[%s1292_s25 + $0x40] sm:$0xff] (%p29_p3)  ;;  %v160_v5 = vld [vmem:[%s1292_s25 + $0x48] sm:$0xff] (%p29_p3)  ;;  %157 = vst [vmem:[%s1297_s26 + $0x18] sm:$0xff] (%p29_p3), %v156_v3 }
  0x14   : > { %159 = vst [vmem:[%s1297_s26 + $0x20] sm:$0xff] (%p29_p3), %v158_v4  ;;  %161 = vst [vmem:[%s1297_s26 + $0x28] sm:$0xff] (%p29_p3), %v160_v5  ;;  %v162_v6 = vld [vmem:[%s1292_s25 + $0x60] sm:$0xff] (%p29_p3)  ;;  %v164_v7 = vld [vmem:[%s1292_s25 + $0x68] sm:$0xff] (%p29_p3) }
  0x15   : > { %v166_v8 = vld [vmem:[%s1292_s25 + $0x80] sm:$0xff]  ;;  %163 = vst [vmem:[%s1297_s26 + $0x30] sm:$0xff] %v162_v6  ;;  %165 = vst [vmem:[%s1297_s26 + $0x38] sm:$0xff] %v164_v7  ;;  %v168_v9 = vld [vmem:[%s1292_s25 + $0x88] sm:$0xff] }
  0x16   : > { %167 = vst [vmem:[%s1297_s26 + $0x40] sm:$0xff] %v166_v8  ;;  %v170_v10 = vld [vmem:[%s1292_s25 + $0xa0] sm:$0xff]  ;;  %v172_v11 = vld [vmem:[%s1292_s25 + $0xa8] sm:$0xff]  ;;  %169 = vst [vmem:[%s1297_s26 + $0x48] sm:$0xff] %v168_v9 }
  0x17   : > { %171 = vst [vmem:[%s1297_s26 + $0x50] sm:$0xff] %v170_v10  ;;  %173 = vst [vmem:[%s1297_s26 + $0x58] sm:$0xff] %v172_v11  ;;  %v174_v12 = vld [vmem:[%s1292_s25 + $0xc0] sm:$0xff]  ;;  %v176_v13 = vld [vmem:[%s1292_s25 + $0xc8] sm:$0xff] }
  0x18   : > { %v178_v14 = vld [vmem:[%s1292_s25 + $0xe0] sm:$0xff]  ;;  %175 = vst [vmem:[%s1297_s26 + $0x60] sm:$0xff] %v174_v12  ;;  %177 = vst [vmem:[%s1297_s26 + $0x68] sm:$0xff] %v176_v13  ;;  %v180_v15 = vld [vmem:[%s1292_s25 + $0xe8] sm:$0xff] }
  0x19   : > { %179 = vst [vmem:[%s1297_s26 + $0x70] sm:$0xff] %v178_v14  ;;  %v182_v16 = vld [vmem:[%s1292_s25 + $0x100] sm:$0xff]  ;;  %v184_v17 = vld [vmem:[%s1292_s25 + $0x108] sm:$0xff]  ;;  %181 = vst [vmem:[%s1297_s26 + $0x78] sm:$0xff] %v180_v15 }
  0x1a   : > { %183 = vst [vmem:[%s1297_s26 + $0x80] sm:$0xff] %v182_v16  ;;  %185 = vst [vmem:[%s1297_s26 + $0x88] sm:$0xff] %v184_v17  ;;  %v186_v18 = vld [vmem:[%s1292_s25 + $0x120] sm:$0xff]  ;;  %v188_v19 = vld [vmem:[%s1292_s25 + $0x128] sm:$0xff] }
  0x1b   : > { %v190_v20 = vld [vmem:[%s1292_s25 + $0x140] sm:$0xff]  ;;  %187 = vst [vmem:[%s1297_s26 + $0x90] sm:$0xff] %v186_v18  ;;  %189 = vst [vmem:[%s1297_s26 + $0x98] sm:$0xff] %v188_v19  ;;  %v192_v21 = vld [vmem:[%s1292_s25 + $0x148] sm:$0xff] }
  0x1c   : > { %191 = vst [vmem:[%s1297_s26 + $0xa0] sm:$0xff] %v190_v20  ;;  %v194_v22 = vld [vmem:[%s1292_s25 + $0x160] sm:$0xff]  ;;  %v196_v23 = vld [vmem:[%s1292_s25 + $0x168] sm:$0xff]  ;;  %193 = vst [vmem:[%s1297_s26 + $0xa8] sm:$0xff] %v192_v21 }
  0x1d   : > { %195 = vst [vmem:[%s1297_s26 + $0xb0] sm:$0xff] %v194_v22  ;;  %197 = vst [vmem:[%s1297_s26 + $0xb8] sm:$0xff] %v196_v23  ;;  %v198_v24 = vld [vmem:[%s1292_s25 + $0x180] sm:$0xff]  ;;  %v200_v25 = vld [vmem:[%s1292_s25 + $0x188] sm:$0xff] }
  0x1e   : > { %v202_v26 = vld [vmem:[%s1292_s25 + $0x1a0] sm:$0xff]  ;;  %199 = vst [vmem:[%s1297_s26 + $0xc0] sm:$0xff] %v198_v24  ;;  %201 = vst [vmem:[%s1297_s26 + $0xc8] sm:$0xff] %v200_v25  ;;  %v204_v27 = vld [vmem:[%s1292_s25 + $0x1a8] sm:$0xff] }
  0x1f   : > { %203 = vst [vmem:[%s1297_s26 + $0xd0] sm:$0xff] %v202_v26  ;;  %v206_v28 = vld [vmem:[%s1292_s25 + $0x1c0] sm:$0xff]  ;;  %v208_v29 = vld [vmem:[%s1292_s25 + $0x1c8] sm:$0xff]  ;;  %205 = vst [vmem:[%s1297_s26 + $0xd8] sm:$0xff] %v204_v27 }
  0x20   : > { %207 = vst [vmem:[%s1297_s26 + $0xe0] sm:$0xff] %v206_v28  ;;  %209 = vst [vmem:[%s1297_s26 + $0xe8] sm:$0xff] %v208_v29  ;;  %v210_v30 = vld [vmem:[%s1292_s25 + $0x1e0] sm:$0xff]  ;;  %v212_v31 = vld [vmem:[%s1292_s25 + $0x1e8] sm:$0xff] }
  0x21   : > { %v214_v32 = vld [vmem:[%s1292_s25 + $0x200] sm:$0xff]  ;;  %211 = vst [vmem:[%s1297_s26 + $0xf0] sm:$0xff] %v210_v30  ;;  %213 = vst [vmem:[%s1297_s26 + $0xf8] sm:$0xff] %v212_v31  ;;  %v216_v33 = vld [vmem:[%s1292_s25 + $0x208] sm:$0xff] }
  0x22   : > { %215 = vst [vmem:[%s1297_s26 + $0x100] sm:$0xff] %v214_v32  ;;  %v218_v34 = vld [vmem:[%s1292_s25 + $0x220] sm:$0xff]  ;;  %v220_v35 = vld [vmem:[%s1292_s25 + $0x228] sm:$0xff]  ;;  %217 = vst [vmem:[%s1297_s26 + $0x108] sm:$0xff] %v216_v33 }
  0x23   : > { %219 = vst [vmem:[%s1297_s26 + $0x110] sm:$0xff] %v218_v34  ;;  %221 = vst [vmem:[%s1297_s26 + $0x118] sm:$0xff] %v220_v35  ;;  %v222_v36 = vld [vmem:[%s1292_s25 + $0x240] sm:$0xff]  ;;  %v224_v37 = vld [vmem:[%s1292_s25 + $0x248] sm:$0xff] }
  0x24   : > { %v226_v38 = vld [vmem:[%s1292_s25 + $0x260] sm:$0xff]  ;;  %223 = vst [vmem:[%s1297_s26 + $0x120] sm:$0xff] %v222_v36  ;;  %225 = vst [vmem:[%s1297_s26 + $0x128] sm:$0xff] %v224_v37  ;;  %v228_v39 = vld [vmem:[%s1292_s25 + $0x268] sm:$0xff] }
  0x25   : > { %227 = vst [vmem:[%s1297_s26 + $0x130] sm:$0xff] %v226_v38  ;;  %v230_v40 = vld [vmem:[%s1292_s25 + $0x280] sm:$0xff]  ;;  %v232_v41 = vld [vmem:[%s1292_s25 + $0x288] sm:$0xff]  ;;  %229 = vst [vmem:[%s1297_s26 + $0x138] sm:$0xff] %v228_v39 }
  0x26   : > { %231 = vst [vmem:[%s1297_s26 + $0x140] sm:$0xff] %v230_v40  ;;  %233 = vst [vmem:[%s1297_s26 + $0x148] sm:$0xff] %v232_v41  ;;  %v234_v42 = vld [vmem:[%s1292_s25 + $0x2a0] sm:$0xff]  ;;  %v236_v43 = vld [vmem:[%s1292_s25 + $0x2a8] sm:$0xff] }
  0x27   : > { %v238_v44 = vld [vmem:[%s1292_s25 + $0x2c0] sm:$0xff]  ;;  %235 = vst [vmem:[%s1297_s26 + $0x150] sm:$0xff] %v234_v42  ;;  %237 = vst [vmem:[%s1297_s26 + $0x158] sm:$0xff] %v236_v43  ;;  %v240_v45 = vld [vmem:[%s1292_s25 + $0x2c8] sm:$0xff] }
  0x28   : > { %239 = vst [vmem:[%s1297_s26 + $0x160] sm:$0xff] %v238_v44  ;;  %v242_v46 = vld [vmem:[%s1292_s25 + $0x2e0] sm:$0xff]  ;;  %v244_v47 = vld [vmem:[%s1292_s25 + $0x2e8] sm:$0xff]  ;;  %241 = vst [vmem:[%s1297_s26 + $0x168] sm:$0xff] %v240_v45 }
  0x29   : > { %243 = vst [vmem:[%s1297_s26 + $0x170] sm:$0xff] %v242_v46  ;;  %245 = vst [vmem:[%s1297_s26 + $0x178] sm:$0xff] %v244_v47  ;;  %v246_v48 = vld [vmem:[%s1292_s25 + $0x300] sm:$0xff]  ;;  %v248_v49 = vld [vmem:[%s1292_s25 + $0x308] sm:$0xff] }
  0x2a   : > { %v250_v50 = vld [vmem:[%s1292_s25 + $0x320] sm:$0xff]  ;;  %247 = vst [vmem:[%s1297_s26 + $0x180] sm:$0xff] %v246_v48  ;;  %249 = vst [vmem:[%s1297_s26 + $0x188] sm:$0xff] %v248_v49  ;;  %v252_v51 = vld [vmem:[%s1292_s25 + $0x328] sm:$0xff] }
  0x2b   : > { %251 = vst [vmem:[%s1297_s26 + $0x190] sm:$0xff] %v250_v50  ;;  %v254_v52 = vld [vmem:[%s1292_s25 + $0x340] sm:$0xff]  ;;  %v256_v53 = vld [vmem:[%s1292_s25 + $0x348] sm:$0xff]  ;;  %253 = vst [vmem:[%s1297_s26 + $0x198] sm:$0xff] %v252_v51 }
  0x2c   : > { %255 = vst [vmem:[%s1297_s26 + $0x1a0] sm:$0xff] %v254_v52  ;;  %257 = vst [vmem:[%s1297_s26 + $0x1a8] sm:$0xff] %v256_v53  ;;  %v258_v54 = vld [vmem:[%s1292_s25 + $0x360] sm:$0xff]  ;;  %v260_v55 = vld [vmem:[%s1292_s25 + $0x368] sm:$0xff] }
  0x2d   : > { %v262_v56 = vld [vmem:[%s1292_s25 + $0x380] sm:$0xff]  ;;  %259 = vst [vmem:[%s1297_s26 + $0x1b0] sm:$0xff] %v258_v54  ;;  %261 = vst [vmem:[%s1297_s26 + $0x1b8] sm:$0xff] %v260_v55  ;;  %v264_v57 = vld [vmem:[%s1292_s25 + $0x388] sm:$0xff] }
  0x2e   : > { %263 = vst [vmem:[%s1297_s26 + $0x1c0] sm:$0xff] %v262_v56  ;;  %v266_v58 = vld [vmem:[%s1292_s25 + $0x3a0] sm:$0xff]  ;;  %v268_v59 = vld [vmem:[%s1292_s25 + $0x3a8] sm:$0xff]  ;;  %265 = vst [vmem:[%s1297_s26 + $0x1c8] sm:$0xff] %v264_v57 }
  0x2f   : > { %267 = vst [vmem:[%s1297_s26 + $0x1d0] sm:$0xff] %v266_v58  ;;  %269 = vst [vmem:[%s1297_s26 + $0x1d8] sm:$0xff] %v268_v59  ;;  %v270_v60 = vld [vmem:[%s1292_s25 + $0x3c0] sm:$0xff]  ;;  %v272_v61 = vld [vmem:[%s1292_s25 + $0x3c8] sm:$0xff] }
  0x30   : > { %v274_v62 = vld [vmem:[%s1292_s25 + $0x3e0] sm:$0xff]  ;;  %271 = vst [vmem:[%s1297_s26 + $0x1e0] sm:$0xff] %v270_v60  ;;  %273 = vst [vmem:[%s1297_s26 + $0x1e8] sm:$0xff] %v272_v61  ;;  %v276_v63 = vld [vmem:[%s1292_s25 + $0x3e8] sm:$0xff] }
  0x31   : > { %275 = vst [vmem:[%s1297_s26 + $0x1f0] sm:$0xff] %v274_v62  ;;  %v278_v0 = vld [vmem:[%s1292_s25 + $0x400] sm:$0xff]  ;;  %v280_v1 = vld [vmem:[%s1292_s25 + $0x408] sm:$0xff]  ;;  %277 = vst [vmem:[%s1297_s26 + $0x1f8] sm:$0xff] %v276_v63 }
  0x32   : > { %279 = vst [vmem:[%s1297_s26 + $0x200] sm:$0xff] %v278_v0  ;;  %281 = vst [vmem:[%s1297_s26 + $0x208] sm:$0xff] %v280_v1  ;;  %v282_v2 = vld [vmem:[%s1292_s25 + $0x420] sm:$0xff]  ;;  %v284_v3 = vld [vmem:[%s1292_s25 + $0x428] sm:$0xff] }
  0x33   : > { %v286_v4 = vld [vmem:[%s1292_s25 + $0x440] sm:$0xff]  ;;  %283 = vst [vmem:[%s1297_s26 + $0x210] sm:$0xff] %v282_v2  ;;  %285 = vst [vmem:[%s1297_s26 + $0x218] sm:$0xff] %v284_v3  ;;  %v288_v5 = vld [vmem:[%s1292_s25 + $0x448] sm:$0xff] }
  0x34   : > { %287 = vst [vmem:[%s1297_s26 + $0x220] sm:$0xff] %v286_v4  ;;  %v290_v6 = vld [vmem:[%s1292_s25 + $0x460] sm:$0xff]  ;;  %v292_v7 = vld [vmem:[%s1292_s25 + $0x468] sm:$0xff]  ;;  %289 = vst [vmem:[%s1297_s26 + $0x228] sm:$0xff] %v288_v5 }
  0x35   : > { %291 = vst [vmem:[%s1297_s26 + $0x230] sm:$0xff] %v290_v6  ;;  %293 = vst [vmem:[%s1297_s26 + $0x238] sm:$0xff] %v292_v7  ;;  %v294_v8 = vld [vmem:[%s1292_s25 + $0x480] sm:$0xff]  ;;  %v296_v9 = vld [vmem:[%s1292_s25 + $0x488] sm:$0xff] }
  0x36   : > { %v298_v10 = vld [vmem:[%s1292_s25 + $0x4a0] sm:$0xff]  ;;  %295 = vst [vmem:[%s1297_s26 + $0x240] sm:$0xff] %v294_v8  ;;  %297 = vst [vmem:[%s1297_s26 + $0x248] sm:$0xff] %v296_v9  ;;  %v300_v11 = vld [vmem:[%s1292_s25 + $0x4a8] sm:$0xff] }
  0x37   : > { %299 = vst [vmem:[%s1297_s26 + $0x250] sm:$0xff] %v298_v10  ;;  %v302_v12 = vld [vmem:[%s1292_s25 + $0x4c0] sm:$0xff]  ;;  %v304_v13 = vld [vmem:[%s1292_s25 + $0x4c8] sm:$0xff]  ;;  %301 = vst [vmem:[%s1297_s26 + $0x258] sm:$0xff] %v300_v11 }
  0x38   : > { %303 = vst [vmem:[%s1297_s26 + $0x260] sm:$0xff] %v302_v12  ;;  %305 = vst [vmem:[%s1297_s26 + $0x268] sm:$0xff] %v304_v13  ;;  %v306_v14 = vld [vmem:[%s1292_s25 + $0x4e0] sm:$0xff]  ;;  %v308_v15 = vld [vmem:[%s1292_s25 + $0x4e8] sm:$0xff] }
  0x39   : > { %v310_v16 = vld [vmem:[%s1292_s25 + $0x500] sm:$0xff]  ;;  %307 = vst [vmem:[%s1297_s26 + $0x270] sm:$0xff] %v306_v14  ;;  %309 = vst [vmem:[%s1297_s26 + $0x278] sm:$0xff] %v308_v15  ;;  %v312_v17 = vld [vmem:[%s1292_s25 + $0x508] sm:$0xff] }
  0x3a   : > { %311 = vst [vmem:[%s1297_s26 + $0x280] sm:$0xff] %v310_v16  ;;  %v314_v18 = vld [vmem:[%s1292_s25 + $0x520] sm:$0xff]  ;;  %v316_v19 = vld [vmem:[%s1292_s25 + $0x528] sm:$0xff]  ;;  %313 = vst [vmem:[%s1297_s26 + $0x288] sm:$0xff] %v312_v17 }
  0x3b   : > { %315 = vst [vmem:[%s1297_s26 + $0x290] sm:$0xff] %v314_v18  ;;  %317 = vst [vmem:[%s1297_s26 + $0x298] sm:$0xff] %v316_v19  ;;  %v318_v20 = vld [vmem:[%s1292_s25 + $0x540] sm:$0xff]  ;;  %v320_v21 = vld [vmem:[%s1292_s25 + $0x548] sm:$0xff] }
  0x3c   : > { %v322_v22 = vld [vmem:[%s1292_s25 + $0x560] sm:$0xff]  ;;  %319 = vst [vmem:[%s1297_s26 + $0x2a0] sm:$0xff] %v318_v20  ;;  %321 = vst [vmem:[%s1297_s26 + $0x2a8] sm:$0xff] %v320_v21  ;;  %v324_v23 = vld [vmem:[%s1292_s25 + $0x568] sm:$0xff] }
  0x3d   : > { %323 = vst [vmem:[%s1297_s26 + $0x2b0] sm:$0xff] %v322_v22  ;;  %v326_v24 = vld [vmem:[%s1292_s25 + $0x580] sm:$0xff]  ;;  %v328_v25 = vld [vmem:[%s1292_s25 + $0x588] sm:$0xff]  ;;  %325 = vst [vmem:[%s1297_s26 + $0x2b8] sm:$0xff] %v324_v23 }
  0x3e   : > { %327 = vst [vmem:[%s1297_s26 + $0x2c0] sm:$0xff] %v326_v24  ;;  %329 = vst [vmem:[%s1297_s26 + $0x2c8] sm:$0xff] %v328_v25  ;;  %v330_v26 = vld [vmem:[%s1292_s25 + $0x5a0] sm:$0xff]  ;;  %v332_v27 = vld [vmem:[%s1292_s25 + $0x5a8] sm:$0xff] }
  0x3f   : > { %v334_v28 = vld [vmem:[%s1292_s25 + $0x5c0] sm:$0xff]  ;;  %331 = vst [vmem:[%s1297_s26 + $0x2d0] sm:$0xff] %v330_v26  ;;  %333 = vst [vmem:[%s1297_s26 + $0x2d8] sm:$0xff] %v332_v27  ;;  %v336_v29 = vld [vmem:[%s1292_s25 + $0x5c8] sm:$0xff] }
  0x40   : > { %335 = vst [vmem:[%s1297_s26 + $0x2e0] sm:$0xff] %v334_v28  ;;  %v338_v30 = vld [vmem:[%s1292_s25 + $0x5e0] sm:$0xff]  ;;  %v340_v31 = vld [vmem:[%s1292_s25 + $0x5e8] sm:$0xff]  ;;  %337 = vst [vmem:[%s1297_s26 + $0x2e8] sm:$0xff] %v336_v29 }
  0x41   : > { %339 = vst [vmem:[%s1297_s26 + $0x2f0] sm:$0xff] %v338_v30  ;;  %341 = vst [vmem:[%s1297_s26 + $0x2f8] sm:$0xff] %v340_v31  ;;  %v342_v32 = vld [vmem:[%s1292_s25 + $0x600] sm:$0xff]  ;;  %v344_v33 = vld [vmem:[%s1292_s25 + $0x608] sm:$0xff] }
  0x42   : > { %v346_v34 = vld [vmem:[%s1292_s25 + $0x620] sm:$0xff]  ;;  %343 = vst [vmem:[%s1297_s26 + $0x300] sm:$0xff] %v342_v32  ;;  %345 = vst [vmem:[%s1297_s26 + $0x308] sm:$0xff] %v344_v33  ;;  %v348_v35 = vld [vmem:[%s1292_s25 + $0x628] sm:$0xff] }
  0x43   : > { %347 = vst [vmem:[%s1297_s26 + $0x310] sm:$0xff] %v346_v34  ;;  %v350_v36 = vld [vmem:[%s1292_s25 + $0x640] sm:$0xff]  ;;  %v352_v37 = vld [vmem:[%s1292_s25 + $0x648] sm:$0xff]  ;;  %349 = vst [vmem:[%s1297_s26 + $0x318] sm:$0xff] %v348_v35 }
  0x44   : > { %351 = vst [vmem:[%s1297_s26 + $0x320] sm:$0xff] %v350_v36  ;;  %353 = vst [vmem:[%s1297_s26 + $0x328] sm:$0xff] %v352_v37  ;;  %v354_v38 = vld [vmem:[%s1292_s25 + $0x660] sm:$0xff]  ;;  %v356_v39 = vld [vmem:[%s1292_s25 + $0x668] sm:$0xff] }
  0x45   : > { %v358_v40 = vld [vmem:[%s1292_s25 + $0x680] sm:$0xff]  ;;  %355 = vst [vmem:[%s1297_s26 + $0x330] sm:$0xff] %v354_v38  ;;  %357 = vst [vmem:[%s1297_s26 + $0x338] sm:$0xff] %v356_v39  ;;  %v360_v41 = vld [vmem:[%s1292_s25 + $0x688] sm:$0xff] }
  0x46   : > { %359 = vst [vmem:[%s1297_s26 + $0x340] sm:$0xff] %v358_v40  ;;  %v362_v42 = vld [vmem:[%s1292_s25 + $0x6a0] sm:$0xff]  ;;  %v364_v43 = vld [vmem:[%s1292_s25 + $0x6a8] sm:$0xff]  ;;  %361 = vst [vmem:[%s1297_s26 + $0x348] sm:$0xff] %v360_v41 }
  0x47   : > { %363 = vst [vmem:[%s1297_s26 + $0x350] sm:$0xff] %v362_v42  ;;  %365 = vst [vmem:[%s1297_s26 + $0x358] sm:$0xff] %v364_v43  ;;  %v366_v44 = vld [vmem:[%s1292_s25 + $0x6c0] sm:$0xff]  ;;  %v368_v45 = vld [vmem:[%s1292_s25 + $0x6c8] sm:$0xff] }
  0x48   : > { %v370_v46 = vld [vmem:[%s1292_s25 + $0x6e0] sm:$0xff]  ;;  %367 = vst [vmem:[%s1297_s26 + $0x360] sm:$0xff] %v366_v44  ;;  %369 = vst [vmem:[%s1297_s26 + $0x368] sm:$0xff] %v368_v45  ;;  %v372_v47 = vld [vmem:[%s1292_s25 + $0x6e8] sm:$0xff] }
  0x49   : > { %371 = vst [vmem:[%s1297_s26 + $0x370] sm:$0xff] %v370_v46  ;;  %v374_v48 = vld [vmem:[%s1292_s25 + $0x700] sm:$0xff]  ;;  %v376_v49 = vld [vmem:[%s1292_s25 + $0x708] sm:$0xff]  ;;  %373 = vst [vmem:[%s1297_s26 + $0x378] sm:$0xff] %v372_v47 }
  0x4a   : > { %375 = vst [vmem:[%s1297_s26 + $0x380] sm:$0xff] %v374_v48  ;;  %377 = vst [vmem:[%s1297_s26 + $0x388] sm:$0xff] %v376_v49  ;;  %v378_v50 = vld [vmem:[%s1292_s25 + $0x720] sm:$0xff]  ;;  %v380_v51 = vld [vmem:[%s1292_s25 + $0x728] sm:$0xff] }
  0x4b   : > { %v382_v52 = vld [vmem:[%s1292_s25 + $0x740] sm:$0xff]  ;;  %379 = vst [vmem:[%s1297_s26 + $0x390] sm:$0xff] %v378_v50  ;;  %381 = vst [vmem:[%s1297_s26 + $0x398] sm:$0xff] %v380_v51  ;;  %v384_v53 = vld [vmem:[%s1292_s25 + $0x748] sm:$0xff] }
  0x4c   : > { %383 = vst [vmem:[%s1297_s26 + $0x3a0] sm:$0xff] %v382_v52  ;;  %v386_v54 = vld [vmem:[%s1292_s25 + $0x760] sm:$0xff]  ;;  %v388_v55 = vld [vmem:[%s1292_s25 + $0x768] sm:$0xff]  ;;  %385 = vst [vmem:[%s1297_s26 + $0x3a8] sm:$0xff] %v384_v53 }
  0x4d   : > { %387 = vst [vmem:[%s1297_s26 + $0x3b0] sm:$0xff] %v386_v54  ;;  %389 = vst [vmem:[%s1297_s26 + $0x3b8] sm:$0xff] %v388_v55  ;;  %v390_v56 = vld [vmem:[%s1292_s25 + $0x780] sm:$0xff]  ;;  %v392_v57 = vld [vmem:[%s1292_s25 + $0x788] sm:$0xff] }
  0x4e   : > { %v394_v58 = vld [vmem:[%s1292_s25 + $0x7a0] sm:$0xff]  ;;  %391 = vst [vmem:[%s1297_s26 + $0x3c0] sm:$0xff] %v390_v56  ;;  %393 = vst [vmem:[%s1297_s26 + $0x3c8] sm:$0xff] %v392_v57  ;;  %v396_v59 = vld [vmem:[%s1292_s25 + $0x7a8] sm:$0xff] }
  0x4f   : > { %395 = vst [vmem:[%s1297_s26 + $0x3d0] sm:$0xff] %v394_v58  ;;  %v398_v60 = vld [vmem:[%s1292_s25 + $0x7c0] sm:$0xff]  ;;  %v400_v61 = vld [vmem:[%s1292_s25 + $0x7c8] sm:$0xff]  ;;  %397 = vst [vmem:[%s1297_s26 + $0x3d8] sm:$0xff] %v396_v59 }
  0x50   : > { %399 = vst [vmem:[%s1297_s26 + $0x3e0] sm:$0xff] %v398_v60  ;;  %401 = vst [vmem:[%s1297_s26 + $0x3e8] sm:$0xff] %v400_v61  ;;  %v402_v62 = vld [vmem:[%s1292_s25 + $0x7e0] sm:$0xff]  ;;  %v404_v63 = vld [vmem:[%s1292_s25 + $0x7e8] sm:$0xff] }
  0x51   : > { %403 = vst [vmem:[%s1297_s26 + $0x3f0] sm:$0xff] %v402_v62  ;;  %405 = vst [vmem:[%s1297_s26 + $0x3f8] sm:$0xff] %v404_v63 }
  0x52 PF: > { %p954_p5 = scmp.ge.s32.totalorder %s1234_s14, 1  ;;  %p410_p6 = scmp.lt.s32.totalorder %s1234_s14, 3 }
  0x54   : > { %p411_p7 = pnand %p954_p5, %p410_p6 }
  0x55   : > { %s417_s27 = sand.u32 (!%p411_p7), 1, %s1226_s12   ;;  %v448_v0 = vld [vmem:[%s1718_s2] sm:$0xff] (!%p411_p7)  ;;  %v1236_v1 = vmov (!%p411_p7), 0.0   ;;  %v1237_v2 = vmov (!%p411_p7), 0   ;;  %s956_s7 = sshll.u32 (!%p411_p7), %s947_s15, 1 }
  0x56   : > { %414 = sbr.rel (%p411_p7) target bundleno = 378 (0x17a), region = 51  ;;  %s955_s30 = sshll.u32 (!%p411_p7), %s417_s27, 10  ;;  %550 = vmatprep.mubr.f32.mxu0 (!%p411_p7), %v1236_v1  ;;  %656 = vmatprep.mubr.f32.mxu1 (!%p411_p7), %v1236_v1 }
  0x57   : > { %1211 = vset.pattern.permute.xlu0 (!%p411_p7), %v1237_v2  ;;  %s1560_s4 = scalar_lea.vmem (!%p411_p7), [#allocation2], %s955_s30  ;;  %p442_p8 = scmp.lt.s32.totalorder (!%p411_p7), %s956_s7, 3 }
  0x58   : > { %v450_v3 = vld [vmem:[%s1560_s4 + $0x8] sm:$0xff] (!%p411_p7)  ;;  %v452_v4 = vld [vmem:[%s1560_s4 + $0x18] sm:$0xff] (!%p411_p7)  ;;  %483 = vperm.xlu0 (!%p411_p7), %1211, %v448_v0   ;;  %v449_v8 = vld [vmem:[%s1560_s4] sm:$0xff] (!%p411_p7) }
  0x59   : > { %v959_v5 = vld [vmem:[%s1560_s4 + $0x108] sm:$0xff] (!%p411_p7)  ;;  %v1057_v6 = vpack.c.bf16 (!%p411_p7), %v452_v4, %v450_v3  ;;  %v961_v7 = vld [vmem:[%s1560_s4 + $0x118] sm:$0xff] (!%p411_p7)  ;;  %v451_v9 = vld [vmem:[%s1560_s4 + $0x10] sm:$0xff] (!%p411_p7) }
  0x5a   : > { %v1089_v10 = vpack.c.bf16 (!%p411_p7), %v961_v7, %v959_v5  ;;  %v1059_v11 = vpack.c.bf16 (!%p411_p7), %v451_v9, %v449_v8  ;;  %v958_v12 = vld [vmem:[%s1560_s4 + $0x100] sm:$0xff] (!%p411_p7)  ;;  %v960_v13 = vld [vmem:[%s1560_s4 + $0x110] sm:$0xff] (!%p411_p7)  ;;  %v454_v14 = vld [vmem:[%s1560_s4 + $0x28] sm:$0xff] (!%p411_p7) }
  0x5b   : > { %1058 = vmatprep.subr.bf16.mxu0 (!%p411_p7), %v1057_v6  ;;  %v1091_v15 = vpack.c.bf16 (!%p411_p7), %v960_v13, %v958_v12  ;;  %v456_v16 = vld [vmem:[%s1560_s4 + $0x38] sm:$0xff] (!%p411_p7)  ;;  %v963_v17 = vld [vmem:[%s1560_s4 + $0x128] sm:$0xff] (!%p411_p7)  ;;  %v453_v21 = vld [vmem:[%s1560_s4 + $0x20] sm:$0xff] (!%p411_p7) }
  0x5c   : > { %v965_v18 = vld [vmem:[%s1560_s4 + $0x138] sm:$0xff] (!%p411_p7)  ;;  %1090 = vmatprep.subr.bf16.mxu1 (!%p411_p7), %v1089_v10  ;;  %1060 = vmatpush1.bf16.msra.mxu0 (!%p411_p7), %v1059_v11  ;;  %v1061_v19 = vpack.c.bf16 (!%p411_p7), %v456_v16, %v454_v14  ;;  %v455_v22 = vld [vmem:[%s1560_s4 + $0x30] sm:$0xff] (!%p411_p7)  ;;  %v962_v23 = vld [vmem:[%s1560_s4 + $0x120] sm:$0xff] (!%p411_p7) }
  0x5d   : > { %v1093_v20 = vpack.c.bf16 %v965_v18, %v963_v17  ;;  %1092 = vmatpush1.bf16.msra.mxu1 %v1091_v15  ;;  %v1063_v24 = vpack.c.bf16 %v455_v22, %v453_v21  ;;  %v964_v25 = vld [vmem:[%s1560_s4 + $0x130] sm:$0xff]  ;;  %v458_v26 = vld [vmem:[%s1560_s4 + $0x48] sm:$0xff]  ;;  %v460_v27 = vld [vmem:[%s1560_s4 + $0x58] sm:$0xff]  ;;  %s1724_s7 = smov (!%p442_p8, %s956_s7), 3 }
  0x5e   : > { %1062 = vmatprep.subr.bf16.mxu0 %v1061_v19  ;;  %v1095_v28 = vpack.c.bf16 %v964_v25, %v962_v23  ;;  %v1065_v29 = vpack.c.bf16 %v460_v27, %v458_v26  ;;  %v967_v30 = vld [vmem:[%s1560_s4 + $0x148] sm:$0xff]  ;;  %v969_v31 = vld [vmem:[%s1560_s4 + $0x158] sm:$0xff]  ;;  %v457_v32 = vld [vmem:[%s1560_s4 + $0x40] sm:$0xff]  ;;  %s957_s8 = sshll.u32 %s1724_s7, 3 }
  0x5f   : > { %1094 = vmatprep.subr.bf16.mxu1 %v1093_v20  ;;  %v1097_v33 = vpack.c.bf16 %v969_v31, %v967_v30  ;;  %v459_v34 = vld [vmem:[%s1560_s4 + $0x50] sm:$0xff]  ;;  %v966_v35 = vld [vmem:[%s1560_s4 + $0x140] sm:$0xff]  ;;  %v462_v38 = vld [vmem:[%s1560_s4 + $0x68] sm:$0xff]  ;;  %s445_s11 = scalar_lea.vmem %s1719_s3, %s957_s8 }
  0x60   : > { %v968_v36 = vld [vmem:[%s1560_s4 + $0x150] sm:$0xff]  ;;  %1064 = vmatpush1.bf16.msra.mxu0 %v1063_v24  ;;  %v1067_v37 = vpack.c.bf16 %v459_v34, %v457_v32  ;;  %v464_v39 = vld [vmem:[%s1560_s4 + $0x78] sm:$0xff]  ;;  %v971_v40 = vld [vmem:[%s1560_s4 + $0x168] sm:$0xff] }
  0x61   : > { %1096 = vmatpush1.bf16.msra.mxu1 %v1095_v28  ;;  %1066 = vmatprep.subr.bf16.mxu0 %v1065_v29  ;;  %v1099_v41 = vpack.c.bf16 %v968_v36, %v966_v35  ;;  %v1069_v42 = vpack.c.bf16 %v464_v39, %v462_v38  ;;  %v973_v43 = vld [vmem:[%s1560_s4 + $0x178] sm:$0xff]  ;;  %v461_v44 = vld [vmem:[%s1560_s4 + $0x60] sm:$0xff]  ;;  %v463_v45 = vld [vmem:[%s1560_s4 + $0x70] sm:$0xff] }
  0x62   : > { %1098 = vmatprep.subr.bf16.mxu1 %v1097_v33  ;;  %v1101_v46 = vpack.c.bf16 %v973_v43, %v971_v40  ;;  %v970_v47 = vld [vmem:[%s1560_s4 + $0x160] sm:$0xff]  ;;  %v972_v48 = vld [vmem:[%s1560_s4 + $0x170] sm:$0xff]  ;;  %v466_v49 = vld [vmem:[%s1560_s4 + $0x88] sm:$0xff]  ;;  %v1071_v53 = vpack.c.bf16 %v463_v45, %v461_v44 }
  0x63   : > { %v468_v50 = vld [vmem:[%s1560_s4 + $0x98] sm:$0xff]  ;;  %v975_v51 = vld [vmem:[%s1560_s4 + $0x188] sm:$0xff]  ;;  %v1103_v54 = vpack.c.bf16 %v972_v48, %v970_v47  ;;  %v465_v56 = vld [vmem:[%s1560_s4 + $0x80] sm:$0xff] }
  0x64   : > { %v977_v52 = vld [vmem:[%s1560_s4 + $0x198] sm:$0xff]  ;;  %1068 = vmatpush1.bf16.msra.mxu0 %v1067_v37  ;;  %v1073_v55 = vpack.c.bf16 %v468_v50, %v466_v49  ;;  %v467_v57 = vld [vmem:[%s1560_s4 + $0x90] sm:$0xff]  ;;  %v974_v58 = vld [vmem:[%s1560_s4 + $0x180] sm:$0xff] }
  0x65   : > { %1100 = vmatpush1.bf16.msra.mxu1 %v1099_v41  ;;  %1070 = vmatprep.subr.bf16.mxu0 %v1069_v42  ;;  %v1105_v59 = vpack.c.bf16 %v977_v52, %v975_v51  ;;  %v976_v60 = vld [vmem:[%s1560_s4 + $0x190] sm:$0xff]  ;;  %v470_v61 = vld [vmem:[%s1560_s4 + $0xa8] sm:$0xff]  ;;  %v472_v62 = vld [vmem:[%s1560_s4 + $0xb8] sm:$0xff]  ;;  %v1075_v2 = vpack.c.bf16 %v467_v57, %v465_v56 }
  0x66   : > { %1102 = vmatprep.subr.bf16.mxu1 %v1101_v46  ;;  %v979_v63 = vld [vmem:[%s1560_s4 + $0x1a8] sm:$0xff]  ;;  %v981_v0 = vld [vmem:[%s1560_s4 + $0x1b8] sm:$0xff]  ;;  %v1107_v3 = vpack.c.bf16 %v976_v60, %v974_v58  ;;  %v1077_v4 = vpack.c.bf16 %v472_v62, %v470_v61  ;;  %v469_v5 = vld [vmem:[%s1560_s4 + $0xa0] sm:$0xff] }
  0x67   : > { %v471_v6 = vld [vmem:[%s1560_s4 + $0xb0] sm:$0xff]  ;;  %v978_v7 = vld [vmem:[%s1560_s4 + $0x1a0] sm:$0xff]  ;;  %v1109_v8 = vpack.c.bf16 %v981_v0, %v979_v63  ;;  %v474_v10 = vld [vmem:[%s1560_s4 + $0xc8] sm:$0xff] }
  0x68   : > { %1072 = vmatpush1.bf16.msra.mxu0 %v1071_v53  ;;  %v980_v9 = vld [vmem:[%s1560_s4 + $0x1b0] sm:$0xff]  ;;  %v476_v11 = vld [vmem:[%s1560_s4 + $0xd8] sm:$0xff]  ;;  %v983_v12 = vld [vmem:[%s1560_s4 + $0x1c8] sm:$0xff]  ;;  %v1079_v14 = vpack.c.bf16 %v471_v6, %v469_v5 }
  0x69   : > { %1104 = vmatpush1.bf16.msra.mxu1 %v1103_v54  ;;  %1074 = vmatprep.subr.bf16.mxu0 %v1073_v55  ;;  %v985_v13 = vld [vmem:[%s1560_s4 + $0x1d8] sm:$0xff]  ;;  %v1111_v15 = vpack.c.bf16 %v980_v9, %v978_v7  ;;  %v1081_v16 = vpack.c.bf16 %v476_v11, %v474_v10  ;;  %v473_v17 = vld [vmem:[%s1560_s4 + $0xc0] sm:$0xff]  ;;  %v475_v18 = vld [vmem:[%s1560_s4 + $0xd0] sm:$0xff] }
  0x6a   : > { %1106 = vmatprep.subr.bf16.mxu1 %v1105_v59  ;;  %v982_v19 = vld [vmem:[%s1560_s4 + $0x1c0] sm:$0xff]  ;;  %v1113_v20 = vpack.c.bf16 %v985_v13, %v983_v12  ;;  %v984_v21 = vld [vmem:[%s1560_s4 + $0x1d0] sm:$0xff]  ;;  %v478_v22 = vld [vmem:[%s1560_s4 + $0xe8] sm:$0xff]  ;;  %v1083_v26 = vpack.c.bf16 %v475_v18, %v473_v17 }
  0x6b   : > { %v480_v23 = vld [vmem:[%s1560_s4 + $0xf8] sm:$0xff]  ;;  %v987_v24 = vld [vmem:[%s1560_s4 + $0x1e8] sm:$0xff]  ;;  %v1115_v27 = vpack.c.bf16 %v984_v21, %v982_v19  ;;  %v477_v29 = vld [vmem:[%s1560_s4 + $0xe0] sm:$0xff] }
  0x6c   : > { %1076 = vmatpush1.bf16.msra.mxu0 %v1075_v2  ;;  %v989_v25 = vld [vmem:[%s1560_s4 + $0x1f8] sm:$0xff]  ;;  %v1085_v28 = vpack.c.bf16 %v480_v23, %v478_v22  ;;  %v479_v30 = vld [vmem:[%s1560_s4 + $0xf0] sm:$0xff]  ;;  %v986_v31 = vld [vmem:[%s1560_s4 + $0x1e0] sm:$0xff] }
  0x6d   : > { %1108 = vmatpush1.bf16.msra.mxu1 %v1107_v3  ;;  %1078 = vmatprep.subr.bf16.mxu0 %v1077_v4  ;;  %v1117_v32 = vpack.c.bf16 %v989_v25, %v987_v24  ;;  %v988_v33 = vld [vmem:[%s1560_s4 + $0x1f0] sm:$0xff]  ;;  %v991_v34 = vld [vmem:[%s1560_s4 + $0x208] sm:$0xff]  ;;  %v993_v35 = vld [vmem:[%s1560_s4 + $0x218] sm:$0xff]  ;;  %v1087_v38 = vpack.c.bf16 %v479_v30, %v477_v29 }
  0x6e   : > { %1110 = vmatprep.subr.bf16.mxu1 %v1109_v8  ;;  %v1023_v36 = vld [vmem:[%s1560_s4 + $0x308] sm:$0xff]  ;;  %v1025_v37 = vld [vmem:[%s1560_s4 + $0x318] sm:$0xff]  ;;  %v1119_v39 = vpack.c.bf16 %v988_v33, %v986_v31  ;;  %v1121_v40 = vpack.c.bf16 %v993_v35, %v991_v34  ;;  %v990_v41 = vld [vmem:[%s1560_s4 + $0x200] sm:$0xff] }
  0x6f   : > { %v992_v42 = vld [vmem:[%s1560_s4 + $0x210] sm:$0xff]  ;;  %v1022_v43 = vld [vmem:[%s1560_s4 + $0x300] sm:$0xff]  ;;  %v1153_v44 = vpack.c.bf16 %v1025_v37, %v1023_v36  ;;  %v995_v46 = vld [vmem:[%s1560_s4 + $0x228] sm:$0xff] }
  0x70   : > { %1080 = vmatpush1.bf16.msra.mxu0 %v1079_v14  ;;  %v1024_v45 = vld [vmem:[%s1560_s4 + $0x310] sm:$0xff]  ;;  %v997_v47 = vld [vmem:[%s1560_s4 + $0x238] sm:$0xff]  ;;  %v1027_v48 = vld [vmem:[%s1560_s4 + $0x328] sm:$0xff]  ;;  %v1123_v51 = vpack.c.bf16 %v992_v42, %v990_v41 }
  0x71   : > { %1112 = vmatpush1.bf16.msra.mxu1 %v1111_v15  ;;  %1082 = vmatprep.subr.bf16.mxu0 %v1081_v16  ;;  %v1029_v49 = vld [vmem:[%s1560_s4 + $0x338] sm:$0xff]  ;;  %v1641_v50 = vld [vmem:[%s1717_s1] sm:$0xff]  ;;  %v1155_v52 = vpack.c.bf16 %v1024_v45, %v1022_v43  ;;  %v1125_v53 = vpack.c.bf16 %v997_v47, %v995_v46  ;;  %v996_v55 = vld [vmem:[%s1560_s4 + $0x230] sm:$0xff] }
  0x72   : > { %1114 = vmatprep.subr.bf16.mxu1 %v1113_v20  ;;  %v994_v54 = vld [vmem:[%s1560_s4 + $0x220] sm:$0xff]  ;;  %v1157_v57 = vpack.c.bf16 %v1029_v49, %v1027_v48  ;;  %v1028_v58 = vld [vmem:[%s1560_s4 + $0x330] sm:$0xff]  ;;  %v999_v59 = vld [vmem:[%s1560_s4 + $0x248] sm:$0xff] }
  0x73   : > { %v1026_v56 = vld [vmem:[%s1560_s4 + $0x320] sm:$0xff]  ;;  %v1001_v60 = vld [vmem:[%s1560_s4 + $0x258] sm:$0xff]  ;;  %v1031_v61 = vld [vmem:[%s1560_s4 + $0x348] sm:$0xff]  ;;  %v1127_v63 = vpack.c.bf16 %v996_v55, %v994_v54 }
  0x74   : > { %1084 = vmatpush1.bf16.msra.mxu0 %v1083_v26  ;;  %v1033_v62 = vld [vmem:[%s1560_s4 + $0x358] sm:$0xff]  ;;  %v1159_v0 = vpack.c.bf16 %v1028_v58, %v1026_v56  ;;  %v1129_v2 = vpack.c.bf16 %v1001_v60, %v999_v59  ;;  %v998_v3 = vld [vmem:[%s1560_s4 + $0x240] sm:$0xff]  ;;  %v1000_v4 = vld [vmem:[%s1560_s4 + $0x250] sm:$0xff] }
  0x75   : > { %1116 = vmatpush1.bf16.msra.mxu1 %v1115_v27  ;;  %1086 = vmatprep.subr.bf16.mxu0 %v1085_v28  ;;  %v1030_v5 = vld [vmem:[%s1560_s4 + $0x340] sm:$0xff]  ;;  %v1161_v6 = vpack.c.bf16 %v1033_v62, %v1031_v61  ;;  %v1032_v7 = vld [vmem:[%s1560_s4 + $0x350] sm:$0xff]  ;;  %v1003_v8 = vld [vmem:[%s1560_s4 + $0x268] sm:$0xff]  ;;  %v1131_v12 = vpack.c.bf16 %v1000_v4, %v998_v3 }
  0x76   : > { %1118 = vmatprep.subr.bf16.mxu1 %v1117_v32  ;;  %v1005_v9 = vld [vmem:[%s1560_s4 + $0x278] sm:$0xff]  ;;  %v1035_v10 = vld [vmem:[%s1560_s4 + $0x368] sm:$0xff]  ;;  %v1163_v13 = vpack.c.bf16 %v1032_v7, %v1030_v5  ;;  %v1002_v15 = vld [vmem:[%s1560_s4 + $0x260] sm:$0xff] }
  0x77   : > { %v1037_v11 = vld [vmem:[%s1560_s4 + $0x378] sm:$0xff]  ;;  %v1133_v14 = vpack.c.bf16 %v1005_v9, %v1003_v8  ;;  %v1004_v16 = vld [vmem:[%s1560_s4 + $0x270] sm:$0xff]  ;;  %v1034_v17 = vld [vmem:[%s1560_s4 + $0x360] sm:$0xff] }
  0x78   : > { %1088 = vmatpush1.bf16.msra.mxu0 %v1087_v38  ;;  %v1165_v18 = vpack.c.bf16 %v1037_v11, %v1035_v10  ;;  %v1036_v19 = vld [vmem:[%s1560_s4 + $0x370] sm:$0xff]  ;;  %v1007_v20 = vld [vmem:[%s1560_s4 + $0x288] sm:$0xff]  ;;  %v1041_v22 = vld [vmem:[%s1560_s4 + $0x398] sm:$0xff]  ;;  %v1135_v23 = vpack.c.bf16 %v1004_v16, %v1002_v15 }
  0x79   : > { %1120 = vmatpush1.bf16.msra.mxu1 %v1119_v39  ;;  %1122 = vmatprep.subr.bf16.mxu0 %v1121_v40  ;;  %v1039_v21 = vld [vmem:[%s1560_s4 + $0x388] sm:$0xff]  ;;  %v1167_v24 = vpack.c.bf16 %v1036_v19, %v1034_v17  ;;  %v1006_v26 = vld [vmem:[%s1560_s4 + $0x280] sm:$0xff]  ;;  %v1008_v27 = vld [vmem:[%s1560_s4 + $0x290] sm:$0xff] }
  0x7a   : > { %1154 = vmatprep.subr.bf16.mxu1 %v1153_v44  ;;  %v1038_v28 = vld [vmem:[%s1560_s4 + $0x380] sm:$0xff]  ;;  %v1169_v29 = vpack.c.bf16 %v1041_v22, %v1039_v21  ;;  %v1040_v30 = vld [vmem:[%s1560_s4 + $0x390] sm:$0xff]  ;;  %v1011_v31 = vld [vmem:[%s1560_s4 + $0x2a8] sm:$0xff]  ;;  %v1139_v35 = vpack.c.bf16 %v1008_v27, %v1006_v26 }
  0x7b   : > { %551 = vmatmul.mubr.f32.vlgmr.msra.gmra.mrb[0].mxu0 %v1641_v50  ;;  %v1013_v32 = vld [vmem:[%s1560_s4 + $0x2b8] sm:$0xff]  ;;  %v1043_v33 = vld [vmem:[%s1560_s4 + $0x3a8] sm:$0xff]  ;;  %v1171_v36 = vpack.c.bf16 %v1040_v30, %v1038_v28  ;;  %v1010_v38 = vld [vmem:[%s1560_s4 + $0x2a0] sm:$0xff] }
  0x7c   : > { %657 = vmatmul.mubr.f32.vlgmr.msra.gmra.mrb[0].mxu1 %v1641_v50  ;;  %1124 = vmatpush1.bf16.msra.mxu0 %v1123_v51  ;;  %v1045_v34 = vld [vmem:[%s1560_s4 + $0x3b8] sm:$0xff]  ;;  %v1141_v37 = vpack.c.bf16 %v1013_v32, %v1011_v31  ;;  %v1012_v39 = vld [vmem:[%s1560_s4 + $0x2b0] sm:$0xff]  ;;  %v1042_v40 = vld [vmem:[%s1560_s4 + $0x3a0] sm:$0xff] }
  0x7d   : > { %1156 = vmatpush1.bf16.msra.mxu1 %v1155_v52  ;;  %1126 = vmatprep.subr.bf16.mxu0 %v1125_v53  ;;  %v1173_v41 = vpack.c.bf16 %v1045_v34, %v1043_v33  ;;  %v1044_v42 = vld [vmem:[%s1560_s4 + $0x3b0] sm:$0xff]  ;;  %v1015_v43 = vld [vmem:[%s1560_s4 + $0x2c8] sm:$0xff]  ;;  %v1017_v44 = vld [vmem:[%s1560_s4 + $0x2d8] sm:$0xff]  ;;  %v1143_v47 = vpack.c.bf16 %v1012_v39, %v1010_v38 }
  0x7e   : > { %1158 = vmatprep.subr.bf16.mxu1 %v1157_v57  ;;  %764 = vmatprep.mubr.f32.mxu0 %v1236_v1  ;;  %v1047_v45 = vld [vmem:[%s1560_s4 + $0x3c8] sm:$0xff]  ;;  %v1049_v46 = vld [vmem:[%s1560_s4 + $0x3d8] sm:$0xff]  ;;  %v1175_v48 = vpack.c.bf16 %v1044_v42, %v1042_v40  ;;  %v1145_v49 = vpack.c.bf16 %v1017_v44, %v1015_v43  ;;  %v1014_v51 = vld [vmem:[%s1560_s4 + $0x2c0] sm:$0xff] }
  0x7f   : > { %870 = vmatprep.mubr.f32.mxu1 %v1236_v1  ;;  %v1009_v1 = vld [vmem:[%s1560_s4 + $0x298] sm:$0xff]  ;;  %v1016_v52 = vld [vmem:[%s1560_s4 + $0x2d0] sm:$0xff]  ;;  %v1046_v53 = vld [vmem:[%s1560_s4 + $0x3c0] sm:$0xff]  ;;  %v1177_v54 = vpack.c.bf16 %v1049_v46, %v1047_v45 }
  0x80   : > { %1128 = vmatpush1.bf16.msra.mxu0 %v1127_v63  ;;  %v1137_v25 = vpack.c.bf16 %v1009_v1, %v1007_v20  ;;  %v1048_v55 = vld [vmem:[%s1560_s4 + $0x3d0] sm:$0xff]  ;;  %v1019_v56 = vld [vmem:[%s1560_s4 + $0x2e8] sm:$0xff]  ;;  %v1021_v57 = vld [vmem:[%s1560_s4 + $0x2f8] sm:$0xff]  ;;  %v1147_v60 = vpack.c.bf16 %v1016_v52, %v1014_v51 }
  0x81   : > { %1160 = vmatpush1.bf16.msra.mxu1 %v1159_v0  ;;  %1130 = vmatprep.subr.bf16.mxu0 %v1129_v2  ;;  %v1051_v58 = vld [vmem:[%s1560_s4 + $0x3e8] sm:$0xff]  ;;  %v1053_v59 = vld [vmem:[%s1560_s4 + $0x3f8] sm:$0xff]  ;;  %v1179_v61 = vpack.c.bf16 %v1048_v55, %v1046_v53  ;;  %v1149_v62 = vpack.c.bf16 %v1021_v57, %v1019_v56  ;;  %v1018_v63 = vld [vmem:[%s1560_s4 + $0x2e0] sm:$0xff] }
  0x82   : > { %1162 = vmatprep.subr.bf16.mxu1 %v1161_v6  ;;  %v1020_v0 = vld [vmem:[%s1560_s4 + $0x2f0] sm:$0xff]  ;;  %v1181_v2 = vpack.c.bf16 %v1053_v59, %v1051_v58  ;;  %v1050_v3 = vld [vmem:[%s1560_s4 + $0x3e0] sm:$0xff] }
  0x83   : > { %v1052_v4 = vld [vmem:[%s1560_s4 + $0x3f0] sm:$0xff]  ;;  %v1151_v5 = vpack.c.bf16 %v1020_v0, %v1018_v63 }
  0x84   : > { %1132 = vmatpush1.bf16.msra.mxu0 %v1131_v12  ;;  %v1183_v6 = vpack.c.bf16 %v1052_v4, %v1050_v3 }
  0x85   : > { %1164 = vmatpush1.bf16.msra.mxu1 %v1163_v13  ;;  %1134 = vmatprep.subr.bf16.mxu0 %v1133_v14 }
  0x86   : > { %1166 = vmatprep.subr.bf16.mxu1 %v1165_v18 }
  0x88   : > { %1136 = vmatpush1.bf16.msra.mxu0 %v1135_v23 }
  0x89   : > { %1168 = vmatpush1.bf16.msra.mxu1 %v1167_v24  ;;  %1138 = vmatprep.subr.bf16.mxu0 %v1137_v25 }
  0x8a   : > { %1170 = vmatprep.subr.bf16.mxu1 %v1169_v29 }
  0x8c   : > { %1140 = vmatpush1.bf16.msra.mxu0 %v1139_v35 }
  0x8d   : > { %1172 = vmatpush1.bf16.msra.mxu1 %v1171_v36  ;;  %1142 = vmatprep.subr.bf16.mxu0 %v1141_v37 }
  0x8e   : > { %1174 = vmatprep.subr.bf16.mxu1 %v1173_v41 }
  0x90   : > { %1144 = vmatpush1.bf16.msra.mxu0 %v1143_v47 }
  0x91   : > { %1176 = vmatpush1.bf16.msra.mxu1 %v1175_v48  ;;  %1146 = vmatprep.subr.bf16.mxu0 %v1145_v49 }
  0x92   : > { %1178 = vmatprep.subr.bf16.mxu1 %v1177_v54 }
  0x94   : > { %1148 = vmatpush1.bf16.msra.mxu0 %v1147_v60 }
  0x95   : > { %1180 = vmatpush1.bf16.msra.mxu1 %v1179_v61  ;;  %1150 = vmatprep.subr.bf16.mxu0 %v1149_v62 }
  0x96   : > { %1182 = vmatprep.subr.bf16.mxu1 %v1181_v2 }
  0x98   : > { %1152 = vmatpush1.bf16.msra.mxu0 %v1151_v5 }
  0x99   : > { %1184 = vmatpush1.bf16.msra.mxu1 %v1183_v6 }
  0x9b   : > { %765 = vmatmul.mubr.f32.vlgmr.msra.gmra.mrb[2].mxu0 %v1641_v50 }
  0x9c   : > { %871 = vmatmul.mubr.f32.vlgmr.msra.gmra.mrb[2].mxu1 %v1641_v50 }
  0xd7   : > { %v484_v7 = vpop.permute.xlu0 %483 }
 0x14e   : > { %v552_v8 = vpop.f32.mrb[0].mxu0 }
 0x14f   : > { %v658_v9 = vpop.f32.mrb[0].mxu1  ;;  %v554_v10 = vpop.f32.mrb[1].mxu0  ;;  %v553_v11 = vadd.f32 %v552_v8, %v484_v7 }
 0x150   : > { %v555_v12 = vadd.f32 %v554_v10, %v484_v7  ;;  %v660_v13 = vpop.f32.mrb[1].mxu1  ;;  %v659_v14 = vadd.f32 %v658_v9, %v484_v7 }
 0x151   : > { %v661_v15 = vadd.f32 %v660_v13, %v484_v7  ;;  %v557_v16 = vmax.f32 %v553_v11, 0.0 }
 0x152   : > { %v558_v17 = vmax.f32 %v555_v12, 0.0  ;;  %v663_v18 = vmax.f32 %v659_v14, 0.0 }
 0x153   : > { %v664_v19 = vmax.f32 %v661_v15, 0.0 }
 0x154   : > { %v665_v20 = vmax.f32 %v557_v16, %v663_v18 }
 0x155   : > { %v666_v1 = vmax.f32 %v558_v17, %v664_v19 }
 0x16e   : > { %v766_v50 = vpop.f32.mrb[2].mxu0 }
 0x16f   : > { %v767_v21 = vadd.f32 %v766_v50, %v484_v7  ;;  %v872_v22 = vpop.f32.mrb[2].mxu1  ;;  %v768_v23 = vpop.f32.mrb[3].mxu0 }
 0x170   : > { %v873_v24 = vadd.f32 %v872_v22, %v484_v7  ;;  %v769_v25 = vadd.f32 %v768_v23, %v484_v7  ;;  %v874_v26 = vpop.f32.mrb[3].mxu1 }
 0x171   : > { %v771_v27 = vmax.f32 %v767_v21, 0.0  ;;  %v875_v28 = vadd.f32 %v874_v26, %v484_v7 }
 0x172   : > { %v877_v29 = vmax.f32 %v873_v24, 0.0  ;;  %v772_v30 = vmax.f32 %v769_v25, 0.0 }
 0x173   : > { %v878_v31 = vmax.f32 %v875_v28, 0.0 }
 0x174   : > { %v879_v32 = vmax.f32 %v771_v27, %v877_v29 }
 0x175   : > { %v880_v33 = vmax.f32 %v772_v30, %v878_v31 }
 0x176   : > { %v881_v34 = vmax.f32 %v665_v20, %v879_v32 }
 0x177   : > { %v882_v35 = vmax.f32 %v666_v1, %v880_v33 }
 0x178   : > { %883 = vst [vmem:[%s445_s11] sm:$0xff] %v881_v34 }
 0x179   : > { %884 = vst [vmem:[%s445_s11 + $0x8] sm:$0xff] %v882_v35 }
 0x17a PF: > { %p10_p9 = scmp.ge.s32.totalorder %s1275_s16, 4   ;;  %s1720_s12 = smov %s1230_s13 }
 0x17b   : > { %s1721_s13 = smov %s1284_s19  ;;  %s1722_s14 = smov %s1275_s16 }
 0x17c   :  { %12 = sbr.rel (!%p10_p9) target bundleno = 2 (0x2), region = 93 }

// kernel: convnet_forward.4
= control target key start
LH: loop header
LB: loop body
LE: loop exit
PB: predicated region body
PF: predicated region fallthrough
CT: control target
= control target key end

     0   :  { %v1083_v47 = vmov 0   ;;  %s1926_s0 = inlined_call_operand.vmem [shape: f32[4,256,256], index: 0, kind: input, shape index: {}]   ;;  %s1927_s1 = inlined_call_operand.vmem [shape: f32[16,256], index: 1, kind: input, shape index: {}]   ;;  %s1928_s2 = inlined_call_operand.vmem [shape: f32[16,1], index: 2, kind: input, shape index: {}]   ;;  %s1929_s3 = inlined_call_operand.vmem [shape: f32[16,256], index: 3, kind: output, shape index: {}]  }
   0x1   :  { %v21_v0 = vld [vmem:[%s1926_s0 + $0x8] sm:$0xff]  ;;  %v23_v1 = vld [vmem:[%s1926_s0 + $0x18] sm:$0xff]  ;;  %v20_v5 = vld [vmem:[%s1926_s0] sm:$0xff]  ;;  %1082 = vset.pattern.permute.xlu0 %v1083_v47 }
   0x2   :  { %v634_v2 = vld [vmem:[%s1926_s0 + $0x208] sm:$0xff]  ;;  %v825_v3 = vpack.c.bf16 %v23_v1, %v21_v0  ;;  %v636_v4 = vld [vmem:[%s1926_s0 + $0x218] sm:$0xff]  ;;  %v22_v6 = vld [vmem:[%s1926_s0 + $0x10] sm:$0xff] }
   0x3   :  { %v889_v7 = vpack.c.bf16 %v636_v4, %v634_v2  ;;  %v827_v8 = vpack.c.bf16 %v22_v6, %v20_v5  ;;  %v633_v9 = vld [vmem:[%s1926_s0 + $0x200] sm:$0xff]  ;;  %v635_v10 = vld [vmem:[%s1926_s0 + $0x210] sm:$0xff]  ;;  %v25_v11 = vld [vmem:[%s1926_s0 + $0x28] sm:$0xff] }
   0x4   :  { %826 = vmatprep.subr.bf16.mxu0 %v825_v3  ;;  %v891_v12 = vpack.c.bf16 %v635_v10, %v633_v9  ;;  %v27_v13 = vld [vmem:[%s1926_s0 + $0x38] sm:$0xff]  ;;  %v638_v14 = vld [vmem:[%s1926_s0 + $0x228] sm:$0xff]  ;;  %v24_v18 = vld [vmem:[%s1926_s0 + $0x20] sm:$0xff] }
   0x5   :  { %v640_v15 = vld [vmem:[%s1926_s0 + $0x238] sm:$0xff]  ;;  %890 = vmatprep.subr.bf16.mxu1 %v889_v7  ;;  %828 = vmatpush1.bf16.msra.mxu0 %v827_v8  ;;  %v829_v16 = vpack.c.bf16 %v27_v13, %v25_v11  ;;  %v26_v19 = vld [vmem:[%s1926_s0 + $0x30] sm:$0xff]  ;;  %v637_v20 = vld [vmem:[%s1926_s0 + $0x220] sm:$0xff] }
   0x6   :  { %v893_v17 = vpack.c.bf16 %v640_v15, %v638_v14  ;;  %892 = vmatpush1.bf16.msra.mxu1 %v891_v12  ;;  %v831_v21 = vpack.c.bf16 %v26_v19, %v24_v18  ;;  %v639_v22 = vld [vmem:[%s1926_s0 + $0x230] sm:$0xff]  ;;  %v29_v23 = vld [vmem:[%s1926_s0 + $0x48] sm:$0xff]  ;;  %v31_v24 = vld [vmem:[%s1926_s0 + $0x58] sm:$0xff] }
   0x7   :  { %830 = vmatprep.subr.bf16.mxu0 %v829_v16  ;;  %v895_v25 = vpack.c.bf16 %v639_v22, %v637_v20  ;;  %v833_v26 = vpack.c.bf16 %v31_v24, %v29_v23  ;;  %v642_v27 = vld [vmem:[%s1926_s0 + $0x248] sm:$0xff]  ;;  %v644_v28 = vld [vmem:[%s1926_s0 + $0x258] sm:$0xff]  ;;  %v28_v29 = vld [vmem:[%s1926_s0 + $0x40] sm:$0xff] }
   0x8   :  { %894 = vmatprep.subr.bf16.mxu1 %v893_v17  ;;  %v897_v30 = vpack.c.bf16 %v644_v28, %v642_v27  ;;  %v30_v31 = vld [vmem:[%s1926_s0 + $0x50] sm:$0xff]  ;;  %v641_v32 = vld [vmem:[%s1926_s0 + $0x240] sm:$0xff]  ;;  %v33_v35 = vld [vmem:[%s1926_s0 + $0x68] sm:$0xff] }
   0x9   :  { %v643_v33 = vld [vmem:[%s1926_s0 + $0x250] sm:$0xff]  ;;  %832 = vmatpush1.bf16.msra.mxu0 %v831_v21  ;;  %v835_v34 = vpack.c.bf16 %v30_v31, %v28_v29  ;;  %v35_v36 = vld [vmem:[%s1926_s0 + $0x78] sm:$0xff]  ;;  %v646_v37 = vld [vmem:[%s1926_s0 + $0x268] sm:$0xff] }
   0xa   :  { %896 = vmatpush1.bf16.msra.mxu1 %v895_v25  ;;  %834 = vmatprep.subr.bf16.mxu0 %v833_v26  ;;  %v899_v38 = vpack.c.bf16 %v643_v33, %v641_v32  ;;  %v837_v39 = vpack.c.bf16 %v35_v36, %v33_v35  ;;  %v648_v40 = vld [vmem:[%s1926_s0 + $0x278] sm:$0xff]  ;;  %v32_v41 = vld [vmem:[%s1926_s0 + $0x60] sm:$0xff]  ;;  %v34_v42 = vld [vmem:[%s1926_s0 + $0x70] sm:$0xff] }
   0xb   :  { %898 = vmatprep.subr.bf16.mxu1 %v897_v30  ;;  %v901_v43 = vpack.c.bf16 %v648_v40, %v646_v37  ;;  %v645_v44 = vld [vmem:[%s1926_s0 + $0x260] sm:$0xff]  ;;  %v647_v45 = vld [vmem:[%s1926_s0 + $0x270] sm:$0xff]  ;;  %v37_v46 = vld [vmem:[%s1926_s0 + $0x88] sm:$0xff]  ;;  %v839_v51 = vpack.c.bf16 %v34_v42, %v32_v41 }
   0xc   :  { %v39_v48 = vld [vmem:[%s1926_s0 + $0x98] sm:$0xff]  ;;  %v650_v49 = vld [vmem:[%s1926_s0 + $0x288] sm:$0xff]  ;;  %v903_v52 = vpack.c.bf16 %v647_v45, %v645_v44  ;;  %v36_v54 = vld [vmem:[%s1926_s0 + $0x80] sm:$0xff] }
   0xd   :  { %v652_v50 = vld [vmem:[%s1926_s0 + $0x298] sm:$0xff]  ;;  %836 = vmatpush1.bf16.msra.mxu0 %v835_v34  ;;  %v841_v53 = vpack.c.bf16 %v39_v48, %v37_v46  ;;  %v38_v55 = vld [vmem:[%s1926_s0 + $0x90] sm:$0xff]  ;;  %v649_v56 = vld [vmem:[%s1926_s0 + $0x280] sm:$0xff] }
   0xe   :  { %900 = vmatpush1.bf16.msra.mxu1 %v899_v38  ;;  %838 = vmatprep.subr.bf16.mxu0 %v837_v39  ;;  %v905_v57 = vpack.c.bf16 %v652_v50, %v650_v49  ;;  %v651_v58 = vld [vmem:[%s1926_s0 + $0x290] sm:$0xff]  ;;  %v41_v59 = vld [vmem:[%s1926_s0 + $0xa8] sm:$0xff]  ;;  %v43_v60 = vld [vmem:[%s1926_s0 + $0xb8] sm:$0xff]  ;;  %v843_v63 = vpack.c.bf16 %v38_v55, %v36_v54 }
   0xf   :  { %902 = vmatprep.subr.bf16.mxu1 %v901_v43  ;;  %v654_v61 = vld [vmem:[%s1926_s0 + $0x2a8] sm:$0xff]  ;;  %v656_v62 = vld [vmem:[%s1926_s0 + $0x2b8] sm:$0xff]  ;;  %v907_v0 = vpack.c.bf16 %v651_v58, %v649_v56  ;;  %v845_v1 = vpack.c.bf16 %v43_v60, %v41_v59  ;;  %v40_v2 = vld [vmem:[%s1926_s0 + $0xa0] sm:$0xff] }
  0x10   :  { %v42_v3 = vld [vmem:[%s1926_s0 + $0xb0] sm:$0xff]  ;;  %v653_v4 = vld [vmem:[%s1926_s0 + $0x2a0] sm:$0xff]  ;;  %v909_v5 = vpack.c.bf16 %v656_v62, %v654_v61  ;;  %v45_v7 = vld [vmem:[%s1926_s0 + $0xc8] sm:$0xff] }
  0x11   :  { %840 = vmatpush1.bf16.msra.mxu0 %v839_v51  ;;  %v655_v6 = vld [vmem:[%s1926_s0 + $0x2b0] sm:$0xff]  ;;  %v47_v8 = vld [vmem:[%s1926_s0 + $0xd8] sm:$0xff]  ;;  %v658_v9 = vld [vmem:[%s1926_s0 + $0x2c8] sm:$0xff]  ;;  %v847_v11 = vpack.c.bf16 %v42_v3, %v40_v2 }
  0x12   :  { %904 = vmatpush1.bf16.msra.mxu1 %v903_v52  ;;  %842 = vmatprep.subr.bf16.mxu0 %v841_v53  ;;  %v660_v10 = vld [vmem:[%s1926_s0 + $0x2d8] sm:$0xff]  ;;  %v911_v12 = vpack.c.bf16 %v655_v6, %v653_v4  ;;  %v849_v13 = vpack.c.bf16 %v47_v8, %v45_v7  ;;  %v44_v14 = vld [vmem:[%s1926_s0 + $0xc0] sm:$0xff]  ;;  %v46_v15 = vld [vmem:[%s1926_s0 + $0xd0] sm:$0xff] }
  0x13   :  { %906 = vmatprep.subr.bf16.mxu1 %v905_v57  ;;  %v657_v16 = vld [vmem:[%s1926_s0 + $0x2c0] sm:$0xff]  ;;  %v913_v17 = vpack.c.bf16 %v660_v10, %v658_v9  ;;  %v659_v18 = vld [vmem:[%s1926_s0 + $0x2d0] sm:$0xff]  ;;  %v49_v19 = vld [vmem:[%s1926_s0 + $0xe8] sm:$0xff]  ;;  %v851_v23 = vpack.c.bf16 %v46_v15, %v44_v14 }
  0x14   :  { %v51_v20 = vld [vmem:[%s1926_s0 + $0xf8] sm:$0xff]  ;;  %v662_v21 = vld [vmem:[%s1926_s0 + $0x2e8] sm:$0xff]  ;;  %v915_v24 = vpack.c.bf16 %v659_v18, %v657_v16  ;;  %v48_v26 = vld [vmem:[%s1926_s0 + $0xe0] sm:$0xff] }
  0x15   :  { %844 = vmatpush1.bf16.msra.mxu0 %v843_v63  ;;  %v664_v22 = vld [vmem:[%s1926_s0 + $0x2f8] sm:$0xff]  ;;  %v853_v25 = vpack.c.bf16 %v51_v20, %v49_v19  ;;  %v50_v27 = vld [vmem:[%s1926_s0 + $0xf0] sm:$0xff]  ;;  %v661_v28 = vld [vmem:[%s1926_s0 + $0x2e0] sm:$0xff] }
  0x16   :  { %908 = vmatpush1.bf16.msra.mxu1 %v907_v0  ;;  %846 = vmatprep.subr.bf16.mxu0 %v845_v1  ;;  %v917_v29 = vpack.c.bf16 %v664_v22, %v662_v21  ;;  %v663_v30 = vld [vmem:[%s1926_s0 + $0x2f0] sm:$0xff]  ;;  %v53_v31 = vld [vmem:[%s1926_s0 + $0x108] sm:$0xff]  ;;  %v55_v32 = vld [vmem:[%s1926_s0 + $0x118] sm:$0xff]  ;;  %v855_v35 = vpack.c.bf16 %v50_v27, %v48_v26 }
  0x17   :  { %910 = vmatprep.subr.bf16.mxu1 %v909_v5  ;;  %v666_v33 = vld [vmem:[%s1926_s0 + $0x308] sm:$0xff]  ;;  %v668_v34 = vld [vmem:[%s1926_s0 + $0x318] sm:$0xff]  ;;  %v919_v36 = vpack.c.bf16 %v663_v30, %v661_v28  ;;  %v857_v37 = vpack.c.bf16 %v55_v32, %v53_v31  ;;  %v52_v38 = vld [vmem:[%s1926_s0 + $0x100] sm:$0xff] }
  0x18   :  { %v54_v39 = vld [vmem:[%s1926_s0 + $0x110] sm:$0xff]  ;;  %v665_v40 = vld [vmem:[%s1926_s0 + $0x300] sm:$0xff]  ;;  %v921_v41 = vpack.c.bf16 %v668_v34, %v666_v33  ;;  %v57_v43 = vld [vmem:[%s1926_s0 + $0x128] sm:$0xff] }
  0x19   :  { %848 = vmatpush1.bf16.msra.mxu0 %v847_v11  ;;  %v667_v42 = vld [vmem:[%s1926_s0 + $0x310] sm:$0xff]  ;;  %v59_v44 = vld [vmem:[%s1926_s0 + $0x138] sm:$0xff]  ;;  %v670_v45 = vld [vmem:[%s1926_s0 + $0x328] sm:$0xff]  ;;  %v859_v47 = vpack.c.bf16 %v54_v39, %v52_v38 }
  0x1a   :  { %912 = vmatpush1.bf16.msra.mxu1 %v911_v12  ;;  %850 = vmatprep.subr.bf16.mxu0 %v849_v13  ;;  %v672_v46 = vld [vmem:[%s1926_s0 + $0x338] sm:$0xff]  ;;  %v923_v48 = vpack.c.bf16 %v667_v42, %v665_v40  ;;  %v861_v49 = vpack.c.bf16 %v59_v44, %v57_v43  ;;  %v56_v50 = vld [vmem:[%s1926_s0 + $0x120] sm:$0xff]  ;;  %v58_v51 = vld [vmem:[%s1926_s0 + $0x130] sm:$0xff] }
  0x1b   :  { %914 = vmatprep.subr.bf16.mxu1 %v913_v17  ;;  %v669_v52 = vld [vmem:[%s1926_s0 + $0x320] sm:$0xff]  ;;  %v925_v53 = vpack.c.bf16 %v672_v46, %v670_v45  ;;  %v671_v54 = vld [vmem:[%s1926_s0 + $0x330] sm:$0xff]  ;;  %v61_v55 = vld [vmem:[%s1926_s0 + $0x148] sm:$0xff]  ;;  %v863_v59 = vpack.c.bf16 %v58_v51, %v56_v50 }
  0x1c   :  { %v63_v56 = vld [vmem:[%s1926_s0 + $0x158] sm:$0xff]  ;;  %v674_v57 = vld [vmem:[%s1926_s0 + $0x348] sm:$0xff]  ;;  %v927_v60 = vpack.c.bf16 %v671_v54, %v669_v52  ;;  %v60_v62 = vld [vmem:[%s1926_s0 + $0x140] sm:$0xff] }
  0x1d   :  { %852 = vmatpush1.bf16.msra.mxu0 %v851_v23  ;;  %v676_v58 = vld [vmem:[%s1926_s0 + $0x358] sm:$0xff]  ;;  %v865_v61 = vpack.c.bf16 %v63_v56, %v61_v55  ;;  %v62_v63 = vld [vmem:[%s1926_s0 + $0x150] sm:$0xff]  ;;  %v673_v0 = vld [vmem:[%s1926_s0 + $0x340] sm:$0xff] }
  0x1e   :  { %916 = vmatpush1.bf16.msra.mxu1 %v915_v24  ;;  %854 = vmatprep.subr.bf16.mxu0 %v853_v25  ;;  %v929_v1 = vpack.c.bf16 %v676_v58, %v674_v57  ;;  %v675_v2 = vld [vmem:[%s1926_s0 + $0x350] sm:$0xff]  ;;  %v65_v3 = vld [vmem:[%s1926_s0 + $0x168] sm:$0xff]  ;;  %v67_v4 = vld [vmem:[%s1926_s0 + $0x178] sm:$0xff]  ;;  %v867_v7 = vpack.c.bf16 %v62_v63, %v60_v62 }
  0x1f   :  { %918 = vmatprep.subr.bf16.mxu1 %v917_v29  ;;  %v678_v5 = vld [vmem:[%s1926_s0 + $0x368] sm:$0xff]  ;;  %v680_v6 = vld [vmem:[%s1926_s0 + $0x378] sm:$0xff]  ;;  %v64_v8 = vld [vmem:[%s1926_s0 + $0x160] sm:$0xff]  ;;  %v931_v9 = vpack.c.bf16 %v675_v2, %v673_v0  ;;  %v869_v10 = vpack.c.bf16 %v67_v4, %v65_v3 }
  0x20   :  { %v66_v11 = vld [vmem:[%s1926_s0 + $0x170] sm:$0xff]  ;;  %v677_v12 = vld [vmem:[%s1926_s0 + $0x360] sm:$0xff]  ;;  %v933_v14 = vpack.c.bf16 %v680_v6, %v678_v5  ;;  %v69_v15 = vld [vmem:[%s1926_s0 + $0x188] sm:$0xff] }
  0x21   :  { %856 = vmatpush1.bf16.msra.mxu0 %v855_v35  ;;  %v679_v13 = vld [vmem:[%s1926_s0 + $0x370] sm:$0xff]  ;;  %v71_v16 = vld [vmem:[%s1926_s0 + $0x198] sm:$0xff]  ;;  %v1401_v17 = vld [vmem:[%s1927_s1 + $0x8] sm:$0xff]  ;;  %v871_v20 = vpack.c.bf16 %v66_v11, %v64_v8 }
  0x22   :  { %920 = vmatpush1.bf16.msra.mxu1 %v919_v36  ;;  %858 = vmatprep.subr.bf16.mxu0 %v857_v37  ;;  %v682_v18 = vld [vmem:[%s1926_s0 + $0x388] sm:$0xff]  ;;  %v684_v19 = vld [vmem:[%s1926_s0 + $0x398] sm:$0xff]  ;;  %v935_v21 = vpack.c.bf16 %v679_v13, %v677_v12  ;;  %v873_v22 = vpack.c.bf16 %v71_v16, %v69_v15  ;;  %v68_v23 = vld [vmem:[%s1926_s0 + $0x180] sm:$0xff] }
  0x23   :  { %922 = vmatprep.subr.bf16.mxu1 %v921_v41  ;;  %158 = vmatprep.mubr.f32.mxu0 %v1401_v17  ;;  %v70_v24 = vld [vmem:[%s1926_s0 + $0x190] sm:$0xff]  ;;  %v681_v25 = vld [vmem:[%s1926_s0 + $0x380] sm:$0xff]  ;;  %v937_v26 = vpack.c.bf16 %v684_v19, %v682_v18  ;;  %v73_v28 = vld [vmem:[%s1926_s0 + $0x1a8] sm:$0xff] }
  0x24   :  { %304 = vmatprep.mubr.f32.mxu1 %v1401_v17  ;;  %v683_v27 = vld [vmem:[%s1926_s0 + $0x390] sm:$0xff]  ;;  %v75_v29 = vld [vmem:[%s1926_s0 + $0x1b8] sm:$0xff]  ;;  %v686_v30 = vld [vmem:[%s1926_s0 + $0x3a8] sm:$0xff]  ;;  %v875_v32 = vpack.c.bf16 %v70_v24, %v68_v23 }
  0x25   :  { %860 = vmatpush1.bf16.msra.mxu0 %v859_v47  ;;  %v688_v31 = vld [vmem:[%s1926_s0 + $0x3b8] sm:$0xff]  ;;  %v939_v33 = vpack.c.bf16 %v683_v27, %v681_v25  ;;  %v877_v34 = vpack.c.bf16 %v75_v29, %v73_v28  ;;  %v72_v35 = vld [vmem:[%s1926_s0 + $0x1a0] sm:$0xff]  ;;  %v74_v36 = vld [vmem:[%s1926_s0 + $0x1b0] sm:$0xff] }
  0x26   :  { %924 = vmatpush1.bf16.msra.mxu1 %v923_v48  ;;  %862 = vmatprep.subr.bf16.mxu0 %v861_v49  ;;  %v685_v37 = vld [vmem:[%s1926_s0 + $0x3a0] sm:$0xff]  ;;  %v941_v38 = vpack.c.bf16 %v688_v31, %v686_v30  ;;  %v687_v39 = vld [vmem:[%s1926_s0 + $0x3b0] sm:$0xff]  ;;  %v77_v40 = vld [vmem:[%s1926_s0 + $0x1c8] sm:$0xff]  ;;  %v879_v44 = vpack.c.bf16 %v74_v36, %v72_v35 }
  0x27   :  { %926 = vmatprep.subr.bf16.mxu1 %v925_v53  ;;  %v79_v41 = vld [vmem:[%s1926_s0 + $0x1d8] sm:$0xff]  ;;  %v690_v42 = vld [vmem:[%s1926_s0 + $0x3c8] sm:$0xff]  ;;  %v943_v45 = vpack.c.bf16 %v687_v39, %v685_v37  ;;  %v76_v47 = vld [vmem:[%s1926_s0 + $0x1c0] sm:$0xff] }
  0x28   :  { %v692_v43 = vld [vmem:[%s1926_s0 + $0x3d8] sm:$0xff]  ;;  %v881_v46 = vpack.c.bf16 %v79_v41, %v77_v40  ;;  %v78_v48 = vld [vmem:[%s1926_s0 + $0x1d0] sm:$0xff]  ;;  %v689_v49 = vld [vmem:[%s1926_s0 + $0x3c0] sm:$0xff] }
  0x29   :  { %864 = vmatpush1.bf16.msra.mxu0 %v863_v59  ;;  %v945_v50 = vpack.c.bf16 %v692_v43, %v690_v42  ;;  %v691_v51 = vld [vmem:[%s1926_s0 + $0x3d0] sm:$0xff]  ;;  %v81_v52 = vld [vmem:[%s1926_s0 + $0x1e8] sm:$0xff]  ;;  %v83_v53 = vld [vmem:[%s1926_s0 + $0x1f8] sm:$0xff]  ;;  %v883_v56 = vpack.c.bf16 %v78_v48, %v76_v47 }
  0x2a   :  { %928 = vmatpush1.bf16.msra.mxu1 %v927_v60  ;;  %866 = vmatprep.subr.bf16.mxu0 %v865_v61  ;;  %v694_v54 = vld [vmem:[%s1926_s0 + $0x3e8] sm:$0xff]  ;;  %v696_v55 = vld [vmem:[%s1926_s0 + $0x3f8] sm:$0xff]  ;;  %v947_v57 = vpack.c.bf16 %v691_v51, %v689_v49  ;;  %v885_v58 = vpack.c.bf16 %v83_v53, %v81_v52  ;;  %v80_v59 = vld [vmem:[%s1926_s0 + $0x1e0] sm:$0xff] }
  0x2b   :  { %930 = vmatprep.subr.bf16.mxu1 %v929_v1  ;;  %v82_v60 = vld [vmem:[%s1926_s0 + $0x1f0] sm:$0xff]  ;;  %v693_v61 = vld [vmem:[%s1926_s0 + $0x3e0] sm:$0xff]  ;;  %v949_v62 = vpack.c.bf16 %v696_v55, %v694_v54  ;;  %v698_v0 = vld [vmem:[%s1926_s0 + $0x408] sm:$0xff] }
  0x2c   :  { %v695_v63 = vld [vmem:[%s1926_s0 + $0x3f0] sm:$0xff]  ;;  %v700_v1 = vld [vmem:[%s1926_s0 + $0x418] sm:$0xff]  ;;  %v762_v2 = vld [vmem:[%s1926_s0 + $0x608] sm:$0xff]  ;;  %v887_v4 = vpack.c.bf16 %v82_v60, %v80_v59 }
  0x2d   :  { %868 = vmatpush1.bf16.msra.mxu0 %v867_v7  ;;  %v764_v3 = vld [vmem:[%s1926_s0 + $0x618] sm:$0xff]  ;;  %v951_v5 = vpack.c.bf16 %v695_v63, %v693_v61  ;;  %v953_v6 = vpack.c.bf16 %v700_v1, %v698_v0  ;;  %v697_v7 = vld [vmem:[%s1926_s0 + $0x400] sm:$0xff]  ;;  %v699_v8 = vld [vmem:[%s1926_s0 + $0x410] sm:$0xff] }
  0x2e   :  { %932 = vmatpush1.bf16.msra.mxu1 %v931_v9  ;;  %870 = vmatprep.subr.bf16.mxu0 %v869_v10  ;;  %v761_v9 = vld [vmem:[%s1926_s0 + $0x600] sm:$0xff]  ;;  %v1017_v10 = vpack.c.bf16 %v764_v3, %v762_v2  ;;  %v763_v11 = vld [vmem:[%s1926_s0 + $0x610] sm:$0xff]  ;;  %v702_v12 = vld [vmem:[%s1926_s0 + $0x428] sm:$0xff]  ;;  %v955_v18 = vpack.c.bf16 %v699_v8, %v697_v7 }
  0x2f   :  { %934 = vmatprep.subr.bf16.mxu1 %v933_v14  ;;  %v704_v13 = vld [vmem:[%s1926_s0 + $0x438] sm:$0xff]  ;;  %v766_v14 = vld [vmem:[%s1926_s0 + $0x628] sm:$0xff]  ;;  %v1534_v16 = vld [vmem:[%s1927_s1] sm:$0xff]  ;;  %v1019_v19 = vpack.c.bf16 %v763_v11, %v761_v9 }
  0x30   :  { %v768_v15 = vld [vmem:[%s1926_s0 + $0x638] sm:$0xff]  ;;  %v765_v23 = vld [vmem:[%s1926_s0 + $0x620] sm:$0xff]  ;;  %v767_v25 = vld [vmem:[%s1926_s0 + $0x630] sm:$0xff] }
  0x31   :  { %872 = vmatpush1.bf16.msra.mxu0 %v871_v20  ;;  %v957_v20 = vpack.c.bf16 %v704_v13, %v702_v12  ;;  %v1021_v24 = vpack.c.bf16 %v768_v15, %v766_v14  ;;  %v708_v27 = vld [vmem:[%s1926_s0 + $0x458] sm:$0xff]  ;;  %v770_v28 = vld [vmem:[%s1926_s0 + $0x648] sm:$0xff]  ;;  %v1023_v31 = vpack.c.bf16 %v767_v25, %v765_v23  ;;  %v769_v35 = vld [vmem:[%s1926_s0 + $0x640] sm:$0xff] }
  0x32   :  { %936 = vmatpush1.bf16.msra.mxu1 %v935_v21  ;;  %874 = vmatprep.subr.bf16.mxu0 %v873_v22  ;;  %v701_v21 = vld [vmem:[%s1926_s0 + $0x420] sm:$0xff]  ;;  %v703_v22 = vld [vmem:[%s1926_s0 + $0x430] sm:$0xff]  ;;  %v772_v29 = vld [vmem:[%s1926_s0 + $0x658] sm:$0xff] }
  0x33   :  { %938 = vmatprep.subr.bf16.mxu1 %v937_v26  ;;  %v706_v26 = vld [vmem:[%s1926_s0 + $0x448] sm:$0xff]  ;;  %v959_v30 = vpack.c.bf16 %v703_v22, %v701_v21  ;;  %v1025_v36 = vpack.c.bf16 %v772_v29, %v770_v28  ;;  %v771_v37 = vld [vmem:[%s1926_s0 + $0x650] sm:$0xff]  ;;  %v712_v39 = vld [vmem:[%s1926_s0 + $0x478] sm:$0xff] }
  0x34   :  { %v774_v40 = vld [vmem:[%s1926_s0 + $0x668] sm:$0xff]  ;;  %v776_v41 = vld [vmem:[%s1926_s0 + $0x678] sm:$0xff]  ;;  %v1027_v43 = vpack.c.bf16 %v771_v37, %v769_v35  ;;  %v773_v47 = vld [vmem:[%s1926_s0 + $0x660] sm:$0xff] }
  0x35   :  { %876 = vmatpush1.bf16.msra.mxu0 %v875_v32  ;;  %v961_v32 = vpack.c.bf16 %v708_v27, %v706_v26  ;;  %v1029_v48 = vpack.c.bf16 %v776_v41, %v774_v40  ;;  %v775_v49 = vld [vmem:[%s1926_s0 + $0x670] sm:$0xff]  ;;  %v716_v51 = vld [vmem:[%s1926_s0 + $0x498] sm:$0xff]  ;;  %v778_v52 = vld [vmem:[%s1926_s0 + $0x688] sm:$0xff] }
  0x36   :  { %940 = vmatpush1.bf16.msra.mxu1 %v939_v33  ;;  %878 = vmatprep.subr.bf16.mxu0 %v877_v34  ;;  %v705_v33 = vld [vmem:[%s1926_s0 + $0x440] sm:$0xff]  ;;  %v707_v34 = vld [vmem:[%s1926_s0 + $0x450] sm:$0xff]  ;;  %v780_v53 = vld [vmem:[%s1926_s0 + $0x698] sm:$0xff]  ;;  %v1031_v55 = vpack.c.bf16 %v775_v49, %v773_v47 }
  0x37   :  { %942 = vmatprep.subr.bf16.mxu1 %v941_v38  ;;  %v710_v38 = vld [vmem:[%s1926_s0 + $0x468] sm:$0xff]  ;;  %v963_v42 = vpack.c.bf16 %v707_v34, %v705_v33  ;;  %v777_v59 = vld [vmem:[%s1926_s0 + $0x680] sm:$0xff]  ;;  %v1033_v60 = vpack.c.bf16 %v780_v53, %v778_v52  ;;  %v779_v61 = vld [vmem:[%s1926_s0 + $0x690] sm:$0xff] }
  0x38   :  { %v720_v63 = vld [vmem:[%s1926_s0 + $0x4b8] sm:$0xff]  ;;  %v782_v0 = vld [vmem:[%s1926_s0 + $0x6a8] sm:$0xff]  ;;  %v1035_v3 = vpack.c.bf16 %v779_v61, %v777_v59  ;;  %v781_v7 = vld [vmem:[%s1926_s0 + $0x6a0] sm:$0xff] }
  0x39   :  { %880 = vmatpush1.bf16.msra.mxu0 %v879_v44  ;;  %v965_v44 = vpack.c.bf16 %v712_v39, %v710_v38  ;;  %v784_v1 = vld [vmem:[%s1926_s0 + $0x6b8] sm:$0xff]  ;;  %v783_v9 = vld [vmem:[%s1926_s0 + $0x6b0] sm:$0xff]  ;;  %v786_v12 = vld [vmem:[%s1926_s0 + $0x6c8] sm:$0xff] }
  0x3a   :  { %944 = vmatpush1.bf16.msra.mxu1 %v943_v45  ;;  %882 = vmatprep.subr.bf16.mxu0 %v881_v46  ;;  %v709_v45 = vld [vmem:[%s1926_s0 + $0x460] sm:$0xff]  ;;  %v711_v46 = vld [vmem:[%s1926_s0 + $0x470] sm:$0xff]  ;;  %v1037_v8 = vpack.c.bf16 %v784_v1, %v782_v0  ;;  %v724_v11 = vld [vmem:[%s1926_s0 + $0x4d8] sm:$0xff] }
  0x3b   :  { %946 = vmatprep.subr.bf16.mxu1 %v945_v50  ;;  %v714_v50 = vld [vmem:[%s1926_s0 + $0x488] sm:$0xff]  ;;  %v967_v54 = vpack.c.bf16 %v711_v46, %v709_v45  ;;  %v788_v13 = vld [vmem:[%s1926_s0 + $0x6d8] sm:$0xff]  ;;  %v721_v21 = vld [vmem:[%s1926_s0 + $0x4c0] sm:$0xff] }
  0x3c   :  { %v1661_v14 = vld [vmem:[%s1927_s1 + $0x18] sm:$0xff]  ;;  %v723_v22 = vld [vmem:[%s1926_s0 + $0x4d0] sm:$0xff]  ;;  %v785_v23 = vld [vmem:[%s1926_s0 + $0x6c0] sm:$0xff] }
  0x3d   :  { %884 = vmatpush1.bf16.msra.mxu0 %v883_v56  ;;  %v969_v56 = vpack.c.bf16 %v716_v51, %v714_v50  ;;  %v787_v25 = vld [vmem:[%s1926_s0 + $0x6d0] sm:$0xff]  ;;  %v726_v26 = vld [vmem:[%s1926_s0 + $0x4e8] sm:$0xff]  ;;  %v728_v27 = vld [vmem:[%s1926_s0 + $0x4f8] sm:$0xff] }
  0x3e   :  { %948 = vmatpush1.bf16.msra.mxu1 %v947_v57  ;;  %886 = vmatprep.subr.bf16.mxu0 %v885_v58  ;;  %v713_v57 = vld [vmem:[%s1926_s0 + $0x480] sm:$0xff]  ;;  %v715_v58 = vld [vmem:[%s1926_s0 + $0x490] sm:$0xff]  ;;  %v790_v28 = vld [vmem:[%s1926_s0 + $0x6e8] sm:$0xff]  ;;  %v981_v33 = vpack.c.bf16 %v728_v27, %v726_v26 }
  0x3f   :  { %950 = vmatprep.subr.bf16.mxu1 %v949_v62  ;;  %v718_v62 = vld [vmem:[%s1926_s0 + $0x4a8] sm:$0xff]  ;;  %v971_v2 = vpack.c.bf16 %v715_v58, %v713_v57  ;;  %v792_v29 = vld [vmem:[%s1926_s0 + $0x6f8] sm:$0xff]  ;;  %v725_v34 = vld [vmem:[%s1926_s0 + $0x4e0] sm:$0xff] }
  0x40   :  { %v727_v35 = vld [vmem:[%s1926_s0 + $0x4f0] sm:$0xff]  ;;  %v1045_v37 = vpack.c.bf16 %v792_v29, %v790_v28  ;;  %v730_v39 = vld [vmem:[%s1926_s0 + $0x508] sm:$0xff]  ;;  %v732_v40 = vld [vmem:[%s1926_s0 + $0x518] sm:$0xff] }
  0x41   :  { %888 = vmatpush1.bf16.msra.mxu0 %v887_v4  ;;  %v973_v4 = vpack.c.bf16 %v720_v63, %v718_v62  ;;  %v791_v38 = vld [vmem:[%s1926_s0 + $0x6f0] sm:$0xff]  ;;  %v794_v41 = vld [vmem:[%s1926_s0 + $0x708] sm:$0xff]  ;;  %v985_v46 = vpack.c.bf16 %v732_v40, %v730_v39  ;;  %v736_v52 = vld [vmem:[%s1926_s0 + $0x538] sm:$0xff] }
  0x42   :  { %952 = vmatpush1.bf16.msra.mxu1 %v951_v5  ;;  %954 = vmatprep.subr.bf16.mxu0 %v953_v6  ;;  %v717_v5 = vld [vmem:[%s1926_s0 + $0x4a0] sm:$0xff]  ;;  %v719_v6 = vld [vmem:[%s1926_s0 + $0x4b0] sm:$0xff]  ;;  %v734_v51 = vld [vmem:[%s1926_s0 + $0x528] sm:$0xff] }
  0x43   :  { %1018 = vmatprep.subr.bf16.mxu1 %v1017_v10  ;;  %v722_v10 = vld [vmem:[%s1926_s0 + $0x4c8] sm:$0xff]  ;;  %v975_v15 = vpack.c.bf16 %v719_v6, %v717_v5  ;;  %v731_v47 = vld [vmem:[%s1926_s0 + $0x510] sm:$0xff]  ;;  %v989_v57 = vpack.c.bf16 %v736_v52, %v734_v51  ;;  %v733_v58 = vld [vmem:[%s1926_s0 + $0x520] sm:$0xff] }
  0x44   :  { %159 = vmatmul.mubr.f32.vlgmr.msra.gmra.mrb[0].mxu0 %v1534_v16  ;;  %v795_v50 = vld [vmem:[%s1926_s0 + $0x710] sm:$0xff]  ;;  %v798_v53 = vld [vmem:[%s1926_s0 + $0x728] sm:$0xff]  ;;  %v740_v0 = vld [vmem:[%s1926_s0 + $0x558] sm:$0xff] }
  0x45   :  { %305 = vmatmul.mubr.f32.vlgmr.msra.gmra.mrb[0].mxu1 %v1534_v16  ;;  %956 = vmatpush1.bf16.msra.mxu0 %v955_v18  ;;  %v1667_v18 = vld [vmem:[%s1927_s1 + $0x10] sm:$0xff]  ;;  %v738_v63 = vld [vmem:[%s1926_s0 + $0x548] sm:$0xff]  ;;  %v737_v6 = vld [vmem:[%s1926_s0 + $0x540] sm:$0xff] }
  0x46   :  { %1020 = vmatpush1.bf16.msra.mxu1 %v1019_v19  ;;  %958 = vmatprep.subr.bf16.mxu0 %v957_v20  ;;  %v1039_v19 = vpack.c.bf16 %v783_v9, %v781_v7  ;;  %v977_v20 = vpack.c.bf16 %v724_v11, %v722_v10  ;;  %v735_v59 = vld [vmem:[%s1926_s0 + $0x530] sm:$0xff]  ;;  %v802_v1 = vld [vmem:[%s1926_s0 + $0x748] sm:$0xff]  ;;  %v993_v5 = vpack.c.bf16 %v740_v0, %v738_v63  ;;  %v748_v28 = vld [vmem:[%s1926_s0 + $0x598] sm:$0xff] }
  0x47   :  { %1022 = vmatprep.subr.bf16.mxu1 %v1021_v24  ;;  %164 = vmatprep.mubr.f32.mxu0 %v1661_v14  ;;  %v1041_v24 = vpack.c.bf16 %v788_v13, %v786_v12  ;;  %v799_v62 = vld [vmem:[%s1926_s0 + $0x730] sm:$0xff]  ;;  %v742_v11 = vld [vmem:[%s1926_s0 + $0x568] sm:$0xff]  ;;  %v744_v12 = vld [vmem:[%s1926_s0 + $0x578] sm:$0xff] }
  0x48   :  { %310 = vmatprep.mubr.f32.mxu1 %v1661_v14  ;;  %165 = vmatmul.mubr.f32.gmra.mrb[2].mxu0 %v1667_v18  ;;  %v739_v7 = vld [vmem:[%s1926_s0 + $0x550] sm:$0xff]  ;;  %v806_v13 = vld [vmem:[%s1926_s0 + $0x768] sm:$0xff]  ;;  %v752_v40 = vld [vmem:[%s1926_s0 + $0x5b8] sm:$0xff] }
  0x49   :  { %960 = vmatpush1.bf16.msra.mxu0 %v959_v30  ;;  %311 = vmatmul.mubr.f32.gmra.mrb[2].mxu1 %v1667_v18  ;;  %v979_v30 = vpack.c.bf16 %v723_v22, %v721_v21  ;;  %v803_v10 = vld [vmem:[%s1926_s0 + $0x750] sm:$0xff]  ;;  %v997_v21 = vpack.c.bf16 %v744_v12, %v742_v11  ;;  %v741_v22 = vld [vmem:[%s1926_s0 + $0x560] sm:$0xff]  ;;  %v746_v27 = vld [vmem:[%s1926_s0 + $0x588] sm:$0xff] }
  0x4a   :  { %1024 = vmatpush1.bf16.msra.mxu1 %v1023_v31  ;;  %962 = vmatprep.subr.bf16.mxu0 %v961_v32  ;;  %v18_v31 = vld [vmem:[%s1928_s2] sm:$0xff]  ;;  %v1043_v32 = vpack.c.bf16 %v787_v25, %v785_v23  ;;  %v743_v23 = vld [vmem:[%s1926_s0 + $0x570] sm:$0xff]  ;;  %v810_v29 = vld [vmem:[%s1926_s0 + $0x788] sm:$0xff] }
  0x4b   :  { %1026 = vmatprep.subr.bf16.mxu1 %v1025_v36  ;;  %454 = vmatprep.mubr.f32.mxu0 %v1401_v17  ;;  %v789_v36 = vld [vmem:[%s1926_s0 + $0x6e0] sm:$0xff]  ;;  %v807_v26 = vld [vmem:[%s1926_s0 + $0x770] sm:$0xff]  ;;  %v750_v39 = vld [vmem:[%s1926_s0 + $0x5a8] sm:$0xff] }
  0x4c   :  { %600 = vmatprep.mubr.f32.mxu1 %v1401_v17  ;;  %86 = vperm.xlu0 %1082, %v18_v31   ;;  %v1047_v45 = vpack.c.bf16 %v791_v38, %v789_v36  ;;  %v729_v17 = vld [vmem:[%s1926_s0 + $0x500] sm:$0xff]  ;;  %v999_v31 = vpack.c.bf16 %v743_v23, %v741_v22  ;;  %v811_v38 = vld [vmem:[%s1926_s0 + $0x790] sm:$0xff]  ;;  %v756_v51 = vld [vmem:[%s1926_s0 + $0x5d8] sm:$0xff] }
  0x4d   :  { %964 = vmatpush1.bf16.msra.mxu0 %v963_v42  ;;  %v796_v42 = vld [vmem:[%s1926_s0 + $0x718] sm:$0xff]  ;;  %v809_v36 = vld [vmem:[%s1926_s0 + $0x780] sm:$0xff]  ;;  %v818_v52 = vld [vmem:[%s1926_s0 + $0x7c8] sm:$0xff] }
  0x4e   :  { %1028 = vmatpush1.bf16.msra.mxu1 %v1027_v43  ;;  %966 = vmatprep.subr.bf16.mxu0 %v965_v44  ;;  %v983_v43 = vpack.c.bf16 %v727_v35, %v725_v34  ;;  %v19_v44 = vld [vmem:[%s1928_s2 + $0x8] sm:$0xff]  ;;  %v1049_v49 = vpack.c.bf16 %v796_v42, %v794_v41  ;;  %v745_v34 = vld [vmem:[%s1926_s0 + $0x580] sm:$0xff]  ;;  %v747_v35 = vld [vmem:[%s1926_s0 + $0x590] sm:$0xff] }
  0x4f   :  { %1030 = vmatprep.subr.bf16.mxu1 %v1029_v48  ;;  %v793_v48 = vld [vmem:[%s1926_s0 + $0x700] sm:$0xff]  ;;  %v814_v41 = vld [vmem:[%s1926_s0 + $0x7a8] sm:$0xff]  ;;  %v816_v42 = vld [vmem:[%s1926_s0 + $0x7b8] sm:$0xff] }
  0x50   :  { %91 = vperm.xlu0 %1082, %v19_v44   ;;  %v1067_v44 = vpack.c.bf16 %v811_v38, %v809_v36  ;;  %v760_v63 = vld [vmem:[%s1926_s0 + $0x5f8] sm:$0xff]  ;;  %v822_v0 = vld [vmem:[%s1926_s0 + $0x7e8] sm:$0xff] }
  0x51   :  { %968 = vmatpush1.bf16.msra.mxu0 %v967_v54  ;;  %v800_v54 = vld [vmem:[%s1926_s0 + $0x738] sm:$0xff] }
  0x52   :  { %1032 = vmatpush1.bf16.msra.mxu1 %v1031_v55  ;;  %970 = vmatprep.subr.bf16.mxu0 %v969_v56  ;;  %v987_v55 = vpack.c.bf16 %v731_v47, %v729_v17  ;;  %v1051_v56 = vpack.c.bf16 %v795_v50, %v793_v48  ;;  %v1053_v61 = vpack.c.bf16 %v800_v54, %v798_v53  ;;  %v751_v17 = vld [vmem:[%s1926_s0 + $0x5b0] sm:$0xff]  ;;  %v813_v47 = vld [vmem:[%s1926_s0 + $0x7a0] sm:$0xff]  ;;  %v754_v50 = vld [vmem:[%s1926_s0 + $0x5c8] sm:$0xff] }
  0x53   :  { %1034 = vmatprep.subr.bf16.mxu1 %v1033_v60  ;;  %v797_v60 = vld [vmem:[%s1926_s0 + $0x720] sm:$0xff]  ;;  %v1069_v48 = vpack.c.bf16 %v816_v42, %v814_v41  ;;  %v820_v53 = vld [vmem:[%s1926_s0 + $0x7d8] sm:$0xff] }
  0x55   :  { %972 = vmatpush1.bf16.msra.mxu0 %v971_v2  ;;  %v804_v2 = vld [vmem:[%s1926_s0 + $0x758] sm:$0xff] }
  0x56   :  { %1036 = vmatpush1.bf16.msra.mxu1 %v1035_v3  ;;  %974 = vmatprep.subr.bf16.mxu0 %v973_v4  ;;  %v991_v3 = vpack.c.bf16 %v735_v59, %v733_v58  ;;  %v1055_v4 = vpack.c.bf16 %v799_v62, %v797_v60  ;;  %v1057_v9 = vpack.c.bf16 %v804_v2, %v802_v1  ;;  %v755_v58 = vld [vmem:[%s1926_s0 + $0x5d0] sm:$0xff]  ;;  %v817_v59 = vld [vmem:[%s1926_s0 + $0x7c0] sm:$0xff]  ;;  %v758_v62 = vld [vmem:[%s1926_s0 + $0x5e8] sm:$0xff] }
  0x57   :  { %1038 = vmatprep.subr.bf16.mxu1 %v1037_v8  ;;  %v801_v8 = vld [vmem:[%s1926_s0 + $0x740] sm:$0xff]  ;;  %v1073_v60 = vpack.c.bf16 %v820_v53, %v818_v52  ;;  %v824_v1 = vld [vmem:[%s1926_s0 + $0x7f8] sm:$0xff] }
  0x59   :  { %976 = vmatpush1.bf16.msra.mxu0 %v975_v15  ;;  %v808_v15 = vld [vmem:[%s1926_s0 + $0x778] sm:$0xff] }
  0x5a   :  { %1040 = vmatpush1.bf16.msra.mxu1 %v1039_v19  ;;  %978 = vmatprep.subr.bf16.mxu0 %v977_v20  ;;  %v995_v19 = vpack.c.bf16 %v739_v7, %v737_v6  ;;  %v1059_v20 = vpack.c.bf16 %v803_v10, %v801_v8  ;;  %v1061_v25 = vpack.c.bf16 %v808_v15, %v806_v13  ;;  %v759_v6 = vld [vmem:[%s1926_s0 + $0x5f0] sm:$0xff]  ;;  %v821_v8 = vld [vmem:[%s1926_s0 + $0x7e0] sm:$0xff] }
  0x5b   :  { %1042 = vmatprep.subr.bf16.mxu1 %v1041_v24  ;;  %v805_v24 = vld [vmem:[%s1926_s0 + $0x760] sm:$0xff]  ;;  %v1077_v7 = vpack.c.bf16 %v824_v1, %v822_v0 }
  0x5d   :  { %980 = vmatpush1.bf16.msra.mxu0 %v979_v30  ;;  %v812_v30 = vld [vmem:[%s1926_s0 + $0x798] sm:$0xff] }
  0x5e   :  { %1044 = vmatpush1.bf16.msra.mxu1 %v1043_v32  ;;  %982 = vmatprep.subr.bf16.mxu0 %v981_v33  ;;  %v1063_v32 = vpack.c.bf16 %v807_v26, %v805_v24  ;;  %v1001_v33 = vpack.c.bf16 %v748_v28, %v746_v27 }
  0x5f   :  { %1046 = vmatprep.subr.bf16.mxu1 %v1045_v37  ;;  %v1065_v37 = vpack.c.bf16 %v812_v30, %v810_v29 }
  0x61   :  { %984 = vmatpush1.bf16.msra.mxu0 %v983_v43  ;;  %v1003_v43 = vpack.c.bf16 %v747_v35, %v745_v34 }
  0x62   :  { %1048 = vmatpush1.bf16.msra.mxu1 %v1047_v45  ;;  %986 = vmatprep.subr.bf16.mxu0 %v985_v46  ;;  %v1005_v45 = vpack.c.bf16 %v752_v40, %v750_v39  ;;  %v749_v46 = vld [vmem:[%s1926_s0 + $0x5a0] sm:$0xff] }
  0x63   :  { %1050 = vmatprep.subr.bf16.mxu1 %v1049_v49  ;;  %v815_v49 = vld [vmem:[%s1926_s0 + $0x7b0] sm:$0xff]  ;;  %v1007_v54 = vpack.c.bf16 %v751_v17, %v749_v46 }
  0x65   :  { %988 = vmatpush1.bf16.msra.mxu0 %v987_v55  ;;  %v1071_v55 = vpack.c.bf16 %v815_v49, %v813_v47 }
  0x66   :  { %1052 = vmatpush1.bf16.msra.mxu1 %v1051_v56  ;;  %990 = vmatprep.subr.bf16.mxu0 %v989_v57  ;;  %v1009_v56 = vpack.c.bf16 %v756_v51, %v754_v50  ;;  %v753_v57 = vld [vmem:[%s1926_s0 + $0x5c0] sm:$0xff] }
  0x67   :  { %1054 = vmatprep.subr.bf16.mxu1 %v1053_v61  ;;  %v819_v61 = vld [vmem:[%s1926_s0 + $0x7d0] sm:$0xff]  ;;  %v1011_v2 = vpack.c.bf16 %v755_v58, %v753_v57 }
  0x69   :  { %992 = vmatpush1.bf16.msra.mxu0 %v991_v3  ;;  %v1075_v3 = vpack.c.bf16 %v819_v61, %v817_v59 }
  0x6a   :  { %1056 = vmatpush1.bf16.msra.mxu1 %v1055_v4  ;;  %994 = vmatprep.subr.bf16.mxu0 %v993_v5  ;;  %v1013_v4 = vpack.c.bf16 %v760_v63, %v758_v62  ;;  %v757_v5 = vld [vmem:[%s1926_s0 + $0x5e0] sm:$0xff] }
  0x6b   :  { %1058 = vmatprep.subr.bf16.mxu1 %v1057_v9  ;;  %v823_v9 = vld [vmem:[%s1926_s0 + $0x7f0] sm:$0xff]  ;;  %v1015_v10 = vpack.c.bf16 %v759_v6, %v757_v5 }
  0x6c   :  { %v1079_v11 = vpack.c.bf16 %v823_v9, %v821_v8 }
  0x6d   :  { %996 = vmatpush1.bf16.msra.mxu0 %v995_v19 }
  0x6e   :  { %1060 = vmatpush1.bf16.msra.mxu1 %v1059_v20  ;;  %998 = vmatprep.subr.bf16.mxu0 %v997_v21 }
  0x6f   :  { %1062 = vmatprep.subr.bf16.mxu1 %v1061_v25 }
  0x71   :  { %1000 = vmatpush1.bf16.msra.mxu0 %v999_v31 }
  0x72   :  { %1064 = vmatpush1.bf16.msra.mxu1 %v1063_v32  ;;  %1002 = vmatprep.subr.bf16.mxu0 %v1001_v33 }
  0x73   :  { %1066 = vmatprep.subr.bf16.mxu1 %v1065_v37 }
  0x75   :  { %1004 = vmatpush1.bf16.msra.mxu0 %v1003_v43 }
  0x76   :  { %1068 = vmatpush1.bf16.msra.mxu1 %v1067_v44  ;;  %1006 = vmatprep.subr.bf16.mxu0 %v1005_v45 }
  0x77   :  { %1070 = vmatprep.subr.bf16.mxu1 %v1069_v48 }
  0x79   :  { %1008 = vmatpush1.bf16.msra.mxu0 %v1007_v54 }
  0x7a   :  { %1072 = vmatpush1.bf16.msra.mxu1 %v1071_v55  ;;  %1010 = vmatprep.subr.bf16.mxu0 %v1009_v56 }
  0x7b   :  { %1074 = vmatprep.subr.bf16.mxu1 %v1073_v60 }
  0x7d   :  { %1012 = vmatpush1.bf16.msra.mxu0 %v1011_v2 }
  0x7e   :  { %1076 = vmatpush1.bf16.msra.mxu1 %v1075_v3  ;;  %1014 = vmatprep.subr.bf16.mxu0 %v1013_v4 }
  0x7f   :  { %1078 = vmatprep.subr.bf16.mxu1 %v1077_v7 }
  0x81   :  { %1016 = vmatpush1.bf16.msra.mxu0 %v1015_v10 }
  0x82   :  { %1080 = vmatpush1.bf16.msra.mxu1 %v1079_v11 }
  0x84   :  { %455 = vmatmul.mubr.f32.vlgmr.msra.gmra.mrb[4].mxu0 %v1534_v16 }
  0x85   :  { %601 = vmatmul.mubr.f32.vlgmr.msra.gmra.mrb[4].mxu1 %v1534_v16  ;;  %460 = vmatprep.mubr.f32.mxu0 %v1661_v14 }
  0x86   :  { %606 = vmatprep.mubr.f32.mxu1 %v1661_v14 }
  0x88   :  { %461 = vmatmul.mubr.f32.gmra.mrb[6].mxu0 %v1667_v18 }
  0x89   :  { %607 = vmatmul.mubr.f32.gmra.mrb[6].mxu1 %v1667_v18 }
  0xcb   :  { %v87_v12 = vpop.permute.xlu0 %86 }
  0xcf   :  { %v92_v14 = vpop.permute.xlu0 %91 }
 0x117   :  { %v160_v13 = vpop.f32.mrb[0].mxu0 }
 0x118   :  { %v306_v15 = vpop.f32.mrb[0].mxu1  ;;  %v162_v19 = vpop.f32.mrb[1].mxu0  ;;  %v161_v20 = vadd.f32 %v160_v13, %v87_v12 }
 0x119   :  { %v163_v21 = vadd.f32 %v162_v19, %v87_v12  ;;  %v308_v22 = vpop.f32.mrb[1].mxu1  ;;  %v307_v23 = vadd.f32 %v306_v15, %v87_v12 }
 0x11a   :  { %v309_v24 = vadd.f32 %v308_v22, %v87_v12  ;;  %v171_v25 = vmax.f32 %v161_v20, 0.0 }
 0x11b   :  { %v172_v26 = vmax.f32 %v163_v21, 0.0  ;;  %v317_v16 = vmax.f32 %v307_v23, 0.0  ;;  %v166_v30 = vpop.f32.mrb[2].mxu0 }
 0x11c   :  { %v318_v27 = vmax.f32 %v309_v24, 0.0  ;;  %v312_v31 = vpop.f32.mrb[2].mxu1  ;;  %v168_v32 = vpop.f32.mrb[3].mxu0  ;;  %v167_v33 = vadd.f32 %v166_v30, %v92_v14 }
 0x11d   :  { %v321_v28 = vmax.f32 %v171_v25, %v317_v16  ;;  %v314_v18 = vpop.f32.mrb[3].mxu1  ;;  %v313_v34 = vadd.f32 %v312_v31, %v92_v14  ;;  %v169_v35 = vadd.f32 %v168_v32, %v92_v14 }
 0x11e   :  { %v322_v29 = vmax.f32 %v172_v26, %v318_v27  ;;  %v315_v36 = vadd.f32 %v314_v18, %v92_v14  ;;  %v173_v37 = vmax.f32 %v167_v33, 0.0 }
 0x11f   :  { %v319_v38 = vmax.f32 %v313_v34, 0.0  ;;  %v174_v39 = vmax.f32 %v169_v35, 0.0 }
 0x120   :  { %v320_v40 = vmax.f32 %v315_v36, 0.0 }
 0x121   :  { %v323_v41 = vmax.f32 %v173_v37, %v319_v38 }
 0x122   :  { %v324_v42 = vmax.f32 %v174_v39, %v320_v40 }
 0x157   :  { %v456_v43 = vpop.f32.mrb[4].mxu0 }
 0x158   :  { %v457_v44 = vadd.f32 %v456_v43, %v87_v12  ;;  %v602_v45 = vpop.f32.mrb[4].mxu1  ;;  %v458_v46 = vpop.f32.mrb[5].mxu0 }
 0x159   :  { %v603_v17 = vadd.f32 %v602_v45, %v87_v12  ;;  %v459_v47 = vadd.f32 %v458_v46, %v87_v12  ;;  %v604_v48 = vpop.f32.mrb[5].mxu1 }
 0x15a   :  { %v467_v49 = vmax.f32 %v457_v44, 0.0  ;;  %v605_v50 = vadd.f32 %v604_v48, %v87_v12 }
 0x15b   :  { %v613_v51 = vmax.f32 %v603_v17, 0.0  ;;  %v468_v52 = vmax.f32 %v459_v47, 0.0  ;;  %v462_v53 = vpop.f32.mrb[6].mxu0 }
 0x15c   :  { %v614_v54 = vmax.f32 %v605_v50, 0.0  ;;  %v463_v55 = vadd.f32 %v462_v53, %v92_v14  ;;  %v608_v56 = vpop.f32.mrb[6].mxu1  ;;  %v464_v57 = vpop.f32.mrb[7].mxu0 }
 0x15d   :  { %v617_v58 = vmax.f32 %v467_v49, %v613_v51  ;;  %v609_v59 = vadd.f32 %v608_v56, %v92_v14  ;;  %v465_v60 = vadd.f32 %v464_v57, %v92_v14  ;;  %v610_v61 = vpop.f32.mrb[7].mxu1 }
 0x15e   :  { %v618_v62 = vmax.f32 %v468_v52, %v614_v54  ;;  %v469_v63 = vmax.f32 %v463_v55, 0.0  ;;  %v611_v0 = vadd.f32 %v610_v61, %v92_v14 }
 0x15f   :  { %v621_v1 = vmax.f32 %v321_v28, %v617_v58  ;;  %v615_v2 = vmax.f32 %v609_v59, 0.0  ;;  %v470_v3 = vmax.f32 %v465_v60, 0.0 }
 0x160   :  { %v622_v4 = vmax.f32 %v322_v29, %v618_v62  ;;  %v616_v5 = vmax.f32 %v611_v0, 0.0 }
 0x161   :  { %625 = vst [vmem:[%s1929_s3] sm:$0xff] %v621_v1  ;;  %v619_v6 = vmax.f32 %v469_v63, %v615_v2 }
 0x162   :  { %626 = vst [vmem:[%s1929_s3 + $0x8] sm:$0xff] %v622_v4  ;;  %v620_v7 = vmax.f32 %v470_v3, %v616_v5 }
 0x163   :  { %v623_v8 = vmax.f32 %v323_v41, %v619_v6 }
 0x164   :  { %v624_v9 = vmax.f32 %v324_v42, %v620_v7 }
 0x165   :  { %627 = vst [vmem:[%s1929_s3 + $0x10] sm:$0xff] %v623_v8 }
 0x166   :  { %628 = vst [vmem:[%s1929_s3 + $0x18] sm:$0xff] %v624_v9 }

// kernel: convnet_forward.5
= control target key start
LH: loop header
LB: loop body
LE: loop exit
PB: predicated region body
PF: predicated region fallthrough
CT: control target
= control target key end

     0   :  { %v1270_v3 = vmov 0   ;;  %v1271_v57 = vmov 0.0|0.0   ;;  %vm226_vm0 = vcmask 130048   ;;  %vm1272_vm1 = vmmov 0   ;;  %s1861_s0 = inlined_call_operand.vmem [shape: f32[400,128], index: 0, kind: input, shape index: {}]   ;;  %s1862_s1 = inlined_call_operand.vmem [shape: f32[120,400], index: 1, kind: input, shape index: {}]   ;;  %s1863_s2 = inlined_call_operand.vmem [shape: f32[120,1], index: 2, kind: input, shape index: {}]   ;;  %s1864_s4 = inlined_call_operand.vmem [shape: f32[84,1], index: 4, kind: input, shape index: {}]   ;;  %s1865_s6 = inlined_call_operand.vmem [shape: f32[10,1], index: 6, kind: input, shape index: {}]   ;;  %s1866_s3 = inlined_call_operand.vmem [shape: f32[84,120], index: 3, kind: input, shape index: {}]   ;;  %s1867_s5 = inlined_call_operand.vmem [shape: f32[10,84], index: 5, kind: input, shape index: {}]   ;;  %s1868_s7 = inlined_call_operand.vmem [shape: f32[10,128], index: 7, kind: output, shape index: {}]  }
   0x1   :  { %v42_v0 = vld [vmem:[%s1861_s0 + $0x80] sm:$0xff]  ;;  %v43_v1 = vld [vmem:[%s1861_s0 + $0x88] sm:$0xff]  ;;  %1268 = vset.pattern.permute.xlu0 %v1270_v3  ;;  %1269 = vset.pattern.permute.xlu1 %v1270_v3  ;;  %v44_v6 = vld [vmem:[%s1861_s0 + $0x90] sm:$0xff]  ;;  %vm644_vm2 = vcmask 982016   ;;  %vm823_vm3 = vcmask 687104   ;;  %vm830_vm4 = vcmask 1043456  }
   0x2   :  { %v26_v2 = vld [vmem:[%s1861_s0] sm:$0xff]  ;;  %v1148_v4 = vpack.c.bf16 %v43_v1, %v42_v0  ;;  %v27_v5 = vld [vmem:[%s1861_s0 + $0x8] sm:$0xff]  ;;  %v45_v7 = vld [vmem:[%s1861_s0 + $0x98] sm:$0xff] }
   0x3   :  { %v1150_v8 = vpack.c.bf16 %v27_v5, %v26_v2  ;;  %v1152_v9 = vpack.c.bf16 %v45_v7, %v44_v6  ;;  %v28_v10 = vld [vmem:[%s1861_s0 + $0x10] sm:$0xff]  ;;  %v29_v11 = vld [vmem:[%s1861_s0 + $0x18] sm:$0xff]  ;;  %v46_v12 = vld [vmem:[%s1861_s0 + $0xa0] sm:$0xff] }
   0x4   :  { %1248 = vmatprep.subr.bf16.mxu1 %v1148_v4  ;;  %v47_v13 = vld [vmem:[%s1861_s0 + $0xa8] sm:$0xff]  ;;  %1149 = vmatprep.subr.bf16.mxu0 %v1148_v4  ;;  %v1154_v14 = vpack.c.bf16 %v29_v11, %v28_v10  ;;  %v30_v16 = vld [vmem:[%s1861_s0 + $0x20] sm:$0xff]  ;;  %v48_v18 = vld [vmem:[%s1861_s0 + $0xb0] sm:$0xff] }
   0x5   :  { %1256 = vmatpush3.bf16.msra.mxu1 %v1150_v8  ;;  %1151 = vmatpush3.bf16.msra.mxu0 %v1150_v8  ;;  %v1156_v15 = vpack.c.bf16 %v47_v13, %v46_v12  ;;  %v31_v17 = vld [vmem:[%s1861_s0 + $0x28] sm:$0xff]  ;;  %v49_v19 = vld [vmem:[%s1861_s0 + $0xb8] sm:$0xff]  ;;  %v32_v22 = vld [vmem:[%s1861_s0 + $0x30] sm:$0xff] }
   0x6   :  { %1249 = vmatprep.subr.bf16.mxu1 %v1152_v9  ;;  %1153 = vmatprep.subr.bf16.mxu0 %v1152_v9  ;;  %v1158_v20 = vpack.c.bf16 %v31_v17, %v30_v16  ;;  %v1160_v21 = vpack.c.bf16 %v49_v19, %v48_v18  ;;  %v33_v23 = vld [vmem:[%s1861_s0 + $0x38] sm:$0xff]  ;;  %v50_v24 = vld [vmem:[%s1861_s0 + $0xc0] sm:$0xff]  ;;  %v51_v25 = vld [vmem:[%s1861_s0 + $0xc8] sm:$0xff] }
   0x7   :  { %v109_v26 = vld [vmem:[%s1862_s1 + $0x108] sm:$0xff]  ;;  %v1162_v27 = vpack.c.bf16 %v33_v23, %v32_v22  ;;  %v1164_v28 = vpack.c.bf16 %v51_v25, %v50_v24  ;;  %v34_v29 = vld [vmem:[%s1861_s0 + $0x40] sm:$0xff]  ;;  %v52_v31 = vld [vmem:[%s1861_s0 + $0xd0] sm:$0xff] }
   0x8   :  { %376 = vmatprep.mubr.f32.mxu1 %v109_v26  ;;  %v35_v30 = vld [vmem:[%s1861_s0 + $0x48] sm:$0xff]  ;;  %v53_v32 = vld [vmem:[%s1861_s0 + $0xd8] sm:$0xff]  ;;  %v36_v35 = vld [vmem:[%s1861_s0 + $0x50] sm:$0xff] }
   0x9   :  { %1257 = vmatpush3.bf16.msra.mxu1 %v1154_v14  ;;  %1155 = vmatpush3.bf16.msra.mxu0 %v1154_v14  ;;  %v1166_v33 = vpack.c.bf16 %v35_v30, %v34_v29  ;;  %v1168_v34 = vpack.c.bf16 %v53_v32, %v52_v31  ;;  %v37_v36 = vld [vmem:[%s1861_s0 + $0x58] sm:$0xff]  ;;  %v54_v37 = vld [vmem:[%s1861_s0 + $0xe0] sm:$0xff]  ;;  %v55_v38 = vld [vmem:[%s1861_s0 + $0xe8] sm:$0xff] }
   0xa   :  { %1250 = vmatprep.subr.bf16.mxu1 %v1156_v15  ;;  %1157 = vmatprep.subr.bf16.mxu0 %v1156_v15  ;;  %v1170_v39 = vpack.c.bf16 %v37_v36, %v36_v35  ;;  %v77_v40 = vld [vmem:[%s1862_s1 + $0x8] sm:$0xff]  ;;  %v1172_v41 = vpack.c.bf16 %v55_v38, %v54_v37  ;;  %v38_v42 = vld [vmem:[%s1861_s0 + $0x60] sm:$0xff]  ;;  %v56_v44 = vld [vmem:[%s1861_s0 + $0xf0] sm:$0xff] }
   0xb   :  { %v39_v43 = vld [vmem:[%s1861_s0 + $0x68] sm:$0xff]  ;;  %v57_v45 = vld [vmem:[%s1861_s0 + $0xf8] sm:$0xff]  ;;  %336 = vmatprep.mubr.f32.mxu0 %v77_v40  ;;  %v40_v48 = vld [vmem:[%s1861_s0 + $0x70] sm:$0xff] }
   0xc   :  { %v1174_v46 = vpack.c.bf16 %v39_v43, %v38_v42  ;;  %v1176_v47 = vpack.c.bf16 %v57_v45, %v56_v44  ;;  %v41_v49 = vld [vmem:[%s1861_s0 + $0x78] sm:$0xff]  ;;  %v58_v51 = vld [vmem:[%s1861_s0 + $0x100] sm:$0xff]  ;;  %v59_v52 = vld [vmem:[%s1861_s0 + $0x108] sm:$0xff] }
   0xd   :  { %1258 = vmatpush3.bf16.msra.mxu1 %v1158_v20  ;;  %1159 = vmatpush3.bf16.msra.mxu0 %v1158_v20  ;;  %v1178_v50 = vpack.c.bf16 %v41_v49, %v40_v48  ;;  %v108_v53 = vld [vmem:[%s1862_s1 + $0x100] sm:$0xff]  ;;  %v1181_v54 = vpack.c.bf16 %v59_v52, %v58_v51  ;;  %v60_v58 = vld [vmem:[%s1861_s0 + $0x110] sm:$0xff]  ;;  %v61_v59 = vld [vmem:[%s1861_s0 + $0x118] sm:$0xff] }
   0xe   :  { %1251 = vmatprep.subr.bf16.mxu1 %v1160_v21  ;;  %1161 = vmatprep.subr.bf16.mxu0 %v1160_v21  ;;  %v76_v55 = vld [vmem:[%s1862_s1] sm:$0xff]  ;;  %v113_v60 = vld [vmem:[%s1862_s1 + $0x128] sm:$0xff]  ;;  %v138_v63 = vld [vmem:[%s1863_s2 + $0x10] sm:$0xff]  ;;  %v1184_v0 = vpack.c.bf16 %v61_v59, %v60_v58 }
   0xf   :  { %v136_v56 = vld [vmem:[%s1863_s2] sm:$0xff]  ;;  %v81_v61 = vld [vmem:[%s1862_s1 + $0x28] sm:$0xff]  ;;  %163 = vperm.xlu1 %1269, %v138_v63   ;;  %v139_v8 = vld [vmem:[%s1863_s2 + $0x18] sm:$0xff] }
  0x10   :  { %153 = vperm.xlu0 %1268, %v136_v56   ;;  %v137_v62 = vld [vmem:[%s1863_s2 + $0x8] sm:$0xff]  ;;  %v112_v1 = vld [vmem:[%s1862_s1 + $0x120] sm:$0xff]  ;;  %v64_v12 = vld [vmem:[%s1861_s0 + $0x130] sm:$0xff] }
  0x11   :  { %1259 = vmatpush3.bf16.msra.mxu1 %v1162_v27  ;;  %1163 = vmatpush3.bf16.msra.mxu0 %v1162_v27  ;;  %v80_v2 = vld [vmem:[%s1862_s1 + $0x20] sm:$0xff]  ;;  %v63_v4 = vld [vmem:[%s1861_s0 + $0x128] sm:$0xff]  ;;  %v65_v13 = vld [vmem:[%s1861_s0 + $0x138] sm:$0xff] }
  0x12   :  { %1252 = vmatprep.subr.bf16.mxu1 %v1164_v28  ;;  %1165 = vmatprep.subr.bf16.mxu0 %v1164_v28  ;;  %v62_v3 = vld [vmem:[%s1861_s0 + $0x120] sm:$0xff]  ;;  %v117_v5 = vld [vmem:[%s1862_s1 + $0x148] sm:$0xff]  ;;  %v142_v16 = vld [vmem:[%s1863_s2 + $0x30] sm:$0xff]  ;;  %v1190_v18 = vpack.c.bf16 %v65_v13, %v64_v12 }
  0x13   :  { %v85_v6 = vld [vmem:[%s1862_s1 + $0x48] sm:$0xff]  ;;  %v140_v7 = vld [vmem:[%s1863_s2 + $0x20] sm:$0xff]  ;;  %v1187_v9 = vpack.c.bf16 %v63_v4, %v62_v3  ;;  %168 = vperm.xlu1 %1269, %v139_v8   ;;  %v143_v26 = vld [vmem:[%s1863_s2 + $0x38] sm:$0xff] }
  0x14   :  { %158 = vperm.xlu0 %1268, %v137_v62   ;;  %v116_v10 = vld [vmem:[%s1862_s1 + $0x140] sm:$0xff]  ;;  %v121_v14 = vld [vmem:[%s1862_s1 + $0x168] sm:$0xff]  ;;  %v68_v30 = vld [vmem:[%s1861_s0 + $0x150] sm:$0xff] }
  0x15   :  { %1260 = vmatpush3.bf16.msra.mxu1 %v1166_v33  ;;  %1167 = vmatpush3.bf16.msra.mxu0 %v1166_v33  ;;  %v84_v11 = vld [vmem:[%s1862_s1 + $0x40] sm:$0xff]  ;;  %v89_v15 = vld [vmem:[%s1862_s1 + $0x68] sm:$0xff]  ;;  %v69_v31 = vld [vmem:[%s1861_s0 + $0x158] sm:$0xff] }
  0x16   :  { %1253 = vmatprep.subr.bf16.mxu1 %v1168_v34  ;;  %1169 = vmatprep.subr.bf16.mxu0 %v1168_v34  ;;  %v141_v17 = vld [vmem:[%s1863_s2 + $0x28] sm:$0xff]  ;;  %v120_v19 = vld [vmem:[%s1862_s1 + $0x160] sm:$0xff]  ;;  %v146_v35 = vld [vmem:[%s1863_s2 + $0x50] sm:$0xff]  ;;  %v1196_v36 = vpack.c.bf16 %v69_v31, %v68_v30 }
  0x17   :  { %v88_v20 = vld [vmem:[%s1862_s1 + $0x60] sm:$0xff]  ;;  %v67_v22 = vld [vmem:[%s1861_s0 + $0x148] sm:$0xff]  ;;  %178 = vperm.xlu1 %1269, %v141_v17   ;;  %v147_v43 = vld [vmem:[%s1863_s2 + $0x58] sm:$0xff] }
  0x18   :  { %173 = vperm.xlu0 %1268, %v140_v7   ;;  %v66_v21 = vld [vmem:[%s1861_s0 + $0x140] sm:$0xff]  ;;  %v125_v23 = vld [vmem:[%s1862_s1 + $0x188] sm:$0xff]  ;;  %v72_v48 = vld [vmem:[%s1861_s0 + $0x170] sm:$0xff] }
  0x19   :  { %1261 = vmatpush3.bf16.msra.mxu1 %v1170_v39  ;;  %1171 = vmatpush3.bf16.msra.mxu0 %v1170_v39  ;;  %v93_v24 = vld [vmem:[%s1862_s1 + $0x88] sm:$0xff]  ;;  %v144_v25 = vld [vmem:[%s1863_s2 + $0x40] sm:$0xff]  ;;  %v1193_v27 = vpack.c.bf16 %v67_v22, %v66_v21  ;;  %v73_v49 = vld [vmem:[%s1861_s0 + $0x178] sm:$0xff] }
  0x1a   :  { %1254 = vmatprep.subr.bf16.mxu1 %v1172_v41  ;;  %1173 = vmatprep.subr.bf16.mxu0 %v1172_v41  ;;  %v124_v28 = vld [vmem:[%s1862_s1 + $0x180] sm:$0xff]  ;;  %v129_v32 = vld [vmem:[%s1862_s1 + $0x1a8] sm:$0xff]  ;;  %v580_v62 = vld [vmem:[%s1864_s4 + $0x10] sm:$0xff] }
  0x1b   :  { %v92_v29 = vld [vmem:[%s1862_s1 + $0x80] sm:$0xff]  ;;  %v97_v33 = vld [vmem:[%s1862_s1 + $0xa8] sm:$0xff]  ;;  %188 = vperm.xlu1 %1269, %v143_v26   ;;  %v581_v63 = vld [vmem:[%s1864_s4 + $0x18] sm:$0xff] }
  0x1c   :  { %183 = vperm.xlu0 %1268, %v142_v16   ;;  %v145_v34 = vld [vmem:[%s1863_s2 + $0x48] sm:$0xff]  ;;  %v128_v37 = vld [vmem:[%s1862_s1 + $0x1a0] sm:$0xff]  ;;  %v82_v4 = vld [vmem:[%s1862_s1 + $0x30] sm:$0xff] }
  0x1d   :  { %1262 = vmatpush3.bf16.msra.mxu1 %v1174_v46  ;;  %1175 = vmatpush3.bf16.msra.mxu0 %v1174_v46  ;;  %v96_v38 = vld [vmem:[%s1862_s1 + $0xa0] sm:$0xff]  ;;  %v71_v40 = vld [vmem:[%s1861_s0 + $0x168] sm:$0xff]  ;;  %v585_v7 = vld [vmem:[%s1864_s4 + $0x38] sm:$0xff] }
  0x1e   :  { %1255 = vmatprep.subr.bf16.mxu1 %v1176_v47  ;;  %1177 = vmatprep.subr.bf16.mxu0 %v1176_v47  ;;  %v70_v39 = vld [vmem:[%s1861_s0 + $0x160] sm:$0xff]  ;;  %v133_v41 = vld [vmem:[%s1862_s1 + $0x1c8] sm:$0xff]  ;;  %v86_v8 = vld [vmem:[%s1862_s1 + $0x50] sm:$0xff] }
  0x1f   :  { %v101_v42 = vld [vmem:[%s1862_s1 + $0xc8] sm:$0xff]  ;;  %198 = vperm.xlu1 %1269, %v145_v34   ;;  %v148_v44 = vld [vmem:[%s1863_s2 + $0x60] sm:$0xff]  ;;  %v1199_v45 = vpack.c.bf16 %v71_v40, %v70_v39  ;;  %v90_v12 = vld [vmem:[%s1862_s1 + $0x70] sm:$0xff] }
  0x20   :  { %193 = vperm.xlu0 %1268, %v144_v25   ;;  %v132_v46 = vld [vmem:[%s1862_s1 + $0x1c0] sm:$0xff]  ;;  %v105_v51 = vld [vmem:[%s1862_s1 + $0xe8] sm:$0xff]  ;;  %v95_v13 = vld [vmem:[%s1862_s1 + $0x98] sm:$0xff] }
  0x21   :  { %1263 = vmatpush3.bf16.msra.mxu1 %v1178_v50  ;;  %1179 = vmatpush3.bf16.msra.mxu0 %v1178_v50  ;;  %v100_v47 = vld [vmem:[%s1862_s1 + $0xc0] sm:$0xff]  ;;  %v79_v50 = vld [vmem:[%s1862_s1 + $0x18] sm:$0xff]  ;;  %v149_v52 = vld [vmem:[%s1863_s2 + $0x68] sm:$0xff] }
  0x22   :  { %1180 = vmatprep.subr.bf16.mxu1 %v1271_v57  ;;  %1207 = vmatprep.subr.bf16.mxu0 %v1271_v57  ;;  %v74_v56 = vld [vmem:[%s1861_s0 + $0x180] sm:$0xff]  ;;  %v75_v58 = vld [vmem:[%s1861_s0 + $0x188] sm:$0xff]  ;;  %v94_v16 = vld [vmem:[%s1862_s1 + $0x90] sm:$0xff] }
  0x23   :  { %208 = vperm.xlu1 %1269, %v147_v43   ;;  %v578_v59 = vld [vmem:[%s1864_s4] sm:$0xff]  ;;  %v583_v3 = vld [vmem:[%s1864_s4 + $0x28] sm:$0xff]  ;;  %v99_v17 = vld [vmem:[%s1862_s1 + $0xb8] sm:$0xff] }
  0x24   :  { %377 = vmatmul.mubr.f32.vlgmr.msra.gmra.mrb[0].mxu1 %v108_v53  ;;  %337 = vmatmul.mubr.f32.vlgmr.msra.gmra.mrb[0].mxu0 %v76_v55  ;;  %v150_v53 = vld [vmem:[%s1863_s2 + $0x70] sm:$0xff]  ;;  %v104_v55 = vld [vmem:[%s1862_s1 + $0xe0] sm:$0xff]  ;;  %v107_v22 = vld [vmem:[%s1862_s1 + $0xf8] sm:$0xff] }
  0x25   :  { %1182 = vmatpush1.bf16.msra.mxu1 %v1181_v54  ;;  %381 = vmatprep.mubr.f32.mxu1 %v113_v60  ;;  %v1202_v54 = vpack.c.bf16 %v73_v49, %v72_v48  ;;  %v579_v60 = vld [vmem:[%s1864_s4 + $0x8] sm:$0xff]  ;;  %v102_v21 = vld [vmem:[%s1862_s1 + $0xd0] sm:$0xff]  ;;  %v115_v26 = vld [vmem:[%s1862_s1 + $0x138] sm:$0xff] }
  0x26   :  { %1183 = vmatprep.subr.bf16.mxu1 %v1271_v57  ;;  %341 = vmatprep.mubr.f32.mxu0 %v81_v61  ;;  %v1205_v61 = vpack.c.bf16 %v75_v58, %v74_v56  ;;  %v110_v25 = vld [vmem:[%s1862_s1 + $0x110] sm:$0xff]  ;;  %v123_v30 = vld [vmem:[%s1862_s1 + $0x178] sm:$0xff] }
  0x27   :  { %203 = vperm.xlu0 %1268, %v146_v35   ;;  %218 = vperm.xlu1 %1269, %v149_v52   ;;  %v122_v31 = vld [vmem:[%s1862_s1 + $0x170] sm:$0xff]  ;;  %v131_v34 = vld [vmem:[%s1862_s1 + $0x1b8] sm:$0xff] }
  0x28   :  { %382 = vmatmul.mubr.f32.gmra.mrb[2].mxu1 %v112_v1  ;;  %342 = vmatmul.mubr.f32.gmra.mrb[2].mxu0 %v80_v2  ;;  %v83_v1 = vld [vmem:[%s1862_s1 + $0x38] sm:$0xff]  ;;  %v582_v2 = vld [vmem:[%s1864_s4 + $0x20] sm:$0xff]  ;;  %v130_v35 = vld [vmem:[%s1862_s1 + $0x1b0] sm:$0xff] }
  0x29   :  { %1185 = vmatpush1.bf16.msra.mxu1 %v1184_v0  ;;  %386 = vmatprep.mubr.f32.mxu1 %v117_v5  ;;  %v78_v0 = vld [vmem:[%s1862_s1 + $0x10] sm:$0xff]  ;;  %v87_v5 = vld [vmem:[%s1862_s1 + $0x58] sm:$0xff] }
  0x2a   :  { %1186 = vmatprep.subr.bf16.mxu1 %v1271_v57  ;;  %346 = vmatprep.mubr.f32.mxu0 %v85_v6  ;;  %v584_v6 = vld [vmem:[%s1864_s4 + $0x30] sm:$0xff] }
  0x2b   :  { %213 = vperm.xlu0 %1268, %v148_v44   ;;  %591 = vperm.xlu1 %1269, %v578_v59  }
  0x2c   :  { %387 = vmatmul.mubr.f32.gmra.mrb[4].mxu1 %v116_v10  ;;  %347 = vmatmul.mubr.f32.gmra.mrb[4].mxu0 %v84_v11  ;;  %v586_v10 = vld [vmem:[%s1864_s4 + $0x40] sm:$0xff]  ;;  %v587_v11 = vld [vmem:[%s1864_s4 + $0x48] sm:$0xff] }
  0x2d   :  { %1188 = vmatpush1.bf16.msra.mxu1 %v1187_v9  ;;  %391 = vmatprep.mubr.f32.mxu1 %v121_v14  ;;  %v91_v9 = vld [vmem:[%s1862_s1 + $0x78] sm:$0xff]  ;;  %v588_v14 = vld [vmem:[%s1864_s4 + $0x50] sm:$0xf] }
  0x2e   :  { %1189 = vmatprep.subr.bf16.mxu1 %v1271_v57  ;;  %351 = vmatprep.mubr.f32.mxu0 %v89_v15  ;;  %v811_v15 = vld [vmem:[%s1865_s6] sm:$0xff] }
  0x2f   :  { %223 = vperm.xlu0 %1268, %v150_v53   ;;  %601 = vperm.xlu1 %1269, %v580_v62  }
  0x30   :  { %392 = vmatmul.mubr.f32.gmra.mrb[6].mxu1 %v120_v19  ;;  %352 = vmatmul.mubr.f32.gmra.mrb[6].mxu0 %v88_v20  ;;  %v98_v19 = vld [vmem:[%s1862_s1 + $0xb0] sm:$0xff]  ;;  %v103_v20 = vld [vmem:[%s1862_s1 + $0xd8] sm:$0xff] }
  0x31   :  { %1191 = vmatpush1.bf16.msra.mxu1 %v1190_v18  ;;  %396 = vmatprep.mubr.f32.mxu1 %v125_v23  ;;  %v812_v18 = vld [vmem:[%s1865_s6 + $0x8] sm:$0x3]  ;;  %v106_v23 = vld [vmem:[%s1862_s1 + $0xf0] sm:$0xff] }
  0x32   :  { %1192 = vmatprep.subr.bf16.mxu1 %v1271_v57  ;;  %356 = vmatprep.mubr.f32.mxu0 %v93_v24  ;;  %v111_v24 = vld [vmem:[%s1862_s1 + $0x118] sm:$0xff] }
  0x33   :  { %596 = vperm.xlu0 %1268, %v579_v60   ;;  %611 = vperm.xlu1 %1269, %v582_v2  }
  0x34   :  { %397 = vmatmul.mubr.f32.gmra.mrb[8].mxu1 %v124_v28  ;;  %357 = vmatmul.mubr.f32.gmra.mrb[8].mxu0 %v92_v29  ;;  %v119_v28 = vld [vmem:[%s1862_s1 + $0x158] sm:$0xff]  ;;  %v118_v29 = vld [vmem:[%s1862_s1 + $0x150] sm:$0xff] }
  0x35   :  { %1194 = vmatpush1.bf16.msra.mxu1 %v1193_v27  ;;  %401 = vmatprep.mubr.f32.mxu1 %v129_v32  ;;  %v114_v27 = vld [vmem:[%s1862_s1 + $0x130] sm:$0xff]  ;;  %v127_v32 = vld [vmem:[%s1862_s1 + $0x198] sm:$0xff] }
  0x36   :  { %1195 = vmatprep.subr.bf16.mxu1 %v1271_v57  ;;  %361 = vmatprep.mubr.f32.mxu0 %v97_v33  ;;  %v126_v33 = vld [vmem:[%s1862_s1 + $0x190] sm:$0xff] }
  0x37   :  { %606 = vperm.xlu0 %1268, %v581_v63   ;;  %621 = vperm.xlu1 %1269, %v584_v6  }
  0x38   :  { %402 = vmatmul.mubr.f32.gmra.mrb[10].mxu1 %v128_v37  ;;  %362 = vmatmul.mubr.f32.gmra.mrb[10].mxu0 %v96_v38  ;;  %v134_v37 = vld [vmem:[%s1862_s1 + $0x1d0] sm:$0xff]  ;;  %v1273_v38 = vmov 0.0  }
  0x39   :  { %1197 = vmatpush1.bf16.msra.mxu1 %v1196_v36  ;;  %406 = vmatprep.mubr.f32.mxu1 %v133_v41  ;;  %v135_v36 = vld [vmem:[%s1862_s1 + $0x1d8] sm:$0xff] }
  0x3a   :  { %1198 = vmatprep.subr.bf16.mxu1 %v1271_v57  ;;  %366 = vmatprep.mubr.f32.mxu0 %v101_v42 }
  0x3b   :  { %616 = vperm.xlu0 %1268, %v583_v3   ;;  %631 = vperm.xlu1 %1269, %v586_v10  }
  0x3c   :  { %407 = vmatmul.mubr.f32.gmra.mrb[12].mxu1 %v132_v46  ;;  %367 = vmatmul.mubr.f32.gmra.mrb[12].mxu0 %v100_v47 }
  0x3d   :  { %1200 = vmatpush1.bf16.msra.mxu1 %v1199_v45  ;;  %915 = vmatprep.mubr.msk.f32.mxu1 %vm226_vm0, %v79_v50 }
  0x3e   :  { %1201 = vmatprep.subr.bf16.mxu1 %v1271_v57  ;;  %371 = vmatprep.mubr.f32.mxu0 %v105_v51 }
  0x3f   :  { %626 = vperm.xlu0 %1268, %v585_v7   ;;  %641 = vperm.xlu1 %1269, %v588_v14  }
  0x40   :  { %372 = vmatmul.mubr.f32.gmra.mrb[14].mxu0 %v104_v55 }
  0x41   :  { %1203 = vmatpush1.bf16.msra.mxu1 %v1202_v54  ;;  %1090 = vmatprep.mubr.msk.f32.mxu0 %vm1272_vm1, %v1273_v38 }
  0x42   :  { %1204 = vmatprep.subr.bf16.mxu1 %v1271_v57 }
  0x43   :  { %636 = vperm.xlu0 %1268, %v587_v11   ;;  %820 = vperm.xlu1 %1269, %v812_v18  }
  0x45   :  { %1206 = vmatpush1.bf16.msra.mxu1 %v1205_v61 }
  0x47   :  { %815 = vperm.xlu0 %1268, %v811_v15  }
  0x48   :  { %477 = vmatmul.mubr.f32.vlgmr.msra.gmra.mrb[14].mxu1 %v78_v0 }
  0x49   :  { %916 = vmatprep.mubr.msk.f32.mxu1 %vm226_vm0, %v83_v1 }
  0x4c   :  { %482 = vmatmul.mubr.f32.gmra.mrb[16].mxu1 %v82_v4 }
  0x4d   :  { %917 = vmatprep.mubr.msk.f32.mxu1 %vm226_vm0, %v87_v5 }
  0x50   :  { %487 = vmatmul.mubr.f32.gmra.mrb[18].mxu1 %v86_v8 }
  0x51   :  { %918 = vmatprep.mubr.msk.f32.mxu1 %vm226_vm0, %v91_v9 }
  0x54   :  { %492 = vmatmul.mubr.f32.gmra.mrb[20].mxu1 %v90_v12 }
  0x55   :  { %919 = vmatprep.mubr.msk.f32.mxu1 %vm226_vm0, %v95_v13 }
  0x58   :  { %497 = vmatmul.mubr.f32.gmra.mrb[22].mxu1 %v94_v16 }
  0x59   :  { %920 = vmatprep.mubr.msk.f32.mxu1 %vm226_vm0, %v99_v17 }
  0x5c   :  { %502 = vmatmul.mubr.f32.gmra.mrb[24].mxu1 %v98_v19 }
  0x5d   :  { %921 = vmatprep.mubr.msk.f32.mxu1 %vm226_vm0, %v103_v20 }
  0x60   :  { %507 = vmatmul.mubr.f32.gmra.mrb[26].mxu1 %v102_v21 }
  0x61   :  { %922 = vmatprep.mubr.msk.f32.mxu1 %vm226_vm0, %v107_v22 }
  0x64   :  { %512 = vmatmul.mubr.f32.gmra.mrb[28].mxu1 %v106_v23 }
  0x65   :  { %923 = vmatprep.mubr.msk.f32.mxu1 %vm226_vm0, %v111_v24 }
  0x68   :  { %517 = vmatmul.mubr.f32.gmra.mrb[30].mxu1 %v110_v25 }
  0x69   :  { %924 = vmatprep.mubr.msk.f32.mxu1 %vm226_vm0, %v115_v26 }
  0x6c   :  { %522 = vmatmul.mubr.f32.gmra.mrb[32].mxu1 %v114_v27 }
  0x6d   :  { %925 = vmatprep.mubr.msk.f32.mxu1 %vm226_vm0, %v119_v28 }
  0x70   :  { %527 = vmatmul.mubr.f32.gmra.mrb[34].mxu1 %v118_v29 }
  0x71   :  { %926 = vmatprep.mubr.msk.f32.mxu1 %vm226_vm0, %v123_v30 }
  0x74   :  { %532 = vmatmul.mubr.f32.gmra.mrb[36].mxu1 %v122_v31 }
  0x75   :  { %927 = vmatprep.mubr.msk.f32.mxu1 %vm226_vm0, %v127_v32 }
  0x78   :  { %537 = vmatmul.mubr.f32.gmra.mrb[38].mxu1 %v126_v33 }
  0x79   :  { %928 = vmatprep.mubr.msk.f32.mxu1 %vm226_vm0, %v131_v34 }
  0x7c   :  { %542 = vmatmul.mubr.f32.gmra.mrb[40].mxu1 %v130_v35 }
  0x7d   :  { %929 = vmatprep.mubr.msk.f32.mxu1 %vm226_vm0, %v135_v36 }
  0x80   :  { %547 = vmatmul.mubr.f32.gmra.mrb[42].mxu1 %v134_v37 }
  0x8e   :  { %v164_v28 = vpop.permute.xlu1 %163 }
  0x8f   :  { %v154_v20 = vpop.permute.xlu0 %153 }
  0x92   :  { %v169_v35 = vpop.permute.xlu1 %168 }
  0x93   :  { %v159_v23 = vpop.permute.xlu0 %158 }
  0xf7   :  { %v1000_v39 = vpop.f32.mrb[0].mxu1  ;;  %v976_v40 = vpop.f32.mrb[0].mxu0 }
  0xf8   :  { %v1001_v41 = vpop.f32.mrb[1].mxu1  ;;  %v977_v42 = vpop.f32.mrb[1].mxu0 }
  0xf9   :  { %v1755_v43 = vadd.f32 %v1001_v41, %v1000_v39  ;;  %v978_v44 = vadd.f32 %v977_v42, %v976_v40  ;;  %v174_v42 = vpop.permute.xlu0 %173 }
  0xfb   :  { %v1003_v45 = vpop.f32.mrb[2].mxu1  ;;  %v979_v46 = vpop.f32.mrb[2].mxu0  ;;  %v339_v22 = vadd.f32 %v978_v44, %v154_v20 }
  0xfc   :  { %v1004_v47 = vpop.f32.mrb[3].mxu1  ;;  %v980_v48 = vpop.f32.mrb[3].mxu0 }
  0xfd   :  { %v1757_v49 = vadd.f32 %v1004_v47, %v1003_v45  ;;  %v981_v50 = vadd.f32 %v980_v48, %v979_v46 }
  0xff   :  { %v1006_v51 = vpop.f32.mrb[4].mxu1  ;;  %v982_v52 = vpop.f32.mrb[4].mxu0  ;;  %v344_v27 = vadd.f32 %v981_v50, %v159_v23 }
 0x100   :  { %v1007_v53 = vpop.f32.mrb[5].mxu1  ;;  %v983_v54 = vpop.f32.mrb[5].mxu0 }
 0x101   :  { %v1759_v55 = vadd.f32 %v1007_v53, %v1006_v51  ;;  %v984_v56 = vadd.f32 %v983_v54, %v982_v52  ;;  %v179_v51 = vpop.permute.xlu1 %178 }
 0x103   :  { %v1009_v58 = vpop.f32.mrb[6].mxu1  ;;  %v985_v59 = vpop.f32.mrb[6].mxu0  ;;  %v349_v32 = vadd.f32 %v984_v56, %v164_v28 }
 0x104   :  { %v1010_v60 = vpop.f32.mrb[7].mxu1  ;;  %v986_v61 = vpop.f32.mrb[7].mxu0 }
 0x105   :  { %v1761_v62 = vadd.f32 %v1010_v60, %v1009_v58  ;;  %v987_v63 = vadd.f32 %v986_v61, %v985_v59  ;;  %v184_v59 = vpop.permute.xlu0 %183 }
 0x107   :  { %v1012_v0 = vpop.f32.mrb[8].mxu1  ;;  %v988_v1 = vpop.f32.mrb[8].mxu0  ;;  %v354_v41 = vadd.f32 %v987_v63, %v169_v35 }
 0x108   :  { %v1013_v2 = vpop.f32.mrb[9].mxu1  ;;  %v989_v3 = vpop.f32.mrb[9].mxu0 }
 0x109   :  { %v1763_v4 = vadd.f32 %v1013_v2, %v1012_v0  ;;  %v990_v5 = vadd.f32 %v989_v3, %v988_v1  ;;  %v189_v3 = vpop.permute.xlu1 %188 }
 0x10b   :  { %v1015_v6 = vpop.f32.mrb[10].mxu1  ;;  %v991_v7 = vpop.f32.mrb[10].mxu0  ;;  %v359_v47 = vadd.f32 %v990_v5, %v174_v42 }
 0x10c   :  { %v1016_v8 = vpop.f32.mrb[11].mxu1  ;;  %v992_v9 = vpop.f32.mrb[11].mxu0 }
 0x10d   :  { %v1765_v10 = vadd.f32 %v1016_v8, %v1015_v6  ;;  %v993_v11 = vadd.f32 %v992_v9, %v991_v7 }
 0x10f   :  { %v1018_v12 = vpop.f32.mrb[12].mxu1  ;;  %v994_v13 = vpop.f32.mrb[12].mxu0  ;;  %v364_v58 = vadd.f32 %v993_v11, %v179_v51 }
 0x110   :  { %v1019_v14 = vpop.f32.mrb[13].mxu1  ;;  %v995_v15 = vpop.f32.mrb[13].mxu0 }
 0x111   :  { %v1767_v16 = vadd.f32 %v1019_v14, %v1018_v12  ;;  %v996_v17 = vadd.f32 %v995_v15, %v994_v13  ;;  %v194_v12 = vpop.permute.xlu0 %193 }
 0x112   :  { %v379_v15 = vadd.f32 %v1755_v43, %v194_v12 }
 0x113   :  { %v997_v18 = vpop.f32.mrb[14].mxu0  ;;  %v369_v0 = vadd.f32 %v996_v17, %v184_v59  ;;  %v199_v17 = vpop.permute.xlu1 %198 }
 0x114   :  { %v998_v19 = vpop.f32.mrb[15].mxu0 }
 0x115   :  { %v999_v21 = vadd.f32 %v998_v19, %v997_v18 }
 0x117   :  { %v374_v9 = vadd.f32 %v999_v21, %v189_v3  ;;  %v204_v21 = vpop.permute.xlu0 %203  ;;  %v573_v3 = vld [vmem:[%s1866_s3 + $0x30] sm:$0xff] }
 0x11b   :  { %v478_v24 = vpop.f32.mrb[14].mxu1 }
 0x11c   :  { %v479_v25 = vadd.f32 %v478_v24, %v339_v22  ;;  %v480_v26 = vpop.f32.mrb[15].mxu1 }
 0x11e   :  { %v552_v33 = vmax.f32 %v479_v25, 0.0  ;;  %v384_v25 = vadd.f32 %v1757_v49, %v199_v17  ;;  %v214_v49 = vpop.permute.xlu0 %213 }
 0x11f   :  { %v483_v29 = vpop.f32.mrb[16].mxu1 }
 0x120   :  { %v484_v30 = vadd.f32 %v483_v29, %v344_v27  ;;  %v485_v31 = vpop.f32.mrb[17].mxu1  ;;  %v389_v29 = vadd.f32 %v1759_v55, %v204_v21 }
 0x121   :  { %v209_v31 = vpop.permute.xlu1 %208 }
 0x122   :  { %v553_v34 = vmax.f32 %v484_v30, 0.0 }
 0x123   :  { %v488_v36 = vpop.f32.mrb[18].mxu1 }
 0x124   :  { %v1208_v37 = vpack.c.bf16 %v553_v34, %v552_v33  ;;  %v489_v39 = vadd.f32 %v488_v36, %v349_v32  ;;  %v490_v40 = vpop.f32.mrb[19].mxu1  ;;  %v394_v36 = vadd.f32 %v1761_v62, %v209_v31  ;;  %v224_v62 = vpop.permute.xlu0 %223 }
 0x126   :  { %1209 = vmatpush3.bf16.msra.mxu0 %v1208_v37  ;;  %v554_v48 = vmax.f32 %v489_v39, 0.0 }
 0x127   :  { %v493_v44 = vpop.f32.mrb[20].mxu1  ;;  %1210 = vmatprep.subr.bf16.mxu0 %v1271_v57 }
 0x128   :  { %v494_v45 = vadd.f32 %v493_v44, %v354_v41  ;;  %v495_v46 = vpop.f32.mrb[21].mxu1  ;;  %v399_v41 = vadd.f32 %v1763_v4, %v214_v49  ;;  %v219_v44 = vpop.permute.xlu1 %218 }
 0x12a   :  { %v555_v50 = vmax.f32 %v494_v45, 0.0 }
 0x12b   :  { %v498_v52 = vpop.f32.mrb[22].mxu1 }
 0x12c   :  { %v1211_v53 = vpack.c.bf16 %v555_v50, %v554_v48  ;;  %v499_v54 = vadd.f32 %v498_v52, %v359_v47  ;;  %v500_v56 = vpop.f32.mrb[23].mxu1  ;;  %v404_v50 = vadd.f32 %v1765_v10, %v219_v44  ;;  %v567_v10 = vld [vmem:[%s1866_s3] sm:$0xff] }
 0x12e   :  { %1212 = vmatpush3.bf16.msra.mxu0 %v1211_v53  ;;  %v556_v1 = vmax.f32 %v499_v54, 0.0  ;;  %v409_v54 = vadd.f32 %v1767_v16, %v224_v62  ;;  %v569_v16 = vld [vmem:[%s1866_s3 + $0x10] sm:$0xff] }
 0x12f   :  { %v503_v60 = vpop.f32.mrb[24].mxu1  ;;  %1213 = vmatprep.subr.bf16.mxu0 %v1271_v57 }
 0x130   :  { %v504_v61 = vadd.f32 %v503_v60, %v364_v58  ;;  %v505_v63 = vpop.f32.mrb[25].mxu1 }
 0x132   :  { %v557_v2 = vmax.f32 %v504_v61, 0.0 }
 0x133   :  { %v508_v5 = vpop.f32.mrb[26].mxu1 }
 0x134   :  { %v1214_v6 = vpack.c.bf16 %v557_v2, %v556_v1  ;;  %v509_v7 = vadd.f32 %v508_v5, %v369_v0  ;;  %v510_v8 = vpop.f32.mrb[27].mxu1  ;;  %v570_v0 = vld [vmem:[%s1866_s3 + $0x18] sm:$0xff]  ;;  %v571_v1 = vld [vmem:[%s1866_s3 + $0x20] sm:$0xff]  ;;  %v572_v2 = vld [vmem:[%s1866_s3 + $0x28] sm:$0xff] }
 0x135   :  { %v574_v5 = vld [vmem:[%s1866_s3 + $0x38] sm:$0xff]  ;;  %v577_v8 = vld [vmem:[%s1866_s3 + $0x50] sm:$0xf] }
 0x136   :  { %1215 = vmatpush3.bf16.msra.mxu0 %v1214_v6  ;;  %v558_v18 = vmax.f32 %v509_v7, 0.0  ;;  %v575_v6 = vld [vmem:[%s1866_s3 + $0x40] sm:$0xff]  ;;  %v576_v7 = vld [vmem:[%s1866_s3 + $0x48] sm:$0xff] }
 0x137   :  { %v513_v13 = vpop.f32.mrb[28].mxu1  ;;  %1216 = vmatprep.subr.bf16.mxu0 %v1271_v57 }
 0x138   :  { %v514_v11 = vadd.f32 %v513_v13, %v374_v9  ;;  %v515_v14 = vpop.f32.mrb[29].mxu1  ;;  %v809_v9 = vld [vmem:[%s1867_s5] sm:$0xff] }
 0x13a   :  { %v559_v19 = vmax.f32 %v514_v11, 0.0  ;;  %v592_v11 = vpop.permute.xlu1 %591 }
 0x13b   :  { %v518_v20 = vpop.f32.mrb[30].mxu1 }
 0x13c   :  { %v1217_v22 = vpack.c.bf16 %v559_v19, %v558_v18  ;;  %v519_v23 = vadd.f32 %v518_v20, %v379_v15  ;;  %v520_v24 = vpop.f32.mrb[31].mxu1  ;;  %v597_v15 = vpop.permute.xlu0 %596 }
 0x13e   :  { %1218 = vmatpush3.bf16.msra.mxu0 %v1217_v22  ;;  %v560_v30 = vmax.f32 %v519_v23, 0.0 }
 0x13f   :  { %v523_v26 = vpop.f32.mrb[32].mxu1  ;;  %1219 = vmatprep.subr.bf16.mxu0 %v1271_v57 }
 0x140   :  { %v524_v27 = vadd.f32 %v523_v26, %v384_v25  ;;  %v525_v28 = vpop.f32.mrb[33].mxu1  ;;  %v602_v25 = vpop.permute.xlu1 %601 }
 0x141   :  { %v607_v26 = vpop.permute.xlu0 %606 }
 0x142   :  { %v561_v43 = vmax.f32 %v524_v27, 0.0 }
 0x143   :  { %v528_v32 = vpop.f32.mrb[34].mxu1 }
 0x144   :  { %v1220_v33 = vpack.c.bf16 %v561_v43, %v560_v30  ;;  %v529_v34 = vadd.f32 %v528_v32, %v389_v29  ;;  %v530_v35 = vpop.f32.mrb[35].mxu1 }
 0x146   :  { %1221 = vmatpush3.bf16.msra.mxu0 %v1220_v33  ;;  %v562_v42 = vmax.f32 %v529_v34, 0.0  ;;  %v612_v34 = vpop.permute.xlu1 %611 }
 0x147   :  { %v533_v37 = vpop.f32.mrb[36].mxu1  ;;  %1222 = vmatprep.subr.bf16.mxu0 %v1271_v57 }
 0x148   :  { %v534_v39 = vadd.f32 %v533_v37, %v394_v36  ;;  %v535_v40 = vpop.f32.mrb[37].mxu1  ;;  %v617_v36 = vpop.permute.xlu0 %616 }
 0x14a   :  { %v563_v55 = vmax.f32 %v534_v39, 0.0 }
 0x14b   :  { %v538_v45 = vpop.f32.mrb[38].mxu1 }
 0x14c   :  { %v1223_v46 = vpack.c.bf16 %v563_v55, %v562_v42  ;;  %v539_v47 = vadd.f32 %v538_v45, %v399_v41  ;;  %v540_v48 = vpop.f32.mrb[39].mxu1  ;;  %v622_v45 = vpop.permute.xlu1 %621 }
 0x14e   :  { %1224 = vmatpush3.bf16.msra.mxu0 %v1223_v46  ;;  %v564_v56 = vmax.f32 %v539_v47, 0.0  ;;  %v627_v47 = vpop.permute.xlu0 %626 }
 0x14f   :  { %v543_v51 = vpop.f32.mrb[40].mxu1  ;;  %1225 = vmatprep.subr.bf16.mxu0 %v1271_v57  ;;  %v568_v57 = vld [vmem:[%s1866_s3 + $0x8] sm:$0xff] }
 0x150   :  { %v544_v52 = vadd.f32 %v543_v51, %v404_v50  ;;  %v545_v53 = vpop.f32.mrb[41].mxu1 }
 0x152   :  { %v565_v4 = vmax.f32 %v544_v52, 0.0 }
 0x153   :  { %v548_v58 = vpop.f32.mrb[42].mxu1 }
 0x154   :  { %v1226_v59 = vpack.c.bf16 %v565_v4, %v564_v56  ;;  %v549_v60 = vadd.f32 %v548_v58, %v409_v54  ;;  %v550_v61 = vpop.f32.mrb[43].mxu1  ;;  %v632_v4 = vpop.permute.xlu1 %631 }
 0x156   :  { %1227 = vmatpush3.bf16.msra.mxu0 %v1226_v59  ;;  %v566_v63 = vmax.f32 %v549_v60, 0.0  ;;  %v637_v59 = vpop.permute.xlu0 %636 }
 0x157   :  { %1088 = vmatprep.subr.mxu0 %v1273_v38 }
 0x15a   :  { %1089 = vmatpush3.msra.mxu0 %v566_v63 }
 0x15b   :  { %1091 = vmatmul.mubr.msk.f32.vlgmr.msra.gmra.mrb[16].mxu0 %vm644_vm2, %v567_v10 }
 0x15c   :  { %1093 = vmatprep.mubr.msk.f32.mxu0 %vm1272_vm1, %v1273_v38 }
 0x15f   :  { %1094 = vmatmul.mubr.msk.f32.gmra.mrb[18].mxu0 %vm644_vm2, %v568_v57 }
 0x160   :  { %1096 = vmatprep.mubr.msk.f32.mxu0 %vm1272_vm1, %v1273_v38 }
 0x163   :  { %1097 = vmatmul.mubr.msk.f32.gmra.mrb[20].mxu0 %vm644_vm2, %v569_v16  ;;  %v642_v16 = vpop.permute.xlu1 %641 }
 0x164   :  { %1099 = vmatprep.mubr.msk.f32.mxu0 %vm1272_vm1, %v1273_v38 }
 0x167   :  { %1100 = vmatmul.mubr.msk.f32.gmra.mrb[22].mxu0 %vm644_vm2, %v570_v0 }
 0x168   :  { %1102 = vmatprep.mubr.msk.f32.mxu0 %vm1272_vm1, %v1273_v38 }
 0x16b   :  { %1103 = vmatmul.mubr.msk.f32.gmra.mrb[24].mxu0 %vm644_vm2, %v571_v1 }
 0x16c   :  { %1105 = vmatprep.mubr.msk.f32.mxu0 %vm1272_vm1, %v1273_v38 }
 0x16f   :  { %1106 = vmatmul.mubr.msk.f32.gmra.mrb[26].mxu0 %vm644_vm2, %v572_v2 }
 0x170   :  { %1108 = vmatprep.mubr.msk.f32.mxu0 %vm1272_vm1, %v1273_v38 }
 0x173   :  { %1109 = vmatmul.mubr.msk.f32.gmra.mrb[28].mxu0 %vm644_vm2, %v573_v3 }
 0x174   :  { %1111 = vmatprep.mubr.msk.f32.mxu0 %vm1272_vm1, %v1273_v38 }
 0x177   :  { %1112 = vmatmul.mubr.msk.f32.gmra.mrb[30].mxu0 %vm644_vm2, %v574_v5 }
 0x178   :  { %1114 = vmatprep.mubr.msk.f32.mxu0 %vm1272_vm1, %v1273_v38 }
 0x17b   :  { %1115 = vmatmul.mubr.msk.f32.gmra.mrb[32].mxu0 %vm644_vm2, %v575_v6  ;;  %v810_v6 = vld [vmem:[%s1867_s5 + $0x8] sm:$0x3] }
 0x17c   :  { %1117 = vmatprep.mubr.msk.f32.mxu0 %vm1272_vm1, %v1273_v38 }
 0x17f   :  { %1118 = vmatmul.mubr.msk.f32.gmra.mrb[34].mxu0 %vm644_vm2, %v576_v7  ;;  %v821_v7 = vpop.permute.xlu1 %820 }
 0x180   :  { %1120 = vmatprep.mubr.msk.f32.mxu0 %vm1272_vm1, %v1273_v38 }
 0x183   :  { %1121 = vmatmul.mubr.msk.f32.gmra.mrb[36].mxu0 %vm644_vm2, %v577_v8 }
 0x184   :  { %1145 = vmatprep.mubr.msk.f32.mxu0 %vm823_vm3, %v809_v9  ;;  %v816_v9 = vpop.permute.xlu0 %815 }
 0x22e   :  { %v744_v12 = vpop.f32.mrb[16].mxu0 }
 0x22f   :  { %v1092_v13 = vpop.f32.mrb[17].mxu0  ;;  %v745_v14 = vadd.f32 %v744_v12, %v592_v11 }
 0x231   :  { %v798_v17 = vmax.f32 %v745_v14, 0.0 }
 0x232   :  { %v749_v18 = vpop.f32.mrb[18].mxu0 }
 0x233   :  { %v750_v38 = vadd.f32 %v749_v18, %v597_v15  ;;  %v1095_v19 = vpop.f32.mrb[19].mxu0 }
 0x235   :  { %v799_v20 = vmax.f32 %v750_v38, 0.0 }
 0x236   :  { %v754_v22 = vpop.f32.mrb[20].mxu0 }
 0x237   :  { %v1228_v23 = vpack.c.bf16 %v799_v20, %v798_v17  ;;  %v1098_v24 = vpop.f32.mrb[21].mxu0  ;;  %v755_v21 = vadd.f32 %v754_v22, %v602_v25 }
 0x239   :  { %1229 = vmatprep.subr.bf16.mxu0 %v1228_v23  ;;  %v800_v30 = vmax.f32 %v755_v21, 0.0 }
 0x23a   :  { %v759_v27 = vpop.f32.mrb[22].mxu0  ;;  %1231 = vmatpush3.bf16.msra.mxu0 %v1228_v23 }
 0x23b   :  { %v760_v28 = vadd.f32 %v759_v27, %v607_v26  ;;  %v1101_v29 = vpop.f32.mrb[23].mxu0 }
 0x23d   :  { %v801_v43 = vmax.f32 %v760_v28, 0.0 }
 0x23e   :  { %v764_v31 = vpop.f32.mrb[24].mxu0 }
 0x23f   :  { %v1232_v32 = vpack.c.bf16 %v801_v43, %v800_v30  ;;  %v1104_v33 = vpop.f32.mrb[25].mxu0  ;;  %v765_v35 = vadd.f32 %v764_v31, %v612_v34 }
 0x241   :  { %1233 = vmatprep.subr.bf16.mxu0 %v1232_v32  ;;  %v802_v40 = vmax.f32 %v765_v35, 0.0 }
 0x242   :  { %v769_v49 = vpop.f32.mrb[26].mxu0  ;;  %1235 = vmatpush3.bf16.msra.mxu0 %v1232_v32 }
 0x243   :  { %v770_v37 = vadd.f32 %v769_v49, %v617_v36  ;;  %v1107_v39 = vpop.f32.mrb[27].mxu0 }
 0x245   :  { %v803_v41 = vmax.f32 %v770_v37, 0.0 }
 0x246   :  { %v774_v42 = vpop.f32.mrb[28].mxu0 }
 0x247   :  { %v1236_v55 = vpack.c.bf16 %v803_v41, %v802_v40  ;;  %v1110_v44 = vpop.f32.mrb[29].mxu0  ;;  %v775_v46 = vadd.f32 %v774_v42, %v622_v45 }
 0x249   :  { %1237 = vmatprep.subr.bf16.mxu0 %v1236_v55  ;;  %v804_v51 = vmax.f32 %v775_v46, 0.0 }
 0x24a   :  { %v779_v48 = vpop.f32.mrb[30].mxu0  ;;  %1239 = vmatpush3.bf16.msra.mxu0 %v1236_v55 }
 0x24b   :  { %v780_v50 = vadd.f32 %v779_v48, %v627_v47  ;;  %v1113_v62 = vpop.f32.mrb[31].mxu0 }
 0x24d   :  { %v805_v52 = vmax.f32 %v780_v50, 0.0 }
 0x24e   :  { %v784_v53 = vpop.f32.mrb[32].mxu0 }
 0x24f   :  { %v1240_v54 = vpack.c.bf16 %v805_v52, %v804_v51  ;;  %v1116_v56 = vpop.f32.mrb[33].mxu0  ;;  %v785_v58 = vadd.f32 %v784_v53, %v632_v4 }
 0x251   :  { %1241 = vmatprep.subr.bf16.mxu0 %v1240_v54  ;;  %v806_v10 = vmax.f32 %v785_v58, 0.0 }
 0x252   :  { %v789_v60 = vpop.f32.mrb[34].mxu0  ;;  %1243 = vmatpush3.bf16.msra.mxu0 %v1240_v54 }
 0x253   :  { %v790_v61 = vadd.f32 %v789_v60, %v637_v59  ;;  %v1119_v63 = vpop.f32.mrb[35].mxu0 }
 0x255   :  { %v807_v57 = vmax.f32 %v790_v61, 0.0 }
 0x256   :  { %v794_v0 = vpop.f32.mrb[36].mxu0 }
 0x257   :  { %v1244_v1 = vpack.c.bf16 %v807_v57, %v806_v10  ;;  %v795_v2 = vadd.f32 %v794_v0, %v642_v16  ;;  %v1122_v3 = vpop.f32.mrb[37].mxu0 }
 0x259   :  { %v808_v5 = vmax.f32 %v795_v2, 0.0  ;;  %1245 = vmatprep.subr.bf16.mxu0 %v1244_v1 }
 0x25a   :  { %1247 = vmatpush3.bf16.msra.mxu0 %v1244_v1 }
 0x25b   :  { %1143 = vmatprep.subr.msk.mxu0 %vm830_vm4, %v808_v5 }
 0x25e   :  { %1144 = vmatpush3.msk.msra.mxu0 %vm830_vm4, %v808_v5 }
 0x25f   :  { %1146 = vmatmul.mubr.msk.f32.vlgmr.msra.gmra.mrb[38].mxu0 %vm823_vm3, %v810_v6 }
 0x332   :  { %v1147_v8 = vpop.f32.mrb[38].mxu0 }
 0x333   :  { %v906_v12 = vadd.f32 %v1147_v8, %v821_v7  ;;  %v900_v13 = vpop.f32.mrb[39].mxu0 }
 0x334   :  { %v901_v11 = vadd.f32 %v900_v13, %v816_v9 }
 0x335   :  { %910 = vst [vmem:[%s1868_s7 + $0x8] sm:$0x3] %v906_v12 }
 0x336   :  { %909 = vst [vmem:[%s1868_s7] sm:$0xff] %v901_v11 }

</bundles_post_ra>
